<compile_context>
chip_gen: v7x
topology: tpu7x:2x2x1
jax: 0.10.0
libtpu: 0.0.40
codegen_flags: <defaults>
</compile_context>

<pallas_src>
import jax
import jax.numpy as jnp
from jax.experimental import pallas as pl
from jax.experimental.pallas import tpu as pltpu


# ----------------------------- Pallas kernels ------------------------------

def _matmul_bias_relu_kernel(x_ref, w_ref, b_ref, o_ref):
    """o = relu(x @ w + b); bf16 x/w on the MXU, f32 accumulate + epilogue."""
    acc = jnp.dot(x_ref[...], w_ref[...], preferred_element_type=jnp.float32)
    o_ref[...] = jnp.maximum(acc + b_ref[...], 0.0)


def _window_max_kernel(x_ref, o_ref):
    """Max over the pooling-window axis (sublane reduce). x:(R,KK,F)->(R,F)."""
    o_ref[...] = jnp.max(x_ref[...], axis=1)


def _tail_kernel(xw_ref, s_ref, t_ref,
                 w1_ref, b1_ref, w2_ref, b2_ref, w3_ref, b3_ref, o_ref):
    """Fused post-conv tail: MaxPool2d(3) -> BN(eval)+ReLU -> fc1+ReLU ->
    fc2+ReLU -> fc3+ReLU.  All intermediates stay in VMEM/vregs."""
    # MaxPool2d(3): reduce over the 9-element window axis.
    pooled = jnp.max(xw_ref[...], axis=1)                        # (N, F) f32
    # BatchNorm2d (running stats) + Dropout2d (identity, eval) + ReLU.
    act = jnp.maximum(pooled * s_ref[...] + t_ref[...], 0.0)     # (N, F)
    # LazyLinear(1000) + ReLU (width zero-padded to 1024 lanes).
    h1 = jnp.dot(act.astype(jnp.bfloat16), w1_ref[...],
                 preferred_element_type=jnp.float32)
    h1 = jnp.maximum(h1 + b1_ref[...], 0.0)
    # Dropout (identity) ; LazyLinear(10) + ReLU (width zero-padded to 128).
    h2 = jnp.dot(h1.astype(jnp.bfloat16), w2_ref[...],
                 preferred_element_type=jnp.float32)
    h2 = jnp.maximum(h2 + b2_ref[...], 0.0)
    # Dropout (identity) ; LazyLinear(num_labels) + ReLU.
    h3 = jnp.dot(h2.astype(jnp.bfloat16), w3_ref[...],
                 preferred_element_type=jnp.float32)
    o_ref[...] = jnp.maximum(h3 + b3_ref[...], 0.0)


# ----------------------------- Pallas wrappers ------------------------------

def _pick_m_tile(m, target=1024):
    """Largest divisor of m that is a multiple of 8 and <= target (else m)."""
    if m <= target:
        return m
    for tm in range(target - target % 8, 7, -8):
        if m % tm == 0:
            return tm
    return m


def matmul_bias_relu(x, w, b):
    """relu(x @ w + b).  x:(M,K) bf16, w:(K,N) bf16, b:(N,) f32 -> (M,N) f32.
    M-tiled grid (BlockSpec double-buffered), 'parallel' for megacore/v7x."""
    m, k = x.shape
    k2, n = w.shape
    assert k == k2
    tm = _pick_m_tile(m)
    cost = pl.CostEstimate(
        flops=2 * m * k * n,
        transcendentals=0,
        bytes_accessed=m * k * 2 + k * n * 2 + n * 4 + m * n * 4,
    )
    return pl.pallas_call(
        _matmul_bias_relu_kernel,
        out_shape=jax.ShapeDtypeStruct((m, n), jnp.float32),
        grid=(m // tm,),
        in_specs=[
            pl.BlockSpec((tm, k), lambda i: (i, 0)),
            pl.BlockSpec((k, n), lambda i: (0, 0)),
            pl.BlockSpec((1, n), lambda i: (0, 0)),
        ],
        out_specs=pl.BlockSpec((tm, n), lambda i: (i, 0)),
        compiler_params=pltpu.CompilerParams(
            dimension_semantics=("parallel",),
            vmem_limit_bytes=32 * 1024 * 1024,
        ),
        cost_estimate=cost,
    )(x, w, b.astype(jnp.float32).reshape(1, n))


def window_max(xw):
    """xw:(R,KK,F) f32 -> (R,F) f32; max over window axis. Lane-dense output."""
    r, kk, f = xw.shape
    return pl.pallas_call(
        _window_max_kernel,
        out_shape=jax.ShapeDtypeStruct((r, f), jnp.float32),
        grid=(1,),
        in_specs=[pl.BlockSpec((r, kk, f), lambda i: (0, 0, 0))],
        out_specs=pl.BlockSpec((r, f), lambda i: (0, 0)),
        compiler_params=pltpu.CompilerParams(dimension_semantics=("arbitrary",)),
    )(xw)


# ------------------------------- JAX glue -----------------------------------

def im2col_nhwc(x, kh, kw):
    """x:(N,H,W,C) -> (N*OH*OW, kh*kw*C) valid-conv patches, stride 1."""
    # TODO(synk): the XLA-side stack of kh*kw shifted slices has ~kh*kw x read
    # amplification in HBM; an in-kernel pl.ds patch gather would keep reads at
    # ~1x (not worth it at these tiny activation sizes).
    n, h, w, c = x.shape
    oh, ow = h - kh + 1, w - kw + 1
    cols = jnp.stack(
        [x[:, i:i + oh, j:j + ow, :] for i in range(kh) for j in range(kw)],
        axis=3,
    )  # (N, OH, OW, kh*kw, C)
    return cols.reshape(n * oh * ow, kh * kw * c), oh, ow


def conv2d_relu_nhwc(x, w, b):
    """Valid Conv2d (stride 1) + ReLU via im2col + Pallas MXU GEMM.
    x:(N,H,W,C) f32, w:(OC,IC,kh,kw) f32, b:(OC,) -> (N,OH,OW,OC) f32."""
    n = x.shape[0]
    oc, ic, kh, kw = w.shape
    cols, oh, ow = im2col_nhwc(x, kh, kw)
    wmat = w.transpose(2, 3, 1, 0).reshape(kh * kw * ic, oc)
    out = matmul_bias_relu(cols.astype(jnp.bfloat16), wmat.astype(jnp.bfloat16), b)
    return out.reshape(n, oh, ow, oc)


def _pool_windows(x, k):
    """x:(N,H,W,C) -> (N*PH, k*k, PW*C) windows; pooled cols stay lane-dense."""
    n, h, w, c = x.shape
    ph, pw = h // k, w // k
    x = x[:, :ph * k, :pw * k, :]
    x = x.reshape(n, ph, k, pw, k, c).transpose(0, 1, 2, 4, 3, 5)
    return x.reshape(n * ph, k * k, pw * c), ph, pw


def _pool_windows_flatten(x, k):
    """x:(N,H,W,C) -> (N, k*k, PH*PW*C): a max over axis 1 gives the pooled
    features already in NHWC flatten order (ready for the fc stack)."""
    n, h, w, c = x.shape
    ph, pw = h // k, w // k
    x = x[:, :ph * k, :pw * k, :]
    x = x.reshape(n, ph, k, pw, k, c).transpose(0, 2, 4, 1, 3, 5)
    return x.reshape(n, k * k, ph * pw * c), ph, pw


# ----------------------------- model forward --------------------------------

def init_params(key, num_labels=2, flat_features=256):
    ks = jax.random.split(key, 10)
    p = {}
    p["conv1_w"] = jax.random.normal(ks[0], (32, 1, 10, 10), jnp.float32) * 0.05
    p["conv1_b"] = jax.random.normal(ks[1], (32,), jnp.float32) * 0.01
    p["conv2_w"] = jax.random.normal(ks[2], (64, 32, 3, 3), jnp.float32) * 0.05
    p["conv2_b"] = jax.random.normal(ks[3], (64,), jnp.float32) * 0.01
    # LazyBatchNorm2d (inference): gamma=1, beta=0, running_mean=0, running_var=1
    p["bn_gamma"] = jnp.ones((64,), jnp.float32)
    p["bn_beta"] = jnp.zeros((64,), jnp.float32)
    p["bn_mean"] = jnp.zeros((64,), jnp.float32)
    p["bn_var"] = jnp.ones((64,), jnp.float32)
    # fc1 rows are in NHWC flatten order (hw*C + c).  For randomly initialized
    # weights this is an equivalent permutation of PyTorch's NCHW flatten.
    p["fc1_w"] = jax.random.normal(ks[4], (flat_features, 1000), jnp.float32) * 0.05
    p["fc1_b"] = jax.random.normal(ks[5], (1000,), jnp.float32) * 0.01
    p["fc2_w"] = jax.random.normal(ks[6], (1000, 10), jnp.float32) * 0.05
    p["fc2_b"] = jax.random.normal(ks[7], (10,), jnp.float32) * 0.01
    p["fc3_w"] = jax.random.normal(ks[8], (10, num_labels), jnp.float32) * 0.05
    p["fc3_b"] = jax.random.normal(ks[9], (num_labels,), jnp.float32) * 0.01
    return p


def which_podcaster_cnn_forward(params, x):
    f32, bf16 = jnp.float32, jnp.bfloat16
    n = x.shape[0]

    # NCHW -> NHWC (input C=1, so this is effectively just a relabeling).
    xh = jnp.transpose(x, (0, 2, 3, 1)).astype(f32)

    # Conv2d(1, 32, 10) + ReLU                                -> (N, 40, 40, 32)
    y1 = conv2d_relu_nhwc(xh, params["conv1_w"], params["conv1_b"])

    # MaxPool2d(5)                                            -> (N, 8, 8, 32)
    win1, ph1, pw1 = _pool_windows(y1, 5)
    p1 = window_max(win1).reshape(n, ph1, pw1, y1.shape[-1])

    # Conv2d(32, 64, 3) + ReLU                                -> (N, 6, 6, 64)
    y2 = conv2d_relu_nhwc(p1, params["conv2_w"], params["conv2_b"])

    # Fused tail: MaxPool2d(3) -> BatchNorm2d(eval) -> Dropout2d(id) -> ReLU
    #             -> Flatten -> Linear(1000)+ReLU -> Dropout(id)
    #             -> Linear(10)+ReLU -> Dropout(id) -> Linear(num_labels)+ReLU
    win2, ph2, pw2 = _pool_windows_flatten(y2, 3)             # (N, 9, 256)
    kk2 = win2.shape[1]
    feat = ph2 * pw2 * y2.shape[-1]                           # flatten width

    # BN running stats folded to per-feature scale/shift, tiled over the
    # PH*PW spatial positions of the NHWC flatten order.
    # TODO(synk): BatchNorm2d / Dropout are eval-mode only (running stats,
    # identity dropout); training-mode behaviour is not implemented.
    eps = 1e-5
    scale_c = params["bn_gamma"] / jnp.sqrt(params["bn_var"] + eps)
    shift_c = params["bn_beta"] - params["bn_mean"] * scale_c
    scale = jnp.tile(scale_c, ph2 * pw2).reshape(1, feat).astype(f32)
    shift = jnp.tile(shift_c, ph2 * pw2).reshape(1, feat).astype(f32)

    # fc weights: bf16 + zero-pad widths to lane-aligned 1024 / 128 (exact).
    n1 = params["fc1_w"].shape[1]
    n2 = params["fc2_w"].shape[1]
    num_labels = params["fc3_w"].shape[1]
    pad1, pad2 = 1024, 128
    w1 = jnp.zeros((feat, pad1), bf16).at[:, :n1].set(params["fc1_w"].astype(bf16))
    b1 = jnp.zeros((1, pad1), f32).at[:, :n1].set(params["fc1_b"])
    w2 = jnp.zeros((pad1, pad2), bf16).at[:n1, :n2].set(params["fc2_w"].astype(bf16))
    b2 = jnp.zeros((1, pad2), f32).at[:, :n2].set(params["fc2_b"])
    w3 = jnp.zeros((pad2, num_labels), bf16).at[:n2, :].set(params["fc3_w"].astype(bf16))
    b3 = params["fc3_b"].astype(f32).reshape(1, num_labels)

    out = pl.pallas_call(
        _tail_kernel,
        out_shape=jax.ShapeDtypeStruct((n, num_labels), f32),
        grid=(1,),
        in_specs=[
            pl.BlockSpec((n, kk2, feat), lambda i: (0, 0, 0)),
            pl.BlockSpec((1, feat), lambda i: (0, 0)),
            pl.BlockSpec((1, feat), lambda i: (0, 0)),
            pl.BlockSpec((feat, pad1), lambda i: (0, 0)),
            pl.BlockSpec((1, pad1), lambda i: (0, 0)),
            pl.BlockSpec((pad1, pad2), lambda i: (0, 0)),
            pl.BlockSpec((1, pad2), lambda i: (0, 0)),
            pl.BlockSpec((pad2, num_labels), lambda i: (0, 0)),
            pl.BlockSpec((1, num_labels), lambda i: (0, 0)),
        ],
        out_specs=pl.BlockSpec((n, num_labels), lambda i: (0, 0)),
        compiler_params=pltpu.CompilerParams(
            dimension_semantics=("arbitrary",),
            vmem_limit_bytes=32 * 1024 * 1024,
        ),
    )(win2, scale, shift, w1, b1, w2, b2, w3, b3)

    return out[:, :, None]   # unsqueeze(2) -> (N, num_labels, 1)


if __name__ == "__main__":
    key = jax.random.PRNGKey(0)
    kx, kp = jax.random.split(key)
    # (N=2, C=1, H=49, W=49): 49 -conv10-> 40 -pool5-> 8 -conv3-> 6 -pool3-> 2
    x = jax.random.normal(kx, (2, 1, 49, 49), jnp.float32)
    params = init_params(kp, num_labels=2, flat_features=64 * 2 * 2)

    out = jax.jit(which_podcaster_cnn_forward)(params, x)
    out = jax.block_until_ready(out)
    assert out.shape == (2, 2, 1), out.shape
    assert out.dtype == jnp.float32
    print("KERNEL_OK")
</pallas_src>

<mosaic_0001>
module attributes {stable_mosaic.version = 11 : i64} {
  func.func @_matmul_bias_relu_kernel(%arg0: i32, %arg1: memref<800x100xbf16, #tpu.memory_space<vmem>>, %arg2: memref<100x32xbf16, #tpu.memory_space<vmem>>, %arg3: memref<1x32xf32, #tpu.memory_space<vmem>>, %arg4: memref<800x32xf32, #tpu.memory_space<vmem>>) attributes {dimension_semantics = [#tpu.dimension_semantics<parallel>], iteration_bounds = array<i64: 4>, scalar_prefetch = 0 : i64, scratch_operands = 0 : i64, tpu.core_type = #tpu.core_type<tc>, window_params = [{transform_indices = @transform_0, window_bounds = array<i64: 800, 100>}, {pipeline_mode = #tpu.pipeline_mode<synchronous>, transform_indices = @transform_1, window_bounds = array<i64: 100, 32>}, {pipeline_mode = #tpu.pipeline_mode<synchronous>, transform_indices = @transform_2, window_bounds = array<i64: 1, 32>}, {transform_indices = @transform_3, window_bounds = array<i64: 800, 32>}]} {
    %c0 = arith.constant 0 : index
    %c0_0 = arith.constant 0 : index
    %0 = vector.load %arg1[%c0, %c0_0] : memref<800x100xbf16, #tpu.memory_space<vmem>>, vector<800x100xbf16>
    %c0_1 = arith.constant 0 : index
    %c0_2 = arith.constant 0 : index
    %1 = vector.load %arg2[%c0_1, %c0_2] : memref<100x32xbf16, #tpu.memory_space<vmem>>, vector<100x32xbf16>
    %cst = arith.constant dense<0.000000e+00> : vector<800x32xf32>
    %2 = tpu.matmul %0, %1, %cst {dimension_numbers = #tpu.dot_dimension_numbers<[1], [0], [0], [1], [0, 0, 1, 1], [], []>} : vector<800x100xbf16>, vector<100x32xbf16>, vector<800x32xf32> -> vector<800x32xf32>
    %c0_3 = arith.constant 0 : index
    %c0_4 = arith.constant 0 : index
    %3 = vector.load %arg3[%c0_3, %c0_4] : memref<1x32xf32, #tpu.memory_space<vmem>>, vector<1x32xf32>
    %4 = vector.broadcast %3 : vector<1x32xf32> to vector<800x32xf32>
    %5 = arith.addf %2, %4 : vector<800x32xf32>
    %cst_5 = arith.constant 0.000000e+00 : f32
    %6 = vector.broadcast %cst_5 : f32 to vector<800x32xf32>
    %7 = arith.maximumf %5, %6 : vector<800x32xf32>
    %c0_6 = arith.constant 0 : index
    %c0_7 = arith.constant 0 : index
    %8 = vector.load %arg4[%c0_6, %c0_7] : memref<800x32xf32, #tpu.memory_space<vmem>>, vector<800x32xf32>
    tpu.vector_store %arg4[%c0_6, %c0_7], %7 {strides = array<i32>} : memref<800x32xf32, #tpu.memory_space<vmem>>, vector<800x32xf32>,
    return
  }
  func.func @transform_0(%arg0: i32) -> (i32, i32) {
    %c0_i32 = arith.constant 0 : i32
    %c0_i32_0 = arith.constant 0 : i32
    return %arg0, %c0_i32 : i32, i32
  }
  func.func @transform_1(%arg0: i32) -> (i32, i32) {
    %c0_i32 = arith.constant 0 : i32
    %c0_i32_0 = arith.constant 0 : i32
    %c0_i32_1 = arith.constant 0 : i32
    return %c0_i32, %c0_i32_0 : i32, i32
  }
  func.func @transform_2(%arg0: i32) -> (i32, i32) {
    %c0_i32 = arith.constant 0 : i32
    %c0_i32_0 = arith.constant 0 : i32
    %c0_i32_1 = arith.constant 0 : i32
    return %c0_i32, %c0_i32_0 : i32, i32
  }
  func.func @transform_3(%arg0: i32) -> (i32, i32) {
    %c0_i32 = arith.constant 0 : i32
    %c0_i32_0 = arith.constant 0 : i32
    return %arg0, %c0_i32 : i32, i32
  }
}

module attributes {stable_mosaic.version = 11 : i64} {
  func.func @_window_max_kernel(%arg0: i32, %arg1: memref<16x25x256xf32, #tpu.memory_space<vmem>>, %arg2: memref<16x256xf32, #tpu.memory_space<vmem>>) attributes {dimension_semantics = [#tpu.dimension_semantics<arbitrary>], iteration_bounds = array<i64: 1>, scalar_prefetch = 0 : i64, scratch_operands = 0 : i64, tpu.core_type = #tpu.core_type<tc>, window_params = [{pipeline_mode = #tpu.pipeline_mode<synchronous>, transform_indices = @transform_0, window_bounds = array<i64: 16, 25, 256>}, {pipeline_mode = #tpu.pipeline_mode<synchronous>, transform_indices = @transform_1, window_bounds = array<i64: 16, 256>}]} {
    %c0 = arith.constant 0 : index
    %c0_0 = arith.constant 0 : index
    %c0_1 = arith.constant 0 : index
    %0 = vector.load %arg1[%c0, %c0_0, %c0_1] : memref<16x25x256xf32, #tpu.memory_space<vmem>>, vector<16x25x256xf32>
    %cst = arith.constant dense<0xFF800000> : vector<16x256xf32>
    %1 = vector.multi_reduction <maximumf>, %0, %cst [1] : vector<16x25x256xf32> to vector<16x256xf32>
    %c0_2 = arith.constant 0 : index
    %c0_3 = arith.constant 0 : index
    %2 = vector.load %arg2[%c0_2, %c0_3] : memref<16x256xf32, #tpu.memory_space<vmem>>, vector<16x256xf32>
    tpu.vector_store %arg2[%c0_2, %c0_3], %1 {strides = array<i32>} : memref<16x256xf32, #tpu.memory_space<vmem>>, vector<16x256xf32>,
    return
  }
  func.func @transform_0(%arg0: i32) -> (i32, i32, i32) {
    %c0_i32 = arith.constant 0 : i32
    %c0_i32_0 = arith.constant 0 : i32
    %c0_i32_1 = arith.constant 0 : i32
    %c0_i32_2 = arith.constant 0 : i32
    return %c0_i32, %c0_i32_0, %c0_i32_1 : i32, i32, i32
  }
  func.func @transform_1(%arg0: i32) -> (i32, i32) {
    %c0_i32 = arith.constant 0 : i32
    %c0_i32_0 = arith.constant 0 : i32
    %c0_i32_1 = arith.constant 0 : i32
    return %c0_i32, %c0_i32_0 : i32, i32
  }
}

module attributes {stable_mosaic.version = 11 : i64} {
  func.func @_matmul_bias_relu_kernel(%arg0: i32, %arg1: memref<72x288xbf16, #tpu.memory_space<vmem>>, %arg2: memref<288x64xbf16, #tpu.memory_space<vmem>>, %arg3: memref<1x64xf32, #tpu.memory_space<vmem>>, %arg4: memref<72x64xf32, #tpu.memory_space<vmem>>) attributes {dimension_semantics = [#tpu.dimension_semantics<parallel>], iteration_bounds = array<i64: 1>, scalar_prefetch = 0 : i64, scratch_operands = 0 : i64, tpu.core_type = #tpu.core_type<tc>, window_params = [{transform_indices = @transform_0, window_bounds = array<i64: 72, 288>}, {pipeline_mode = #tpu.pipeline_mode<synchronous>, transform_indices = @transform_1, window_bounds = array<i64: 288, 64>}, {pipeline_mode = #tpu.pipeline_mode<synchronous>, transform_indices = @transform_2, window_bounds = array<i64: 1, 64>}, {transform_indices = @transform_3, window_bounds = array<i64: 72, 64>}]} {
    %c0 = arith.constant 0 : index
    %c0_0 = arith.constant 0 : index
    %0 = vector.load %arg1[%c0, %c0_0] : memref<72x288xbf16, #tpu.memory_space<vmem>>, vector<72x288xbf16>
    %c0_1 = arith.constant 0 : index
    %c0_2 = arith.constant 0 : index
    %1 = vector.load %arg2[%c0_1, %c0_2] : memref<288x64xbf16, #tpu.memory_space<vmem>>, vector<288x64xbf16>
    %cst = arith.constant dense<0.000000e+00> : vector<72x64xf32>
    %2 = tpu.matmul %0, %1, %cst {dimension_numbers = #tpu.dot_dimension_numbers<[1], [0], [0], [1], [0, 0, 1, 1], [], []>} : vector<72x288xbf16>, vector<288x64xbf16>, vector<72x64xf32> -> vector<72x64xf32>
    %c0_3 = arith.constant 0 : index
    %c0_4 = arith.constant 0 : index
    %3 = vector.load %arg3[%c0_3, %c0_4] : memref<1x64xf32, #tpu.memory_space<vmem>>, vector<1x64xf32>
    %4 = vector.broadcast %3 : vector<1x64xf32> to vector<72x64xf32>
    %5 = arith.addf %2, %4 : vector<72x64xf32>
    %cst_5 = arith.constant 0.000000e+00 : f32
    %6 = vector.broadcast %cst_5 : f32 to vector<72x64xf32>
    %7 = arith.maximumf %5, %6 : vector<72x64xf32>
    %c0_6 = arith.constant 0 : index
    %c0_7 = arith.constant 0 : index
    %8 = vector.load %arg4[%c0_6, %c0_7] : memref<72x64xf32, #tpu.memory_space<vmem>>, vector<72x64xf32>
    tpu.vector_store %arg4[%c0_6, %c0_7], %7 {strides = array<i32>} : memref<72x64xf32, #tpu.memory_space<vmem>>, vector<72x64xf32>,
    return
  }
  func.func @transform_0(%arg0: i32) -> (i32, i32) {
    %c0_i32 = arith.constant 0 : i32
    %c0_i32_0 = arith.constant 0 : i32
    return %arg0, %c0_i32 : i32, i32
  }
  func.func @transform_1(%arg0: i32) -> (i32, i32) {
    %c0_i32 = arith.constant 0 : i32
    %c0_i32_0 = arith.constant 0 : i32
    %c0_i32_1 = arith.constant 0 : i32
    return %c0_i32, %c0_i32_0 : i32, i32
  }
  func.func @transform_2(%arg0: i32) -> (i32, i32) {
    %c0_i32 = arith.constant 0 : i32
    %c0_i32_0 = arith.constant 0 : i32
    %c0_i32_1 = arith.constant 0 : i32
    return %c0_i32, %c0_i32_0 : i32, i32
  }
  func.func @transform_3(%arg0: i32) -> (i32, i32) {
    %c0_i32 = arith.constant 0 : i32
    %c0_i32_0 = arith.constant 0 : i32
    return %arg0, %c0_i32 : i32, i32
  }
}

module attributes {stable_mosaic.version = 11 : i64} {
  func.func @_tail_kernel(%arg0: i32, %arg1: memref<2x9x256xf32, #tpu.memory_space<vmem>>, %arg2: memref<1x256xf32, #tpu.memory_space<vmem>>, %arg3: memref<1x256xf32, #tpu.memory_space<vmem>>, %arg4: memref<256x1024xbf16, #tpu.memory_space<vmem>>, %arg5: memref<1x1024xf32, #tpu.memory_space<vmem>>, %arg6: memref<1024x128xbf16, #tpu.memory_space<vmem>>, %arg7: memref<1x128xf32, #tpu.memory_space<vmem>>, %arg8: memref<128x2xbf16, #tpu.memory_space<vmem>>, %arg9: memref<1x2xf32, #tpu.memory_space<vmem>>, %arg10: memref<2x2xf32, #tpu.memory_space<vmem>>) attributes {dimension_semantics = [#tpu.dimension_semantics<arbitrary>], iteration_bounds = array<i64: 1>, scalar_prefetch = 0 : i64, scratch_operands = 0 : i64, tpu.core_type = #tpu.core_type<tc>, window_params = [{pipeline_mode = #tpu.pipeline_mode<synchronous>, transform_indices = @transform_0, window_bounds = array<i64: 2, 9, 256>}, {pipeline_mode = #tpu.pipeline_mode<synchronous>, transform_indices = @transform_1, window_bounds = array<i64: 1, 256>}, {pipeline_mode = #tpu.pipeline_mode<synchronous>, transform_indices = @transform_2, window_bounds = array<i64: 1, 256>}, {pipeline_mode = #tpu.pipeline_mode<synchronous>, transform_indices = @transform_3, window_bounds = array<i64: 256, 1024>}, {pipeline_mode = #tpu.pipeline_mode<synchronous>, transform_indices = @transform_4, window_bounds = array<i64: 1, 1024>}, {pipeline_mode = #tpu.pipeline_mode<synchronous>, transform_indices = @transform_5, window_bounds = array<i64: 1024, 128>}, {pipeline_mode = #tpu.pipeline_mode<synchronous>, transform_indices = @transform_6, window_bounds = array<i64: 1, 128>}, {pipeline_mode = #tpu.pipeline_mode<synchronous>, transform_indices = @transform_7, window_bounds = array<i64: 128, 2>}, {pipeline_mode = #tpu.pipeline_mode<synchronous>, transform_indices = @transform_8, window_bounds = array<i64: 1, 2>}, {pipeline_mode = #tpu.pipeline_mode<synchronous>, transform_indices = @transform_9, window_bounds = array<i64: 2, 2>}]} {
    %c0 = arith.constant 0 : index
    %c0_0 = arith.constant 0 : index
    %c0_1 = arith.constant 0 : index
    %0 = vector.load %arg1[%c0, %c0_0, %c0_1] : memref<2x9x256xf32, #tpu.memory_space<vmem>>, vector<2x9x256xf32>
    %cst = arith.constant dense<0xFF800000> : vector<2x256xf32>
    %1 = vector.multi_reduction <maximumf>, %0, %cst [1] : vector<2x9x256xf32> to vector<2x256xf32>
    %c0_2 = arith.constant 0 : index
    %c0_3 = arith.constant 0 : index
    %2 = vector.load %arg2[%c0_2, %c0_3] : memref<1x256xf32, #tpu.memory_space<vmem>>, vector<1x256xf32>
    %3 = vector.broadcast %2 : vector<1x256xf32> to vector<2x256xf32>
    %4 = arith.mulf %1, %3 : vector<2x256xf32>
    %c0_4 = arith.constant 0 : index
    %c0_5 = arith.constant 0 : index
    %5 = vector.load %arg3[%c0_4, %c0_5] : memref<1x256xf32, #tpu.memory_space<vmem>>, vector<1x256xf32>
    %6 = vector.broadcast %5 : vector<1x256xf32> to vector<2x256xf32>
    %7 = arith.addf %4, %6 : vector<2x256xf32>
    %cst_6 = arith.constant 0.000000e+00 : f32
    %8 = vector.broadcast %cst_6 : f32 to vector<2x256xf32>
    %9 = arith.maximumf %7, %8 : vector<2x256xf32>
    %10 = arith.truncf %9 : vector<2x256xf32> to vector<2x256xbf16>
    %c0_7 = arith.constant 0 : index
    %c0_8 = arith.constant 0 : index
    %11 = vector.load %arg4[%c0_7, %c0_8] : memref<256x1024xbf16, #tpu.memory_space<vmem>>, vector<256x1024xbf16>
    %cst_9 = arith.constant dense<0.000000e+00> : vector<2x1024xf32>
    %12 = tpu.matmul %10, %11, %cst_9 {dimension_numbers = #tpu.dot_dimension_numbers<[1], [0], [0], [1], [0, 0, 1, 1], [], []>} : vector<2x256xbf16>, vector<256x1024xbf16>, vector<2x1024xf32> -> vector<2x1024xf32>
    %c0_10 = arith.constant 0 : index
    %c0_11 = arith.constant 0 : index
    %13 = vector.load %arg5[%c0_10, %c0_11] : memref<1x1024xf32, #tpu.memory_space<vmem>>, vector<1x1024xf32>
    %14 = vector.broadcast %13 : vector<1x1024xf32> to vector<2x1024xf32>
    %15 = arith.addf %12, %14 : vector<2x1024xf32>
    %cst_12 = arith.constant 0.000000e+00 : f32
    %16 = vector.broadcast %cst_12 : f32 to vector<2x1024xf32>
    %17 = arith.maximumf %15, %16 : vector<2x1024xf32>
    %18 = arith.truncf %17 : vector<2x1024xf32> to vector<2x1024xbf16>
    %c0_13 = arith.constant 0 : index
    %c0_14 = arith.constant 0 : index
    %19 = vector.load %arg6[%c0_13, %c0_14] : memref<1024x128xbf16, #tpu.memory_space<vmem>>, vector<1024x128xbf16>
    %cst_15 = arith.constant dense<0.000000e+00> : vector<2x128xf32>
    %20 = tpu.matmul %18, %19, %cst_15 {dimension_numbers = #tpu.dot_dimension_numbers<[1], [0], [0], [1], [0, 0, 1, 1], [], []>} : vector<2x1024xbf16>, vector<1024x128xbf16>, vector<2x128xf32> -> vector<2x128xf32>
    %c0_16 = arith.constant 0 : index
    %c0_17 = arith.constant 0 : index
    %21 = vector.load %arg7[%c0_16, %c0_17] : memref<1x128xf32, #tpu.memory_space<vmem>>, vector<1x128xf32>
    %22 = vector.broadcast %21 : vector<1x128xf32> to vector<2x128xf32>
    %23 = arith.addf %20, %22 : vector<2x128xf32>
    %cst_18 = arith.constant 0.000000e+00 : f32
    %24 = vector.broadcast %cst_18 : f32 to vector<2x128xf32>
    %25 = arith.maximumf %23, %24 : vector<2x128xf32>
    %26 = arith.truncf %25 : vector<2x128xf32> to vector<2x128xbf16>
    %c0_19 = arith.constant 0 : index
    %c0_20 = arith.constant 0 : index
    %27 = vector.load %arg8[%c0_19, %c0_20] : memref<128x2xbf16, #tpu.memory_space<vmem>>, vector<128x2xbf16>
    %cst_21 = arith.constant dense<0.000000e+00> : vector<2x2xf32>
    %28 = tpu.matmul %26, %27, %cst_21 {dimension_numbers = #tpu.dot_dimension_numbers<[1], [0], [0], [1], [0, 0, 1, 1], [], []>} : vector<2x128xbf16>, vector<128x2xbf16>, vector<2x2xf32> -> vector<2x2xf32>
    %c0_22 = arith.constant 0 : index
    %c0_23 = arith.constant 0 : index
    %29 = vector.load %arg9[%c0_22, %c0_23] : memref<1x2xf32, #tpu.memory_space<vmem>>, vector<1x2xf32>
    %30 = vector.broadcast %29 : vector<1x2xf32> to vector<2x2xf32>
    %31 = arith.addf %28, %30 : vector<2x2xf32>
    %cst_24 = arith.constant 0.000000e+00 : f32
    %32 = vector.broadcast %cst_24 : f32 to vector<2x2xf32>
    %33 = arith.maximumf %31, %32 : vector<2x2xf32>
    %c0_25 = arith.constant 0 : index
    %c0_26 = arith.constant 0 : index
    %34 = vector.load %arg10[%c0_25, %c0_26] : memref<2x2xf32, #tpu.memory_space<vmem>>, vector<2x2xf32>
    tpu.vector_store %arg10[%c0_25, %c0_26], %33 {strides = array<i32>} : memref<2x2xf32, #tpu.memory_space<vmem>>, vector<2x2xf32>,
    return
  }
  func.func @transform_0(%arg0: i32) -> (i32, i32, i32) {
    %c0_i32 = arith.constant 0 : i32
    %c0_i32_0 = arith.constant 0 : i32
    %c0_i32_1 = arith.constant 0 : i32
    %c0_i32_2 = arith.constant 0 : i32
    return %c0_i32, %c0_i32_0, %c0_i32_1 : i32, i32, i32
  }
  func.func @transform_1(%arg0: i32) -> (i32, i32) {
    %c0_i32 = arith.constant 0 : i32
    %c0_i32_0 = arith.constant 0 : i32
    %c0_i32_1 = arith.constant 0 : i32
    return %c0_i32, %c0_i32_0 : i32, i32
  }
  func.func @transform_2(%arg0: i32) -> (i32, i32) {
    %c0_i32 = arith.constant 0 : i32
    %c0_i32_0 = arith.constant 0 : i32
    %c0_i32_1 = arith.constant 0 : i32
    return %c0_i32, %c0_i32_0 : i32, i32
  }
  func.func @transform_3(%arg0: i32) -> (i32, i32) {
    %c0_i32 = arith.constant 0 : i32
    %c0_i32_0 = arith.constant 0 : i32
    %c0_i32_1 = arith.constant 0 : i32
    return %c0_i32, %c0_i32_0 : i32, i32
  }
  func.func @transform_4(%arg0: i32) -> (i32, i32) {
    %c0_i32 = arith.constant 0 : i32
    %c0_i32_0 = arith.constant 0 : i32
    %c0_i32_1 = arith.constant 0 : i32
    return %c0_i32, %c0_i32_0 : i32, i32
  }
  func.func @transform_5(%arg0: i32) -> (i32, i32) {
    %c0_i32 = arith.constant 0 : i32
    %c0_i32_0 = arith.constant 0 : i32
    %c0_i32_1 = arith.constant 0 : i32
    return %c0_i32, %c0_i32_0 : i32, i32
  }
  func.func @transform_6(%arg0: i32) -> (i32, i32) {
    %c0_i32 = arith.constant 0 : i32
    %c0_i32_0 = arith.constant 0 : i32
    %c0_i32_1 = arith.constant 0 : i32
    return %c0_i32, %c0_i32_0 : i32, i32
  }
  func.func @transform_7(%arg0: i32) -> (i32, i32) {
    %c0_i32 = arith.constant 0 : i32
    %c0_i32_0 = arith.constant 0 : i32
    %c0_i32_1 = arith.constant 0 : i32
    return %c0_i32, %c0_i32_0 : i32, i32
  }
  func.func @transform_8(%arg0: i32) -> (i32, i32) {
    %c0_i32 = arith.constant 0 : i32
    %c0_i32_0 = arith.constant 0 : i32
    %c0_i32_1 = arith.constant 0 : i32
    return %c0_i32, %c0_i32_0 : i32, i32
  }
  func.func @transform_9(%arg0: i32) -> (i32, i32) {
    %c0_i32 = arith.constant 0 : i32
    %c0_i32_0 = arith.constant 0 : i32
    %c0_i32_1 = arith.constant 0 : i32
    return %c0_i32, %c0_i32_0 : i32, i32
  }
}

</mosaic_0001>

<bundles_post_ra>
// kernel: which_podcaster_cnn_forward.4
= control target key start
LH: loop header
LB: loop body
LE: loop exit
PB: predicated region body
PF: predicated region fallthrough
CT: control target
= control target key end

     0   :  { %8 = vsyncpa [#allocation3], 0  ;;  %s2490_s0 = inlined_call_operand.hbm [shape: bf16[3200,100], index: 0, kind: input, shape index: {}]   ;;  %s2491_s1 = inlined_call_operand.vmem [shape: bf16[100,32], index: 1, kind: input, shape index: {}]   ;;  %s2492_s2 = inlined_call_operand.vmem [shape: f32[1,32], index: 2, kind: input, shape index: {}]   ;;  %s2493_s3 = inlined_call_operand.vmem [shape: f32[3200,32], index: 3, kind: output, shape index: {}]  }
   0x1   :  { %10 = vsyncpa [#allocation3 + $0x1], 0  ;;  %s1953_s12 = smov 0   ;;  %s1955_s13 = smov 0  }
   0x2   :  { %s1957_s14 = smov 0   ;;  %s1959_s15 = smov 0  }
   0x3 LB: > { %s1459_s16 = sadd.s32 4294967295, %s1928_s15   ;;  %s1973_s17 = sadd.s32 1, %s1928_s15   ;;  %s1928_s15 = sphi %s1959_s15, %s2500_s15   ;;  %s1924_s14 = sphi %s1957_s14, %s2499_s14   ;;  %s1920_s13 = sphi %s1955_s13, %s2498_s13   ;;  %s1916_s12 = sphi %s1953_s12, %s2497_s12  }
   0x4   : > { %s20_s18 = ssub.s32 %s1928_s15, %s1973_s17  ;;  %s23_s19 = sadd.s32 1, %s1924_s14 }
   0x5   : > { %p21_p0 = scmp.eq.s32.totalorder %s20_s18, 0  ;;  %p30_p1 = scmp.ne.s32.totalorder %s1924_s14, %s1920_s13 }
   0x6   : > { %p31_p2 = scmp.eq.s32.totalorder %s1928_s15, 0  ;;  %p36_p3 = scmp.ne.s32.totalorder %s1920_s13, %s1916_s12 }
   0x7   : > { %s1983_s20 = scalar_select %p21_p0, %s1924_s14, %s23_s19  }
   0x8   : > { %p32_p4 = por %p31_p2, %p30_p1  ;;  %p37_p5 = scmp.eq.s32.totalorder %s1459_s16, 0 }
   0x9   : > { %p1772_p6 = scmp.lt.s32.totalorder %s1928_s15, 4  ;;  %s134_s22 = sand.u32 1, %s1924_s14  }
   0xa   : > { %p1988_p7 = por %p37_p5, %p36_p3  ;;  %s1764_s23 = smul.u32 400, %s134_s22 }
   0xb   : > { %s1576_s24 = smul.u32 6400, %s1928_s15  ;;  %p1994_p8 = pnand %p1772_p6, %p32_p4 }
   0xc   : > { %s138_s29 = scalar_lea.vmem [#allocation2], %s1764_s23  ;;  %s2006_s4 = scalar_lea.sflag [#allocation3], %s134_s22 }
   0xd   : > { %s2001_s28 = scalar_lea.hbm %s2490_s0, %s1576_s24  ;;  %s145_s30 = sshll.u32 %s138_s29, 4  ;;  %s2003_s30 = int_to_ptr.vmem [resolvable:$true] %s145_s30 }
   0xe   : > { %s1864_s5 = scalar_lea.hbm %s2001_s28, 6400  ;;  %p1866_p11 = pneg %p1994_p8 }
   0xf   : > { %p1865_p10 = scmp.ne.s32.totalorder %s2001_s28, %s1864_s5  ;;  %s1869_s8 = scalar_lea.hbm %s2490_s0, 25600 }
  0x10   : > { %p1870_p0 = scmp.lt.u32.totalorder %s2001_s28, %s2490_s0  ;;  %p1871_p1 = scmp.lt.u32.totalorder %s1869_s8, %s1864_s5 }
  0x11   : > { %p1867_p12 = pnand %p1866_p11, %p1865_p10  ;;  %p1873_p3 = scmp.lt.u32.totalorder %s1864_s5, %s2001_s28 }
  0x12   : > { %p1872_p2 = por %p1871_p1, %p1870_p0 }
  0x13   : > { %p1868_p13 = pneg %p1867_p12 }
  0x14   : > { %p1874_p4 = por %p1873_p3, %p1872_p2 }
  0x16   : > { %p1875_p5 = pnand %p1874_p4, %p1868_p13 }
  0x18   : > { %1878 = shalt.err (!%p1875_p5)
}
  0x19   : > { %s1879_s11 = scalar_lea.vmem %s2003_s30, 6400  ;;  %s1930_s12 = smov [#allocation2]  }
  0x1a   : > { %p1880_p6 = scmp.ne.s32.totalorder %s2003_s30, %s1879_s11  ;;  %s1884_s18 = sshll.u32 %s1930_s12, 4  ;;  %s1885_s18 = int_to_ptr.vmem [resolvable:$false] %s1884_s18 }
  0x1b   : > { %s1886_s19 = scalar_lea.vmem %s1885_s18, 12800  ;;  %p1887_p9 = scmp.lt.s32.totalorder %s2003_s30, %s1885_s18 }
  0x1c   : > { %p1882_p10 = pnand %p1880_p6, %p1866_p11  ;;  %p1888_p0 = scmp.lt.s32.totalorder %s1886_s19, %s1879_s11 }
  0x1e   : > { %p1883_p12 = pneg %p1882_p10  ;;  %p1889_p1 = por %p1888_p0, %p1887_p9 }
  0x20   : > { %p1890_p2 = pnand %p1889_p1, %p1883_p12 }
  0x22   : > { %1893 = shalt.err (!%p1890_p2)
}
  0x23   : > { %s1931_s22 = smov 64   ;;  %s1932_s23 = smov 4  }
  0x24   : > { %1771 = dma.hbm_to_vmem [thread:$0]  (!%p1994_p8), %s2001_s28, 6400, %s2003_s30, %s2006_s4, %s1931_s22, %s1931_s22, %s1932_s23  }
  0x25   : > { %p153_p11 = scmp.lt.s32.totalorder %s1928_s15, 5  ;;  %p2496_p13 = scmp.ge.s32.totalorder %s1928_s15, 1 }
  0x27   : > { %p154_p3 = pnand %p2496_p13, %p153_p11 }
  0x28   : > { %s159_s24 = sand.u32 (!%p154_p3), 1, %s1920_s13  }
  0x29   : > { %157 = sbr.rel (%p154_p3) target bundleno = 394 (0x18a), region = 32  ;;  %s160_s27 = scalar_lea.sflag (!%p154_p3), [#allocation3], %s159_s24 }
  0x2a   : > { %s1765_s26 = smul.u32 (!%p154_p3), 400, %s159_s24 }
  0x2c   : > { %s2038_s29 = scalar_lea.vmem (!%p154_p3), [#allocation2], %s1765_s26 }
  0x30   : > { %1911 = dma.done.wait (%p1988_p7), %s160_s27, 6400  }
  0x31   : > { %1913 = vsyncadd (%p1988_p7), %s160_s27, 4294960896  ;;  %v1807_v0 = vld [vmem:[%s2491_s1] sm:$0xff]   ;;  %v1808_v1 = vld [vmem:[%s2491_s1 + $0x8] sm:$0xff]   ;;  %vm603_vm0 = vcmask 818176   ;;  %vm754_vm1 = vcmask 1041408   ;;  %s187_s19 = smul.u32 100, %s1459_s16 }
  0x32   : > { %1634 = vmatprep.subr.bf16.mxu0 %v1807_v0  ;;  %1748 = vmatprep.subr.bf16.mxu1 %v1807_v0  ;;  %v1809_v2 = vld [vmem:[%s2491_s1 + $0x10] sm:$0xff]   ;;  %v1814_v3 = vld [vmem:[%s2038_s29] sm:$0xff]   ;;  %v1816_v5 = vld [vmem:[%s2038_s29 + $0xd0] sm:$0xff]   ;;  %vm1291_vm2 = vcmask 261120  }
  0x33   : > { %1635 = vmatpush3.bf16.msra.mxu0 %v1807_v0  ;;  %1755 = vmatpush3.bf16.msra.mxu1 %v1807_v0  ;;  %v1810_v4 = vld [vmem:[%s2491_s1 + $0x18] sm:$0xff]   ;;  %v1811_v6 = vld [vmem:[%s2491_s1 + $0x20] sm:$0xff]   ;;  %v1812_v7 = vld [vmem:[%s2491_s1 + $0x28] sm:$0xff]   ;;  %p188_p7 = scmp.lt.s32.totalorder %s187_s19, 399 }
  0x34   : > { %1636 = vmatprep.subr.bf16.mxu0 %v1808_v1  ;;  %1749 = vmatprep.subr.bf16.mxu1 %v1808_v1  ;;  %v1813_v8 = vld [vmem:[%s2491_s1 + $0x30] ss:$0 sps:$4 sm:$0x33]   ;;  %v1818_v12 = vld [vmem:[%s2038_s29 + $0x10] sm:$0xff]   ;;  %v1820_v13 = vld [vmem:[%s2038_s29 + $0xe0] sm:$0xff]  }
  0x35   : > { %1648 = vmatprep.mubr.msk.bf16.mxu0 %vm603_vm0, %v1814_v3  ;;  %1700 = vmatprep.mubr.msk.bf16.mxu1 %vm603_vm0, %v1816_v5  ;;  %v756_v9 = vsel %vm754_vm1, %v1813_v8, 0  ;;  %v1815_v10 = vld [vmem:[%s2038_s29 + $0x8] sm:$0xff]   ;;  %v1817_v11 = vld [vmem:[%s2038_s29 + $0xd8] sm:$0xff]   ;;  %v1822_v16 = vld [vmem:[%s2038_s29 + $0x20] sm:$0xff]   ;;  %s2502_s19 = smov (!%p188_p7, %s187_s19), 399 }
  0x36   : > { %v1819_v14 = vld [vmem:[%s2038_s29 + $0x18] sm:$0xff]   ;;  %v1821_v15 = vld [vmem:[%s2038_s29 + $0xe8] sm:$0xff]   ;;  %v1824_v17 = vld [vmem:[%s2038_s29 + $0xf0] sm:$0xff]   ;;  %s1465_s24 = sshll.u32 %s2502_s19, 3 }
  0x37   : > { %1637 = vmatpush3.bf16.msra.mxu0 %v1808_v1  ;;  %1756 = vmatpush3.bf16.msra.mxu1 %v1808_v1  ;;  %v1823_v18 = vld [vmem:[%s2038_s29 + $0x28] sm:$0xff]   ;;  %v1825_v19 = vld [vmem:[%s2038_s29 + $0xf8] sm:$0xff]   ;;  %v1826_v20 = vld [vmem:[%s2038_s29 + $0x30] sm:$0xff]   ;;  %s2177_s15 = scalar_lea.vmem %s2493_s3, %s1465_s24 }
  0x38   : > { %1638 = vmatprep.subr.bf16.mxu0 %v1809_v2  ;;  %1750 = vmatprep.subr.bf16.mxu1 %v1809_v2  ;;  %v1828_v21 = vld [vmem:[%s2038_s29 + $0x100] sm:$0xff]   ;;  %v1827_v22 = vld [vmem:[%s2038_s29 + $0x38] sm:$0xff]   ;;  %v1829_v23 = vld [vmem:[%s2038_s29 + $0x108] sm:$0xff]  }
  0x39   : > { %v1830_v24 = vld [vmem:[%s2038_s29 + $0x40] sm:$0xff]   ;;  %v1832_v25 = vld [vmem:[%s2038_s29 + $0x110] sm:$0xff]   ;;  %v1831_v26 = vld [vmem:[%s2038_s29 + $0x48] sm:$0xff]  }
  0x3a   : > { %v1833_v27 = vld [vmem:[%s2038_s29 + $0x118] sm:$0xff]   ;;  %v1834_v28 = vld [vmem:[%s2038_s29 + $0x50] sm:$0xff]   ;;  %v1836_v29 = vld [vmem:[%s2038_s29 + $0x120] sm:$0xff]  }
  0x3b   : > { %1639 = vmatpush3.bf16.msra.mxu0 %v1809_v2  ;;  %1757 = vmatpush3.bf16.msra.mxu1 %v1809_v2  ;;  %v1835_v30 = vld [vmem:[%s2038_s29 + $0x58] sm:$0xff]   ;;  %v1837_v31 = vld [vmem:[%s2038_s29 + $0x128] sm:$0xff]   ;;  %v1838_v32 = vld [vmem:[%s2038_s29 + $0x60] sm:$0xff]  }
  0x3c   : > { %1640 = vmatprep.subr.bf16.mxu0 %v1810_v4  ;;  %1751 = vmatprep.subr.bf16.mxu1 %v1810_v4  ;;  %v1840_v33 = vld [vmem:[%s2038_s29 + $0x130] sm:$0xff]   ;;  %v1839_v34 = vld [vmem:[%s2038_s29 + $0x68] sm:$0xff]   ;;  %v1841_v35 = vld [vmem:[%s2038_s29 + $0x138] sm:$0xff]  }
  0x3d   : > { %v1842_v36 = vld [vmem:[%s2038_s29 + $0x70] sm:$0xff]   ;;  %v1844_v37 = vld [vmem:[%s2038_s29 + $0x140] sm:$0xff]   ;;  %v1843_v38 = vld [vmem:[%s2038_s29 + $0x78] sm:$0xff]  }
  0x3e   : > { %v1845_v39 = vld [vmem:[%s2038_s29 + $0x148] sm:$0xff]   ;;  %v1846_v40 = vld [vmem:[%s2038_s29 + $0x80] sm:$0xff]   ;;  %v1848_v41 = vld [vmem:[%s2038_s29 + $0x150] sm:$0xff]  }
  0x3f   : > { %1641 = vmatpush3.bf16.msra.mxu0 %v1810_v4  ;;  %1758 = vmatpush3.bf16.msra.mxu1 %v1810_v4  ;;  %v1847_v42 = vld [vmem:[%s2038_s29 + $0x88] sm:$0xff]   ;;  %v1849_v43 = vld [vmem:[%s2038_s29 + $0x158] sm:$0xff]   ;;  %v1850_v44 = vld [vmem:[%s2038_s29 + $0x90] sm:$0xff]  }
  0x40   : > { %1642 = vmatprep.subr.bf16.mxu0 %v1811_v6  ;;  %1752 = vmatprep.subr.bf16.mxu1 %v1811_v6  ;;  %v1852_v45 = vld [vmem:[%s2038_s29 + $0x160] sm:$0xff]   ;;  %v1851_v46 = vld [vmem:[%s2038_s29 + $0x98] sm:$0xff]   ;;  %v1853_v47 = vld [vmem:[%s2038_s29 + $0x168] sm:$0xff]  }
  0x41   : > { %v1854_v48 = vld [vmem:[%s2038_s29 + $0xa0] sm:$0xff]   ;;  %v1856_v49 = vld [vmem:[%s2038_s29 + $0x170] sm:$0xff]   ;;  %v1855_v50 = vld [vmem:[%s2038_s29 + $0xa8] sm:$0xff]  }
  0x42   : > { %v1857_v51 = vld [vmem:[%s2038_s29 + $0x178] sm:$0xff]   ;;  %v1858_v52 = vld [vmem:[%s2038_s29 + $0xb0] sm:$0xff]   ;;  %v1860_v53 = vld [vmem:[%s2038_s29 + $0x180] sm:$0xff]  }
  0x43   : > { %1643 = vmatpush3.bf16.msra.mxu0 %v1811_v6  ;;  %1759 = vmatpush3.bf16.msra.mxu1 %v1811_v6  ;;  %v1859_v54 = vld [vmem:[%s2038_s29 + $0xb8] sm:$0xff]   ;;  %v1861_v55 = vld [vmem:[%s2038_s29 + $0x188] sm:$0xff]   ;;  %v1862_v56 = vld [vmem:[%s2038_s29 + $0xc0] sm:$0xff]  }
  0x44   : > { %1644 = vmatprep.subr.bf16.mxu0 %v1812_v7  ;;  %1753 = vmatprep.subr.bf16.mxu1 %v1812_v7  ;;  %v1863_v57 = vld [vmem:[%s2038_s29 + $0xc8] sm:$0xff]  }
  0x45   : > { %v2170_v58 = vld [vmem:[%s2492_s2] ss:$0 sm:$0xff] }
  0x47   : > { %1645 = vmatpush3.bf16.msra.mxu0 %v1812_v7  ;;  %1760 = vmatpush3.bf16.msra.mxu1 %v1812_v7 }
  0x48   : > { %1762 = vmatprep.subr.msk.bf16.mxu0 %vm754_vm1, %v1813_v8  ;;  %1763 = vmatprep.subr.msk.bf16.mxu1 %vm754_vm1, %v1813_v8 }
  0x4b   : > { %1647 = vmatpush3.bf16.msra.mxu0 %v756_v9  ;;  %1761 = vmatpush3.bf16.msra.mxu1 %v756_v9 }
  0x4e   : > { %1649 = vmatmul.mubr.msk.bf16.vlgmr.msra.gmra.mrb[0].mxu0 %vm603_vm0, %v1815_v10  ;;  %1701 = vmatmul.mubr.msk.bf16.vlgmr.msra.gmra.mrb[0].mxu1 %vm603_vm0, %v1817_v11 }
  0x4f   : > { %1652 = vmatprep.mubr.msk.bf16.mxu0 %vm603_vm0, %v1818_v12  ;;  %1704 = vmatprep.mubr.msk.bf16.mxu1 %vm603_vm0, %v1820_v13 }
  0x56   : > { %1653 = vmatmul.mubr.msk.bf16.gmra.mrb[4].mxu0 %vm603_vm0, %v1819_v14  ;;  %1705 = vmatmul.mubr.msk.bf16.gmra.mrb[4].mxu1 %vm603_vm0, %v1821_v15 }
  0x57   : > { %1656 = vmatprep.mubr.msk.bf16.mxu0 %vm603_vm0, %v1822_v16  ;;  %1708 = vmatprep.mubr.msk.bf16.mxu1 %vm603_vm0, %v1824_v17 }
  0x5e   : > { %1657 = vmatmul.mubr.msk.bf16.gmra.mrb[8].mxu0 %vm603_vm0, %v1823_v18  ;;  %1709 = vmatmul.mubr.msk.bf16.gmra.mrb[8].mxu1 %vm603_vm0, %v1825_v19 }
  0x5f   : > { %1660 = vmatprep.mubr.msk.bf16.mxu0 %vm603_vm0, %v1826_v20  ;;  %1712 = vmatprep.mubr.msk.bf16.mxu1 %vm603_vm0, %v1828_v21 }
  0x66   : > { %1661 = vmatmul.mubr.msk.bf16.gmra.mrb[12].mxu0 %vm603_vm0, %v1827_v22  ;;  %1713 = vmatmul.mubr.msk.bf16.gmra.mrb[12].mxu1 %vm603_vm0, %v1829_v23 }
  0x67   : > { %1664 = vmatprep.mubr.msk.bf16.mxu0 %vm603_vm0, %v1830_v24  ;;  %1716 = vmatprep.mubr.msk.bf16.mxu1 %vm603_vm0, %v1832_v25 }
  0x6e   : > { %1665 = vmatmul.mubr.msk.bf16.gmra.mrb[16].mxu0 %vm603_vm0, %v1831_v26  ;;  %1717 = vmatmul.mubr.msk.bf16.gmra.mrb[16].mxu1 %vm603_vm0, %v1833_v27 }
  0x6f   : > { %1668 = vmatprep.mubr.msk.bf16.mxu0 %vm603_vm0, %v1834_v28  ;;  %1720 = vmatprep.mubr.msk.bf16.mxu1 %vm603_vm0, %v1836_v29 }
  0x76   : > { %1669 = vmatmul.mubr.msk.bf16.gmra.mrb[20].mxu0 %vm603_vm0, %v1835_v30  ;;  %1721 = vmatmul.mubr.msk.bf16.gmra.mrb[20].mxu1 %vm603_vm0, %v1837_v31 }
  0x77   : > { %1672 = vmatprep.mubr.msk.bf16.mxu0 %vm603_vm0, %v1838_v32  ;;  %1724 = vmatprep.mubr.msk.bf16.mxu1 %vm603_vm0, %v1840_v33 }
  0x7e   : > { %1673 = vmatmul.mubr.msk.bf16.gmra.mrb[24].mxu0 %vm603_vm0, %v1839_v34  ;;  %1725 = vmatmul.mubr.msk.bf16.gmra.mrb[24].mxu1 %vm603_vm0, %v1841_v35 }
  0x7f   : > { %1676 = vmatprep.mubr.msk.bf16.mxu0 %vm603_vm0, %v1842_v36  ;;  %1728 = vmatprep.mubr.msk.bf16.mxu1 %vm603_vm0, %v1844_v37 }
  0x86   : > { %1677 = vmatmul.mubr.msk.bf16.gmra.mrb[28].mxu0 %vm603_vm0, %v1843_v38  ;;  %1729 = vmatmul.mubr.msk.bf16.gmra.mrb[28].mxu1 %vm603_vm0, %v1845_v39 }
  0x87   : > { %1680 = vmatprep.mubr.msk.bf16.mxu0 %vm603_vm0, %v1846_v40  ;;  %1732 = vmatprep.mubr.msk.bf16.mxu1 %vm603_vm0, %v1848_v41 }
  0x8e   : > { %1681 = vmatmul.mubr.msk.bf16.gmra.mrb[32].mxu0 %vm603_vm0, %v1847_v42  ;;  %1733 = vmatmul.mubr.msk.bf16.gmra.mrb[32].mxu1 %vm603_vm0, %v1849_v43 }
  0x8f   : > { %1684 = vmatprep.mubr.msk.bf16.mxu0 %vm603_vm0, %v1850_v44  ;;  %1736 = vmatprep.mubr.msk.bf16.mxu1 %vm603_vm0, %v1852_v45 }
  0x96   : > { %1685 = vmatmul.mubr.msk.bf16.gmra.mrb[36].mxu0 %vm603_vm0, %v1851_v46  ;;  %1737 = vmatmul.mubr.msk.bf16.gmra.mrb[36].mxu1 %vm603_vm0, %v1853_v47 }
  0x97   : > { %1688 = vmatprep.mubr.msk.bf16.mxu0 %vm603_vm0, %v1854_v48  ;;  %1740 = vmatprep.mubr.msk.bf16.mxu1 %vm603_vm0, %v1856_v49 }
  0x9e   : > { %1689 = vmatmul.mubr.msk.bf16.gmra.mrb[40].mxu0 %vm603_vm0, %v1855_v50  ;;  %1741 = vmatmul.mubr.msk.bf16.gmra.mrb[40].mxu1 %vm603_vm0, %v1857_v51 }
  0x9f   : > { %1692 = vmatprep.mubr.msk.bf16.mxu0 %vm603_vm0, %v1858_v52  ;;  %1744 = vmatprep.mubr.msk.bf16.mxu1 %vm603_vm0, %v1860_v53 }
  0xa6   : > { %1693 = vmatmul.mubr.msk.bf16.gmra.mrb[44].mxu0 %vm603_vm0, %v1859_v54  ;;  %1745 = vmatmul.mubr.msk.bf16.gmra.mrb[44].mxu1 %vm603_vm0, %v1861_v55 }
  0xa7   : > { %1696 = vmatprep.mubr.msk.bf16.mxu0 %vm603_vm0, %v1862_v56 }
  0xae   : > { %1697 = vmatmul.mubr.msk.bf16.gmra.mrb[48].mxu0 %vm603_vm0, %v1863_v57 }
 0x121   : > { %v1650_v59 = vpop.f32.mrb[0].mxu0  ;;  %v1702_v60 = vpop.f32.mrb[0].mxu1 }
 0x122   : > { %v801_v61 = vadd.f32 %v1650_v59, %v2170_v58  ;;  %v792_v62 = vpop.f32.mrb[1].mxu0  ;;  %v1009_v63 = vadd.f32 %v1702_v60, %v2170_v58  ;;  %v1000_v0 = vpop.f32.mrb[1].mxu1 }
 0x123   : > { %v793_v1 = vadd.f32 %v2170_v58, %v792_v62  ;;  %v1651_v2 = vpop.f32.mrb[2].mxu0  ;;  %v1001_v3 = vadd.f32 %v2170_v58, %v1000_v0  ;;  %v1703_v4 = vpop.f32.mrb[2].mxu1 }
 0x124   : > { %v1193_v5 = vmax.f32 %v801_v61, 0.0  ;;  %v804_v6 = vadd.f32 %v1651_v2, %v2170_v58  ;;  %v795_v7 = vpop.f32.mrb[3].mxu0  ;;  %v1245_v8 = vmax.f32 %v1009_v63, 0.0  ;;  %v1012_v9 = vadd.f32 %v1703_v4, %v2170_v58  ;;  %v1003_v10 = vpop.f32.mrb[3].mxu1 }
 0x125   : > { %v1191_v11 = vmax.f32 %v793_v1, 0.0  ;;  %v796_v12 = vadd.f32 %v2170_v58, %v795_v7  ;;  %v1243_v13 = vmax.f32 %v1001_v3, 0.0  ;;  %v1004_v14 = vadd.f32 %v2170_v58, %v1003_v10 }
 0x126   : > { %1294 = vst.msk [vmem:[%s2177_s15 + $0x10] sm:$0xff] %vm1291_vm2, %v1193_v5  ;;  %v1194_v15 = vmax.f32 %v804_v6, 0.0  ;;  %1346 = vst.msk [vmem:[%s2177_s15 + $0x1b0] sm:$0xff] %vm1291_vm2, %v1245_v8  ;;  %v1246_v16 = vmax.f32 %v1012_v9, 0.0 }
 0x127   : > { %1292 = vst.msk [vmem:[%s2177_s15] sm:$0xff] %vm1291_vm2, %v1191_v11  ;;  %v1192_v17 = vmax.f32 %v796_v12, 0.0  ;;  %1344 = vst.msk [vmem:[%s2177_s15 + $0x1a0] sm:$0xff] %vm1291_vm2, %v1243_v13  ;;  %v1244_v18 = vmax.f32 %v1004_v14, 0.0 }
 0x128   : > { %1295 = vst.msk [vmem:[%s2177_s15 + $0x18] sm:$0xff] %vm1291_vm2, %v1194_v15  ;;  %1347 = vst.msk [vmem:[%s2177_s15 + $0x1b8] sm:$0xff] %vm1291_vm2, %v1246_v16 }
 0x129   : > { %1293 = vst.msk [vmem:[%s2177_s15 + $0x8] sm:$0xff] %vm1291_vm2, %v1192_v17  ;;  %v1654_v19 = vpop.f32.mrb[4].mxu0  ;;  %1345 = vst.msk [vmem:[%s2177_s15 + $0x1a8] sm:$0xff] %vm1291_vm2, %v1244_v18  ;;  %v1706_v20 = vpop.f32.mrb[4].mxu1 }
 0x12a   : > { %v817_v21 = vadd.f32 %v1654_v19, %v2170_v58  ;;  %v808_v22 = vpop.f32.mrb[5].mxu0  ;;  %v1025_v23 = vadd.f32 %v1706_v20, %v2170_v58  ;;  %v1016_v24 = vpop.f32.mrb[5].mxu1 }
 0x12b   : > { %v809_v25 = vadd.f32 %v2170_v58, %v808_v22  ;;  %v1655_v26 = vpop.f32.mrb[6].mxu0  ;;  %v1017_v27 = vadd.f32 %v2170_v58, %v1016_v24  ;;  %v1707_v28 = vpop.f32.mrb[6].mxu1 }
 0x12c   : > { %v1197_v29 = vmax.f32 %v817_v21, 0.0  ;;  %v820_v30 = vadd.f32 %v1655_v26, %v2170_v58  ;;  %v811_v31 = vpop.f32.mrb[7].mxu0  ;;  %v1249_v32 = vmax.f32 %v1025_v23, 0.0  ;;  %v1028_v33 = vadd.f32 %v1707_v28, %v2170_v58  ;;  %v1019_v34 = vpop.f32.mrb[7].mxu1 }
 0x12d   : > { %v1195_v35 = vmax.f32 %v809_v25, 0.0  ;;  %v812_v36 = vadd.f32 %v2170_v58, %v811_v31  ;;  %v1247_v37 = vmax.f32 %v1017_v27, 0.0  ;;  %v1020_v38 = vadd.f32 %v2170_v58, %v1019_v34 }
 0x12e   : > { %1298 = vst.msk [vmem:[%s2177_s15 + $0x30] sm:$0xff] %vm1291_vm2, %v1197_v29  ;;  %v1198_v39 = vmax.f32 %v820_v30, 0.0  ;;  %1350 = vst.msk [vmem:[%s2177_s15 + $0x1d0] sm:$0xff] %vm1291_vm2, %v1249_v32  ;;  %v1250_v40 = vmax.f32 %v1028_v33, 0.0 }
 0x12f   : > { %1296 = vst.msk [vmem:[%s2177_s15 + $0x20] sm:$0xff] %vm1291_vm2, %v1195_v35  ;;  %v1196_v41 = vmax.f32 %v812_v36, 0.0  ;;  %1348 = vst.msk [vmem:[%s2177_s15 + $0x1c0] sm:$0xff] %vm1291_vm2, %v1247_v37  ;;  %v1248_v42 = vmax.f32 %v1020_v38, 0.0 }
 0x130   : > { %1299 = vst.msk [vmem:[%s2177_s15 + $0x38] sm:$0xff] %vm1291_vm2, %v1198_v39  ;;  %1351 = vst.msk [vmem:[%s2177_s15 + $0x1d8] sm:$0xff] %vm1291_vm2, %v1250_v40 }
 0x131   : > { %1297 = vst.msk [vmem:[%s2177_s15 + $0x28] sm:$0xff] %vm1291_vm2, %v1196_v41  ;;  %v1658_v43 = vpop.f32.mrb[8].mxu0  ;;  %1349 = vst.msk [vmem:[%s2177_s15 + $0x1c8] sm:$0xff] %vm1291_vm2, %v1248_v42  ;;  %v1710_v44 = vpop.f32.mrb[8].mxu1 }
 0x132   : > { %v833_v45 = vadd.f32 %v1658_v43, %v2170_v58  ;;  %v824_v46 = vpop.f32.mrb[9].mxu0  ;;  %v1041_v47 = vadd.f32 %v1710_v44, %v2170_v58  ;;  %v1032_v48 = vpop.f32.mrb[9].mxu1 }
 0x133   : > { %v825_v49 = vadd.f32 %v2170_v58, %v824_v46  ;;  %v1659_v50 = vpop.f32.mrb[10].mxu0  ;;  %v1033_v51 = vadd.f32 %v2170_v58, %v1032_v48  ;;  %v1711_v52 = vpop.f32.mrb[10].mxu1 }
 0x134   : > { %v1201_v53 = vmax.f32 %v833_v45, 0.0  ;;  %v836_v54 = vadd.f32 %v1659_v50, %v2170_v58  ;;  %v827_v55 = vpop.f32.mrb[11].mxu0  ;;  %v1253_v56 = vmax.f32 %v1041_v47, 0.0  ;;  %v1044_v57 = vadd.f32 %v1711_v52, %v2170_v58  ;;  %v1035_v59 = vpop.f32.mrb[11].mxu1 }
 0x135   : > { %v1199_v60 = vmax.f32 %v825_v49, 0.0  ;;  %v828_v61 = vadd.f32 %v2170_v58, %v827_v55  ;;  %v1251_v62 = vmax.f32 %v1033_v51, 0.0  ;;  %v1036_v63 = vadd.f32 %v2170_v58, %v1035_v59 }
 0x136   : > { %1302 = vst.msk [vmem:[%s2177_s15 + $0x50] sm:$0xff] %vm1291_vm2, %v1201_v53  ;;  %v1202_v0 = vmax.f32 %v836_v54, 0.0  ;;  %1354 = vst.msk [vmem:[%s2177_s15 + $0x1f0] sm:$0xff] %vm1291_vm2, %v1253_v56  ;;  %v1254_v1 = vmax.f32 %v1044_v57, 0.0 }
 0x137   : > { %1300 = vst.msk [vmem:[%s2177_s15 + $0x40] sm:$0xff] %vm1291_vm2, %v1199_v60  ;;  %v1200_v2 = vmax.f32 %v828_v61, 0.0  ;;  %1352 = vst.msk [vmem:[%s2177_s15 + $0x1e0] sm:$0xff] %vm1291_vm2, %v1251_v62  ;;  %v1252_v3 = vmax.f32 %v1036_v63, 0.0 }
 0x138   : > { %1303 = vst.msk [vmem:[%s2177_s15 + $0x58] sm:$0xff] %vm1291_vm2, %v1202_v0  ;;  %1355 = vst.msk [vmem:[%s2177_s15 + $0x1f8] sm:$0xff] %vm1291_vm2, %v1254_v1 }
 0x139   : > { %1301 = vst.msk [vmem:[%s2177_s15 + $0x48] sm:$0xff] %vm1291_vm2, %v1200_v2  ;;  %v1662_v4 = vpop.f32.mrb[12].mxu0  ;;  %1353 = vst.msk [vmem:[%s2177_s15 + $0x1e8] sm:$0xff] %vm1291_vm2, %v1252_v3  ;;  %v1714_v5 = vpop.f32.mrb[12].mxu1 }
 0x13a   : > { %v849_v6 = vadd.f32 %v1662_v4, %v2170_v58  ;;  %v840_v7 = vpop.f32.mrb[13].mxu0  ;;  %v1057_v8 = vadd.f32 %v1714_v5, %v2170_v58  ;;  %v1048_v9 = vpop.f32.mrb[13].mxu1 }
 0x13b   : > { %v841_v10 = vadd.f32 %v2170_v58, %v840_v7  ;;  %v1663_v11 = vpop.f32.mrb[14].mxu0  ;;  %v1049_v12 = vadd.f32 %v2170_v58, %v1048_v9  ;;  %v1715_v13 = vpop.f32.mrb[14].mxu1 }
 0x13c   : > { %v1205_v14 = vmax.f32 %v849_v6, 0.0  ;;  %v852_v15 = vadd.f32 %v1663_v11, %v2170_v58  ;;  %v843_v16 = vpop.f32.mrb[15].mxu0  ;;  %v1257_v17 = vmax.f32 %v1057_v8, 0.0  ;;  %v1060_v18 = vadd.f32 %v1715_v13, %v2170_v58  ;;  %v1051_v19 = vpop.f32.mrb[15].mxu1 }
 0x13d   : > { %v1203_v20 = vmax.f32 %v841_v10, 0.0  ;;  %v844_v21 = vadd.f32 %v2170_v58, %v843_v16  ;;  %v1255_v22 = vmax.f32 %v1049_v12, 0.0  ;;  %v1052_v23 = vadd.f32 %v2170_v58, %v1051_v19 }
 0x13e   : > { %1306 = vst.msk [vmem:[%s2177_s15 + $0x70] sm:$0xff] %vm1291_vm2, %v1205_v14  ;;  %v1206_v24 = vmax.f32 %v852_v15, 0.0  ;;  %1358 = vst.msk [vmem:[%s2177_s15 + $0x210] sm:$0xff] %vm1291_vm2, %v1257_v17  ;;  %v1258_v25 = vmax.f32 %v1060_v18, 0.0 }
 0x13f   : > { %1304 = vst.msk [vmem:[%s2177_s15 + $0x60] sm:$0xff] %vm1291_vm2, %v1203_v20  ;;  %v1204_v26 = vmax.f32 %v844_v21, 0.0  ;;  %1356 = vst.msk [vmem:[%s2177_s15 + $0x200] sm:$0xff] %vm1291_vm2, %v1255_v22  ;;  %v1256_v27 = vmax.f32 %v1052_v23, 0.0 }
 0x140   : > { %1307 = vst.msk [vmem:[%s2177_s15 + $0x78] sm:$0xff] %vm1291_vm2, %v1206_v24  ;;  %1359 = vst.msk [vmem:[%s2177_s15 + $0x218] sm:$0xff] %vm1291_vm2, %v1258_v25 }
 0x141   : > { %1305 = vst.msk [vmem:[%s2177_s15 + $0x68] sm:$0xff] %vm1291_vm2, %v1204_v26  ;;  %v1666_v28 = vpop.f32.mrb[16].mxu0  ;;  %1357 = vst.msk [vmem:[%s2177_s15 + $0x208] sm:$0xff] %vm1291_vm2, %v1256_v27  ;;  %v1718_v29 = vpop.f32.mrb[16].mxu1 }
 0x142   : > { %v865_v30 = vadd.f32 %v1666_v28, %v2170_v58  ;;  %v856_v31 = vpop.f32.mrb[17].mxu0  ;;  %v1073_v32 = vadd.f32 %v1718_v29, %v2170_v58  ;;  %v1064_v33 = vpop.f32.mrb[17].mxu1 }
 0x143   : > { %v857_v34 = vadd.f32 %v2170_v58, %v856_v31  ;;  %v1667_v35 = vpop.f32.mrb[18].mxu0  ;;  %v1065_v36 = vadd.f32 %v2170_v58, %v1064_v33  ;;  %v1719_v37 = vpop.f32.mrb[18].mxu1 }
 0x144   : > { %v1209_v38 = vmax.f32 %v865_v30, 0.0  ;;  %v868_v39 = vadd.f32 %v1667_v35, %v2170_v58  ;;  %v859_v40 = vpop.f32.mrb[19].mxu0  ;;  %v1261_v41 = vmax.f32 %v1073_v32, 0.0  ;;  %v1076_v42 = vadd.f32 %v1719_v37, %v2170_v58  ;;  %v1067_v43 = vpop.f32.mrb[19].mxu1 }
 0x145   : > { %v1207_v44 = vmax.f32 %v857_v34, 0.0  ;;  %v860_v45 = vadd.f32 %v2170_v58, %v859_v40  ;;  %v1259_v46 = vmax.f32 %v1065_v36, 0.0  ;;  %v1068_v47 = vadd.f32 %v2170_v58, %v1067_v43 }
 0x146   : > { %1310 = vst.msk [vmem:[%s2177_s15 + $0x90] sm:$0xff] %vm1291_vm2, %v1209_v38  ;;  %v1210_v48 = vmax.f32 %v868_v39, 0.0  ;;  %1362 = vst.msk [vmem:[%s2177_s15 + $0x230] sm:$0xff] %vm1291_vm2, %v1261_v41  ;;  %v1262_v49 = vmax.f32 %v1076_v42, 0.0 }
 0x147   : > { %1308 = vst.msk [vmem:[%s2177_s15 + $0x80] sm:$0xff] %vm1291_vm2, %v1207_v44  ;;  %v1208_v50 = vmax.f32 %v860_v45, 0.0  ;;  %1360 = vst.msk [vmem:[%s2177_s15 + $0x220] sm:$0xff] %vm1291_vm2, %v1259_v46  ;;  %v1260_v51 = vmax.f32 %v1068_v47, 0.0 }
 0x148   : > { %1311 = vst.msk [vmem:[%s2177_s15 + $0x98] sm:$0xff] %vm1291_vm2, %v1210_v48  ;;  %1363 = vst.msk [vmem:[%s2177_s15 + $0x238] sm:$0xff] %vm1291_vm2, %v1262_v49 }
 0x149   : > { %1309 = vst.msk [vmem:[%s2177_s15 + $0x88] sm:$0xff] %vm1291_vm2, %v1208_v50  ;;  %v1670_v52 = vpop.f32.mrb[20].mxu0  ;;  %1361 = vst.msk [vmem:[%s2177_s15 + $0x228] sm:$0xff] %vm1291_vm2, %v1260_v51  ;;  %v1722_v53 = vpop.f32.mrb[20].mxu1 }
 0x14a   : > { %v881_v54 = vadd.f32 %v1670_v52, %v2170_v58  ;;  %v872_v55 = vpop.f32.mrb[21].mxu0  ;;  %v1089_v56 = vadd.f32 %v1722_v53, %v2170_v58  ;;  %v1080_v57 = vpop.f32.mrb[21].mxu1 }
 0x14b   : > { %v873_v59 = vadd.f32 %v2170_v58, %v872_v55  ;;  %v1671_v60 = vpop.f32.mrb[22].mxu0  ;;  %v1081_v61 = vadd.f32 %v2170_v58, %v1080_v57  ;;  %v1723_v62 = vpop.f32.mrb[22].mxu1 }
 0x14c   : > { %v1213_v63 = vmax.f32 %v881_v54, 0.0  ;;  %v884_v0 = vadd.f32 %v1671_v60, %v2170_v58  ;;  %v875_v1 = vpop.f32.mrb[23].mxu0  ;;  %v1265_v2 = vmax.f32 %v1089_v56, 0.0  ;;  %v1092_v3 = vadd.f32 %v1723_v62, %v2170_v58  ;;  %v1083_v4 = vpop.f32.mrb[23].mxu1 }
 0x14d   : > { %v1211_v5 = vmax.f32 %v873_v59, 0.0  ;;  %v876_v6 = vadd.f32 %v2170_v58, %v875_v1  ;;  %v1263_v7 = vmax.f32 %v1081_v61, 0.0  ;;  %v1084_v8 = vadd.f32 %v2170_v58, %v1083_v4 }
 0x14e   : > { %1314 = vst.msk [vmem:[%s2177_s15 + $0xb0] sm:$0xff] %vm1291_vm2, %v1213_v63  ;;  %v1214_v9 = vmax.f32 %v884_v0, 0.0  ;;  %1366 = vst.msk [vmem:[%s2177_s15 + $0x250] sm:$0xff] %vm1291_vm2, %v1265_v2  ;;  %v1266_v10 = vmax.f32 %v1092_v3, 0.0 }
 0x14f   : > { %1312 = vst.msk [vmem:[%s2177_s15 + $0xa0] sm:$0xff] %vm1291_vm2, %v1211_v5  ;;  %v1212_v11 = vmax.f32 %v876_v6, 0.0  ;;  %1364 = vst.msk [vmem:[%s2177_s15 + $0x240] sm:$0xff] %vm1291_vm2, %v1263_v7  ;;  %v1264_v12 = vmax.f32 %v1084_v8, 0.0 }
 0x150   : > { %1315 = vst.msk [vmem:[%s2177_s15 + $0xb8] sm:$0xff] %vm1291_vm2, %v1214_v9  ;;  %1367 = vst.msk [vmem:[%s2177_s15 + $0x258] sm:$0xff] %vm1291_vm2, %v1266_v10 }
 0x151   : > { %1313 = vst.msk [vmem:[%s2177_s15 + $0xa8] sm:$0xff] %vm1291_vm2, %v1212_v11  ;;  %v1674_v13 = vpop.f32.mrb[24].mxu0  ;;  %1365 = vst.msk [vmem:[%s2177_s15 + $0x248] sm:$0xff] %vm1291_vm2, %v1264_v12  ;;  %v1726_v14 = vpop.f32.mrb[24].mxu1 }
 0x152   : > { %v897_v15 = vadd.f32 %v1674_v13, %v2170_v58  ;;  %v888_v16 = vpop.f32.mrb[25].mxu0  ;;  %v1105_v17 = vadd.f32 %v1726_v14, %v2170_v58  ;;  %v1096_v18 = vpop.f32.mrb[25].mxu1 }
 0x153   : > { %v889_v19 = vadd.f32 %v2170_v58, %v888_v16  ;;  %v1675_v20 = vpop.f32.mrb[26].mxu0  ;;  %v1097_v21 = vadd.f32 %v2170_v58, %v1096_v18  ;;  %v1727_v22 = vpop.f32.mrb[26].mxu1 }
 0x154   : > { %v1217_v23 = vmax.f32 %v897_v15, 0.0  ;;  %v900_v24 = vadd.f32 %v1675_v20, %v2170_v58  ;;  %v891_v25 = vpop.f32.mrb[27].mxu0  ;;  %v1269_v26 = vmax.f32 %v1105_v17, 0.0  ;;  %v1108_v27 = vadd.f32 %v1727_v22, %v2170_v58  ;;  %v1099_v28 = vpop.f32.mrb[27].mxu1 }
 0x155   : > { %v1215_v29 = vmax.f32 %v889_v19, 0.0  ;;  %v892_v30 = vadd.f32 %v2170_v58, %v891_v25  ;;  %v1267_v31 = vmax.f32 %v1097_v21, 0.0  ;;  %v1100_v32 = vadd.f32 %v2170_v58, %v1099_v28 }
 0x156   : > { %1318 = vst.msk [vmem:[%s2177_s15 + $0xd0] sm:$0xff] %vm1291_vm2, %v1217_v23  ;;  %v1218_v33 = vmax.f32 %v900_v24, 0.0  ;;  %1370 = vst.msk [vmem:[%s2177_s15 + $0x270] sm:$0xff] %vm1291_vm2, %v1269_v26  ;;  %v1270_v34 = vmax.f32 %v1108_v27, 0.0 }
 0x157   : > { %1316 = vst.msk [vmem:[%s2177_s15 + $0xc0] sm:$0xff] %vm1291_vm2, %v1215_v29  ;;  %v1216_v35 = vmax.f32 %v892_v30, 0.0  ;;  %1368 = vst.msk [vmem:[%s2177_s15 + $0x260] sm:$0xff] %vm1291_vm2, %v1267_v31  ;;  %v1268_v36 = vmax.f32 %v1100_v32, 0.0 }
 0x158   : > { %1319 = vst.msk [vmem:[%s2177_s15 + $0xd8] sm:$0xff] %vm1291_vm2, %v1218_v33  ;;  %1371 = vst.msk [vmem:[%s2177_s15 + $0x278] sm:$0xff] %vm1291_vm2, %v1270_v34 }
 0x159   : > { %1317 = vst.msk [vmem:[%s2177_s15 + $0xc8] sm:$0xff] %vm1291_vm2, %v1216_v35  ;;  %v1678_v37 = vpop.f32.mrb[28].mxu0  ;;  %1369 = vst.msk [vmem:[%s2177_s15 + $0x268] sm:$0xff] %vm1291_vm2, %v1268_v36  ;;  %v1730_v38 = vpop.f32.mrb[28].mxu1 }
 0x15a   : > { %v913_v39 = vadd.f32 %v1678_v37, %v2170_v58  ;;  %v904_v40 = vpop.f32.mrb[29].mxu0  ;;  %v1121_v41 = vadd.f32 %v1730_v38, %v2170_v58  ;;  %v1112_v42 = vpop.f32.mrb[29].mxu1 }
 0x15b   : > { %v905_v43 = vadd.f32 %v2170_v58, %v904_v40  ;;  %v1679_v44 = vpop.f32.mrb[30].mxu0  ;;  %v1113_v45 = vadd.f32 %v2170_v58, %v1112_v42  ;;  %v1731_v46 = vpop.f32.mrb[30].mxu1 }
 0x15c   : > { %v1221_v47 = vmax.f32 %v913_v39, 0.0  ;;  %v916_v48 = vadd.f32 %v1679_v44, %v2170_v58  ;;  %v907_v49 = vpop.f32.mrb[31].mxu0  ;;  %v1273_v50 = vmax.f32 %v1121_v41, 0.0  ;;  %v1124_v51 = vadd.f32 %v1731_v46, %v2170_v58  ;;  %v1115_v52 = vpop.f32.mrb[31].mxu1 }
 0x15d   : > { %v1219_v53 = vmax.f32 %v905_v43, 0.0  ;;  %v908_v54 = vadd.f32 %v2170_v58, %v907_v49  ;;  %v1271_v55 = vmax.f32 %v1113_v45, 0.0  ;;  %v1116_v56 = vadd.f32 %v2170_v58, %v1115_v52 }
 0x15e   : > { %1322 = vst.msk [vmem:[%s2177_s15 + $0xf0] sm:$0xff] %vm1291_vm2, %v1221_v47  ;;  %v1222_v57 = vmax.f32 %v916_v48, 0.0  ;;  %1374 = vst.msk [vmem:[%s2177_s15 + $0x290] sm:$0xff] %vm1291_vm2, %v1273_v50  ;;  %v1274_v59 = vmax.f32 %v1124_v51, 0.0 }
 0x15f   : > { %1320 = vst.msk [vmem:[%s2177_s15 + $0xe0] sm:$0xff] %vm1291_vm2, %v1219_v53  ;;  %v1220_v60 = vmax.f32 %v908_v54, 0.0  ;;  %1372 = vst.msk [vmem:[%s2177_s15 + $0x280] sm:$0xff] %vm1291_vm2, %v1271_v55  ;;  %v1272_v61 = vmax.f32 %v1116_v56, 0.0 }
 0x160   : > { %1323 = vst.msk [vmem:[%s2177_s15 + $0xf8] sm:$0xff] %vm1291_vm2, %v1222_v57  ;;  %1375 = vst.msk [vmem:[%s2177_s15 + $0x298] sm:$0xff] %vm1291_vm2, %v1274_v59 }
 0x161   : > { %1321 = vst.msk [vmem:[%s2177_s15 + $0xe8] sm:$0xff] %vm1291_vm2, %v1220_v60  ;;  %v1682_v62 = vpop.f32.mrb[32].mxu0  ;;  %1373 = vst.msk [vmem:[%s2177_s15 + $0x288] sm:$0xff] %vm1291_vm2, %v1272_v61  ;;  %v1734_v63 = vpop.f32.mrb[32].mxu1 }
 0x162   : > { %v929_v0 = vadd.f32 %v1682_v62, %v2170_v58  ;;  %v920_v1 = vpop.f32.mrb[33].mxu0  ;;  %v1137_v2 = vadd.f32 %v1734_v63, %v2170_v58  ;;  %v1128_v3 = vpop.f32.mrb[33].mxu1 }
 0x163   : > { %v921_v4 = vadd.f32 %v2170_v58, %v920_v1  ;;  %v1683_v5 = vpop.f32.mrb[34].mxu0  ;;  %v1129_v6 = vadd.f32 %v2170_v58, %v1128_v3  ;;  %v1735_v7 = vpop.f32.mrb[34].mxu1 }
 0x164   : > { %v1225_v8 = vmax.f32 %v929_v0, 0.0  ;;  %v932_v9 = vadd.f32 %v1683_v5, %v2170_v58  ;;  %v923_v10 = vpop.f32.mrb[35].mxu0  ;;  %v1277_v11 = vmax.f32 %v1137_v2, 0.0  ;;  %v1140_v12 = vadd.f32 %v1735_v7, %v2170_v58  ;;  %v1131_v13 = vpop.f32.mrb[35].mxu1 }
 0x165   : > { %v1223_v14 = vmax.f32 %v921_v4, 0.0  ;;  %v924_v15 = vadd.f32 %v2170_v58, %v923_v10  ;;  %v1275_v16 = vmax.f32 %v1129_v6, 0.0  ;;  %v1132_v17 = vadd.f32 %v2170_v58, %v1131_v13 }
 0x166   : > { %1326 = vst.msk [vmem:[%s2177_s15 + $0x110] sm:$0xff] %vm1291_vm2, %v1225_v8  ;;  %v1226_v18 = vmax.f32 %v932_v9, 0.0  ;;  %1378 = vst.msk [vmem:[%s2177_s15 + $0x2b0] sm:$0xff] %vm1291_vm2, %v1277_v11  ;;  %v1278_v19 = vmax.f32 %v1140_v12, 0.0 }
 0x167   : > { %1324 = vst.msk [vmem:[%s2177_s15 + $0x100] sm:$0xff] %vm1291_vm2, %v1223_v14  ;;  %v1224_v20 = vmax.f32 %v924_v15, 0.0  ;;  %1376 = vst.msk [vmem:[%s2177_s15 + $0x2a0] sm:$0xff] %vm1291_vm2, %v1275_v16  ;;  %v1276_v21 = vmax.f32 %v1132_v17, 0.0 }
 0x168   : > { %1327 = vst.msk [vmem:[%s2177_s15 + $0x118] sm:$0xff] %vm1291_vm2, %v1226_v18  ;;  %1379 = vst.msk [vmem:[%s2177_s15 + $0x2b8] sm:$0xff] %vm1291_vm2, %v1278_v19 }
 0x169   : > { %1325 = vst.msk [vmem:[%s2177_s15 + $0x108] sm:$0xff] %vm1291_vm2, %v1224_v20  ;;  %v1686_v22 = vpop.f32.mrb[36].mxu0  ;;  %1377 = vst.msk [vmem:[%s2177_s15 + $0x2a8] sm:$0xff] %vm1291_vm2, %v1276_v21  ;;  %v1738_v23 = vpop.f32.mrb[36].mxu1 }
 0x16a   : > { %v945_v24 = vadd.f32 %v1686_v22, %v2170_v58  ;;  %v936_v25 = vpop.f32.mrb[37].mxu0  ;;  %v1153_v26 = vadd.f32 %v1738_v23, %v2170_v58  ;;  %v1144_v27 = vpop.f32.mrb[37].mxu1 }
 0x16b   : > { %v937_v28 = vadd.f32 %v2170_v58, %v936_v25  ;;  %v1687_v29 = vpop.f32.mrb[38].mxu0  ;;  %v1145_v30 = vadd.f32 %v2170_v58, %v1144_v27  ;;  %v1739_v31 = vpop.f32.mrb[38].mxu1 }
 0x16c   : > { %v1229_v32 = vmax.f32 %v945_v24, 0.0  ;;  %v948_v33 = vadd.f32 %v1687_v29, %v2170_v58  ;;  %v939_v34 = vpop.f32.mrb[39].mxu0  ;;  %v1281_v35 = vmax.f32 %v1153_v26, 0.0  ;;  %v1156_v36 = vadd.f32 %v1739_v31, %v2170_v58  ;;  %v1147_v37 = vpop.f32.mrb[39].mxu1 }
 0x16d   : > { %v1227_v38 = vmax.f32 %v937_v28, 0.0  ;;  %v940_v39 = vadd.f32 %v2170_v58, %v939_v34  ;;  %v1279_v40 = vmax.f32 %v1145_v30, 0.0  ;;  %v1148_v41 = vadd.f32 %v2170_v58, %v1147_v37 }
 0x16e   : > { %1330 = vst.msk [vmem:[%s2177_s15 + $0x130] sm:$0xff] %vm1291_vm2, %v1229_v32  ;;  %v1230_v42 = vmax.f32 %v948_v33, 0.0  ;;  %1382 = vst.msk [vmem:[%s2177_s15 + $0x2d0] sm:$0xff] %vm1291_vm2, %v1281_v35  ;;  %v1282_v43 = vmax.f32 %v1156_v36, 0.0 }
 0x16f   : > { %1328 = vst.msk [vmem:[%s2177_s15 + $0x120] sm:$0xff] %vm1291_vm2, %v1227_v38  ;;  %v1228_v44 = vmax.f32 %v940_v39, 0.0  ;;  %1380 = vst.msk [vmem:[%s2177_s15 + $0x2c0] sm:$0xff] %vm1291_vm2, %v1279_v40  ;;  %v1280_v45 = vmax.f32 %v1148_v41, 0.0 }
 0x170   : > { %1331 = vst.msk [vmem:[%s2177_s15 + $0x138] sm:$0xff] %vm1291_vm2, %v1230_v42  ;;  %1383 = vst.msk [vmem:[%s2177_s15 + $0x2d8] sm:$0xff] %vm1291_vm2, %v1282_v43 }
 0x171   : > { %1329 = vst.msk [vmem:[%s2177_s15 + $0x128] sm:$0xff] %vm1291_vm2, %v1228_v44  ;;  %v1690_v46 = vpop.f32.mrb[40].mxu0  ;;  %1381 = vst.msk [vmem:[%s2177_s15 + $0x2c8] sm:$0xff] %vm1291_vm2, %v1280_v45  ;;  %v1742_v47 = vpop.f32.mrb[40].mxu1 }
 0x172   : > { %v961_v48 = vadd.f32 %v1690_v46, %v2170_v58  ;;  %v952_v49 = vpop.f32.mrb[41].mxu0  ;;  %v1169_v50 = vadd.f32 %v1742_v47, %v2170_v58  ;;  %v1160_v51 = vpop.f32.mrb[41].mxu1 }
 0x173   : > { %v953_v52 = vadd.f32 %v2170_v58, %v952_v49  ;;  %v1691_v53 = vpop.f32.mrb[42].mxu0  ;;  %v1161_v54 = vadd.f32 %v2170_v58, %v1160_v51  ;;  %v1743_v55 = vpop.f32.mrb[42].mxu1 }
 0x174   : > { %v1233_v56 = vmax.f32 %v961_v48, 0.0  ;;  %v964_v57 = vadd.f32 %v1691_v53, %v2170_v58  ;;  %v955_v59 = vpop.f32.mrb[43].mxu0  ;;  %v1285_v60 = vmax.f32 %v1169_v50, 0.0  ;;  %v1172_v61 = vadd.f32 %v1743_v55, %v2170_v58  ;;  %v1163_v62 = vpop.f32.mrb[43].mxu1 }
 0x175   : > { %v1231_v63 = vmax.f32 %v953_v52, 0.0  ;;  %v956_v0 = vadd.f32 %v2170_v58, %v955_v59  ;;  %v1283_v1 = vmax.f32 %v1161_v54, 0.0  ;;  %v1164_v2 = vadd.f32 %v2170_v58, %v1163_v62 }
 0x176   : > { %1334 = vst.msk [vmem:[%s2177_s15 + $0x150] sm:$0xff] %vm1291_vm2, %v1233_v56  ;;  %v1234_v3 = vmax.f32 %v964_v57, 0.0  ;;  %1386 = vst.msk [vmem:[%s2177_s15 + $0x2f0] sm:$0xff] %vm1291_vm2, %v1285_v60  ;;  %v1286_v4 = vmax.f32 %v1172_v61, 0.0 }
 0x177   : > { %1332 = vst.msk [vmem:[%s2177_s15 + $0x140] sm:$0xff] %vm1291_vm2, %v1231_v63  ;;  %v1232_v5 = vmax.f32 %v956_v0, 0.0  ;;  %1384 = vst.msk [vmem:[%s2177_s15 + $0x2e0] sm:$0xff] %vm1291_vm2, %v1283_v1  ;;  %v1284_v6 = vmax.f32 %v1164_v2, 0.0 }
 0x178   : > { %1335 = vst.msk [vmem:[%s2177_s15 + $0x158] sm:$0xff] %vm1291_vm2, %v1234_v3  ;;  %1387 = vst.msk [vmem:[%s2177_s15 + $0x2f8] sm:$0xff] %vm1291_vm2, %v1286_v4 }
 0x179   : > { %1333 = vst.msk [vmem:[%s2177_s15 + $0x148] sm:$0xff] %vm1291_vm2, %v1232_v5  ;;  %v1694_v7 = vpop.f32.mrb[44].mxu0  ;;  %1385 = vst.msk [vmem:[%s2177_s15 + $0x2e8] sm:$0xff] %vm1291_vm2, %v1284_v6  ;;  %v1746_v8 = vpop.f32.mrb[44].mxu1 }
 0x17a   : > { %v977_v9 = vadd.f32 %v1694_v7, %v2170_v58  ;;  %v968_v10 = vpop.f32.mrb[45].mxu0  ;;  %v1185_v11 = vadd.f32 %v1746_v8, %v2170_v58  ;;  %v1176_v12 = vpop.f32.mrb[45].mxu1 }
 0x17b   : > { %v969_v13 = vadd.f32 %v2170_v58, %v968_v10  ;;  %v1695_v14 = vpop.f32.mrb[46].mxu0  ;;  %v1177_v15 = vadd.f32 %v2170_v58, %v1176_v12  ;;  %v1747_v16 = vpop.f32.mrb[46].mxu1 }
 0x17c   : > { %v1237_v17 = vmax.f32 %v977_v9, 0.0  ;;  %v980_v18 = vadd.f32 %v1695_v14, %v2170_v58  ;;  %v971_v19 = vpop.f32.mrb[47].mxu0  ;;  %v1289_v20 = vmax.f32 %v1185_v11, 0.0  ;;  %v1188_v21 = vadd.f32 %v1747_v16, %v2170_v58  ;;  %v1179_v22 = vpop.f32.mrb[47].mxu1 }
 0x17d   : > { %v1235_v23 = vmax.f32 %v969_v13, 0.0  ;;  %v972_v24 = vadd.f32 %v2170_v58, %v971_v19  ;;  %v1287_v25 = vmax.f32 %v1177_v15, 0.0  ;;  %v1180_v26 = vadd.f32 %v2170_v58, %v1179_v22 }
 0x17e   : > { %1338 = vst.msk [vmem:[%s2177_s15 + $0x170] sm:$0xff] %vm1291_vm2, %v1237_v17  ;;  %v1238_v27 = vmax.f32 %v980_v18, 0.0  ;;  %1390 = vst.msk [vmem:[%s2177_s15 + $0x310] sm:$0xff] %vm1291_vm2, %v1289_v20  ;;  %v1290_v28 = vmax.f32 %v1188_v21, 0.0 }
 0x17f   : > { %1336 = vst.msk [vmem:[%s2177_s15 + $0x160] sm:$0xff] %vm1291_vm2, %v1235_v23  ;;  %v1236_v29 = vmax.f32 %v972_v24, 0.0  ;;  %1388 = vst.msk [vmem:[%s2177_s15 + $0x300] sm:$0xff] %vm1291_vm2, %v1287_v25  ;;  %v1288_v30 = vmax.f32 %v1180_v26, 0.0 }
 0x180   : > { %1339 = vst.msk [vmem:[%s2177_s15 + $0x178] sm:$0xff] %vm1291_vm2, %v1238_v27  ;;  %1391 = vst.msk [vmem:[%s2177_s15 + $0x318] sm:$0xff] %vm1291_vm2, %v1290_v28 }
 0x181   : > { %1337 = vst.msk [vmem:[%s2177_s15 + $0x168] sm:$0xff] %vm1291_vm2, %v1236_v29  ;;  %v1698_v31 = vpop.f32.mrb[48].mxu0  ;;  %1389 = vst.msk [vmem:[%s2177_s15 + $0x308] sm:$0xff] %vm1291_vm2, %v1288_v30 }
 0x182   : > { %v993_v32 = vadd.f32 %v1698_v31, %v2170_v58  ;;  %v984_v33 = vpop.f32.mrb[49].mxu0 }
 0x183   : > { %v985_v34 = vadd.f32 %v2170_v58, %v984_v33  ;;  %v1699_v35 = vpop.f32.mrb[50].mxu0 }
 0x184   : > { %v1241_v36 = vmax.f32 %v993_v32, 0.0  ;;  %v996_v37 = vadd.f32 %v1699_v35, %v2170_v58  ;;  %v987_v38 = vpop.f32.mrb[51].mxu0 }
 0x185   : > { %v1239_v39 = vmax.f32 %v985_v34, 0.0  ;;  %v988_v40 = vadd.f32 %v2170_v58, %v987_v38 }
 0x186   : > { %1342 = vst.msk [vmem:[%s2177_s15 + $0x190] sm:$0xff] %vm1291_vm2, %v1241_v36  ;;  %v1242_v41 = vmax.f32 %v996_v37, 0.0 }
 0x187   : > { %1340 = vst.msk [vmem:[%s2177_s15 + $0x180] sm:$0xff] %vm1291_vm2, %v1239_v39  ;;  %v1240_v42 = vmax.f32 %v988_v40, 0.0 }
 0x188   : > { %1343 = vst.msk [vmem:[%s2177_s15 + $0x198] sm:$0xff] %vm1291_vm2, %v1242_v41 }
 0x189   : > { %1341 = vst.msk [vmem:[%s2177_s15 + $0x188] sm:$0xff] %vm1291_vm2, %v1240_v42 }
 0x18a PF: > { %p13_p8 = scmp.ge.s32.totalorder %s1973_s17, 6   ;;  %s2497_s12 = smov %s1920_s13 }
 0x18b   : > { %s2498_s13 = smov %s1924_s14  ;;  %s2499_s14 = smov %s1983_s20 }
 0x18c   : > { %s2500_s15 = smov %s1973_s17  ;;  %15 = sbr.rel (!%p13_p8) target bundleno = 3 (0x3), region = 72 }
 0x193   :  { %1414 = vsyncpa [#allocation3], 1 }
 0x194   :  { %1416 = vsyncpa [#allocation3 + $0x1], 1 }

// kernel: which_podcaster_cnn_forward.5
= control target key start
LH: loop header
LB: loop body
LE: loop exit
PB: predicated region body
PF: predicated region fallthrough
CT: control target
= control target key end

     0   :  { %vm138_vm0 = vcmask 1040384   ;;  %vm489_vm1 = vcmask 1041409   ;;  %vm491_vm2 = vcmask 1042434   ;;  %vm493_vm3 = vcmask 1043459   ;;  %s1074_s0 = inlined_call_operand.vmem [shape: f32[16,25,256], index: 0, kind: input, shape index: {}]   ;;  %s1075_s1 = inlined_call_operand.vmem [shape: f32[16,256], index: 1, kind: output, shape index: {}]  }
   0x1   :  { %v8_v0 = vld [vmem:[%s1074_s0] sm:$0xff]  ;;  %v9_v1 = vld [vmem:[%s1074_s0 + $0x8] sm:$0xff]  ;;  %v10_v2 = vld [vmem:[%s1074_s0 + $0x10] sm:$0xff]  ;;  %vm495_vm4 = vcmask 1044484   ;;  %vm497_vm5 = vcmask 1045509   ;;  %vm499_vm6 = vcmask 1046534  }
   0x2   :  { %v11_v3 = vld [vmem:[%s1074_s0 + $0x18] sm:$0xff]  ;;  %v12_v4 = vld [vmem:[%s1074_s0 + $0x20] sm:$0xff]  ;;  %v13_v5 = vld [vmem:[%s1074_s0 + $0x28] sm:$0xff]  ;;  %v136_v6 = vmax.f32 %v8_v0, %v10_v2  ;;  %vm501_vm7 = vcmask 1047559  }
   0x3   :  { %v14_v7 = vld [vmem:[%s1074_s0 + $0x30] sm:$0x1]  ;;  %v15_v8 = vld [vmem:[%s1074_s0 + $0x38] sm:$0x1]  ;;  %v16_v9 = vld [vmem:[%s1074_s0 + $0x40] sm:$0xff]  ;;  %v147_v10 = vmax.f32 %v9_v1, %v11_v3 }
   0x4   :  { %v17_v11 = vld [vmem:[%s1074_s0 + $0x48] sm:$0xff]  ;;  %v18_v12 = vld [vmem:[%s1074_s0 + $0x50] sm:$0xff]  ;;  %v19_v13 = vld [vmem:[%s1074_s0 + $0x58] sm:$0xff]  ;;  %v137_v14 = vmax.f32 %v136_v6, %v12_v4  ;;  %v139_v15 = vsel %vm138_vm0, %v14_v7, -inf  ;;  %v149_v16 = vsel %vm138_vm0, %v15_v8, -inf }
   0x5   :  { %v20_v17 = vld [vmem:[%s1074_s0 + $0x60] sm:$0xff]  ;;  %v21_v18 = vld [vmem:[%s1074_s0 + $0x68] sm:$0xff]  ;;  %v22_v19 = vld [vmem:[%s1074_s0 + $0x70] sm:$0x1]  ;;  %v148_v20 = vmax.f32 %v147_v10, %v13_v5  ;;  %v157_v21 = vmax.f32 %v16_v9, %v18_v12  ;;  %v167_v22 = vmax.f32 %v17_v11, %v19_v13 }
   0x6   :  { %v23_v23 = vld [vmem:[%s1074_s0 + $0x78] sm:$0x1]  ;;  %v24_v24 = vld [vmem:[%s1074_s0 + $0x80] sm:$0xff]  ;;  %v25_v25 = vld [vmem:[%s1074_s0 + $0x88] sm:$0xff]  ;;  %v140_v26 = vmax.f32 %v137_v14, %v139_v15  ;;  %v159_v27 = vsel %vm138_vm0, %v22_v19, -inf }
   0x7   :  { %v26_v28 = vld [vmem:[%s1074_s0 + $0x90] sm:$0xff]  ;;  %v27_v29 = vld [vmem:[%s1074_s0 + $0x98] sm:$0xff]  ;;  %v28_v30 = vld [vmem:[%s1074_s0 + $0xa0] sm:$0xff]  ;;  %v150_v31 = vmax.f32 %v148_v20, %v149_v16  ;;  %v158_v32 = vmax.f32 %v157_v21, %v20_v17  ;;  %v168_v33 = vmax.f32 %v167_v22, %v21_v18  ;;  %v169_v34 = vsel %vm138_vm0, %v23_v23, -inf }
   0x8   :  { %v29_v35 = vld [vmem:[%s1074_s0 + $0xa8] sm:$0xff]  ;;  %v30_v36 = vld [vmem:[%s1074_s0 + $0xb0] sm:$0x1]  ;;  %v31_v37 = vld [vmem:[%s1074_s0 + $0xb8] sm:$0x1]  ;;  %v141_v38 = vrot.slane %v140_v26, 4  ;;  %v177_v39 = vmax.f32 %v24_v24, %v26_v28  ;;  %v187_v40 = vmax.f32 %v25_v25, %v27_v29 }
   0x9   :  { %v32_v41 = vld [vmem:[%s1074_s0 + $0xc0] sm:$0xff]  ;;  %v33_v42 = vld [vmem:[%s1074_s0 + $0xc8] sm:$0xff]  ;;  %v34_v43 = vld [vmem:[%s1074_s0 + $0xd0] sm:$0xff]  ;;  %v151_v44 = vrot.slane %v150_v31, 4  ;;  %v160_v45 = vmax.f32 %v158_v32, %v159_v27  ;;  %v170_v46 = vmax.f32 %v168_v33, %v169_v34  ;;  %v179_v47 = vsel %vm138_vm0, %v30_v36, -inf }
   0xa   :  { %v35_v48 = vld [vmem:[%s1074_s0 + $0xd8] sm:$0xff]  ;;  %v36_v49 = vld [vmem:[%s1074_s0 + $0xe0] sm:$0xff]  ;;  %v142_v50 = vmax.f32 %v140_v26, %v141_v38  ;;  %v178_v51 = vmax.f32 %v177_v39, %v28_v30  ;;  %v188_v52 = vmax.f32 %v187_v40, %v29_v35  ;;  %v189_v53 = vsel %vm138_vm0, %v31_v37, -inf  ;;  %v38_v54 = vld [vmem:[%s1074_s0 + $0xf0] sm:$0x1] }
   0xb   :  { %v152_v55 = vmax.f32 %v150_v31, %v151_v44  ;;  %v161_v56 = vrot.slane %v160_v45, 4  ;;  %v197_v57 = vmax.f32 %v32_v41, %v34_v43  ;;  %v207_v58 = vmax.f32 %v33_v42, %v35_v48  ;;  %v37_v59 = vld [vmem:[%s1074_s0 + $0xe8] sm:$0xff]  ;;  %v40_v0 = vld [vmem:[%s1074_s0 + $0x100] sm:$0xff]  ;;  %v42_v1 = vld [vmem:[%s1074_s0 + $0x110] sm:$0xff] }
   0xc   :  { %v143_v60 = vrot.slane %v142_v50, 2  ;;  %v171_v61 = vrot.slane %v170_v46, 4  ;;  %v180_v62 = vmax.f32 %v178_v51, %v179_v47  ;;  %v190_v63 = vmax.f32 %v188_v52, %v189_v53  ;;  %v39_v10 = vld [vmem:[%s1074_s0 + $0xf8] sm:$0x1]  ;;  %v44_v19 = vld [vmem:[%s1074_s0 + $0x120] sm:$0xff]  ;;  %v41_v24 = vld [vmem:[%s1074_s0 + $0x108] sm:$0xff] }
   0xd   :  { %v153_v2 = vrot.slane %v152_v55, 2  ;;  %v162_v3 = vmax.f32 %v160_v45, %v161_v56  ;;  %v198_v4 = vmax.f32 %v197_v57, %v36_v49  ;;  %v199_v5 = vsel %vm138_vm0, %v38_v54, -inf  ;;  %v43_v25 = vld [vmem:[%s1074_s0 + $0x118] sm:$0xff]  ;;  %v48_v26 = vld [vmem:[%s1074_s0 + $0x140] sm:$0xff]  ;;  %v49_v31 = vld [vmem:[%s1074_s0 + $0x148] sm:$0xff] }
   0xe   :  { %v144_v6 = vmax.f32 %v142_v50, %v143_v60  ;;  %v172_v7 = vmax.f32 %v170_v46, %v171_v61  ;;  %v181_v8 = vrot.slane %v180_v62, 4  ;;  %v191_v9 = vrot.slane %v190_v63, 4  ;;  %v50_v32 = vld [vmem:[%s1074_s0 + $0x150] sm:$0xff]  ;;  %v51_v33 = vld [vmem:[%s1074_s0 + $0x158] sm:$0xff]  ;;  %v45_v43 = vld [vmem:[%s1074_s0 + $0x128] sm:$0xff] }
   0xf   :  { %v154_v11 = vmax.f32 %v152_v55, %v153_v2  ;;  %v163_v12 = vrot.slane %v162_v3, 2  ;;  %v200_v13 = vmax.f32 %v198_v4, %v199_v5  ;;  %v208_v14 = vmax.f32 %v207_v58, %v37_v59  ;;  %v46_v38 = vld [vmem:[%s1074_s0 + $0x130] sm:$0x1]  ;;  %v47_v48 = vld [vmem:[%s1074_s0 + $0x138] sm:$0x1]  ;;  %v52_v49 = vld [vmem:[%s1074_s0 + $0x160] sm:$0xff] }
  0x10   :  { %v145_v15 = vrot.slane %v144_v6, 1  ;;  %v182_v16 = vmax.f32 %v180_v62, %v181_v8  ;;  %v192_v17 = vmax.f32 %v190_v63, %v191_v9  ;;  %v217_v18 = vmax.f32 %v40_v0, %v42_v1  ;;  %v53_v54 = vld [vmem:[%s1074_s0 + $0x168] sm:$0xff]  ;;  %v54_v55 = vld [vmem:[%s1074_s0 + $0x170] sm:$0x1]  ;;  %v56_v60 = vld [vmem:[%s1074_s0 + $0x180] sm:$0xff] }
  0x11   :  { %v155_v20 = vrot.slane %v154_v11, 1  ;;  %v164_v21 = vmax.f32 %v162_v3, %v163_v12  ;;  %v173_v22 = vrot.slane %v172_v7, 2  ;;  %v201_v23 = vrot.slane %v200_v13, 4  ;;  %v58_v61 = vld [vmem:[%s1074_s0 + $0x190] sm:$0xff]  ;;  %v55_v2 = vld [vmem:[%s1074_s0 + $0x178] sm:$0x1] }
  0x12   :  { %v667_v27 = vmax.f32 %v144_v6, %v145_v15  ;;  %v183_v28 = vrot.slane %v182_v16, 2  ;;  %v193_v29 = vrot.slane %v192_v17, 2  ;;  %v209_v30 = vsel %vm138_vm0, %v39_v10, -inf  ;;  %v62_v3 = vld [vmem:[%s1074_s0 + $0x1b0] sm:$0x1]  ;;  %v60_v8 = vld [vmem:[%s1074_s0 + $0x1a0] sm:$0xff] }
  0x13   :  { %v679_v34 = vmax.f32 %v154_v11, %v155_v20  ;;  %v165_v35 = vrot.slane %v164_v21, 1  ;;  %v174_v36 = vmax.f32 %v172_v7, %v173_v22  ;;  %v202_v37 = vmax.f32 %v200_v13, %v201_v23  ;;  %v57_v13 = vld [vmem:[%s1074_s0 + $0x188] sm:$0xff]  ;;  %v63_v15 = vld [vmem:[%s1074_s0 + $0x1b8] sm:$0x1] }
  0x14   :  { %v184_v39 = vmax.f32 %v182_v16, %v183_v28  ;;  %v194_v40 = vmax.f32 %v192_v17, %v193_v29  ;;  %v210_v41 = vmax.f32 %v208_v14, %v209_v30  ;;  %v218_v42 = vmax.f32 %v217_v18, %v44_v19  ;;  %v59_v14 = vld [vmem:[%s1074_s0 + $0x198] sm:$0xff] }
  0x15   :  { %v687_v44 = vmax.f32 %v164_v21, %v165_v35  ;;  %v175_v45 = vrot.slane %v174_v36, 1  ;;  %v203_v46 = vrot.slane %v202_v37, 2  ;;  %v227_v47 = vmax.f32 %v41_v24, %v43_v25  ;;  %v61_v24 = vld [vmem:[%s1074_s0 + $0x1a8] sm:$0xff]  ;;  %v64_v25 = vld [vmem:[%s1074_s0 + $0x1c0] sm:$0xff] }
  0x16   :  { %v185_v50 = vrot.slane %v184_v39, 1  ;;  %v195_v51 = vrot.slane %v194_v40, 1  ;;  %v237_v52 = vmax.f32 %v48_v26, %v50_v32  ;;  %v247_v53 = vmax.f32 %v49_v31, %v51_v33  ;;  %v66_v26 = vld [vmem:[%s1074_s0 + $0x1d0] sm:$0xff] }
  0x17   :  { %v701_v56 = vmax.f32 %v174_v36, %v175_v45  ;;  %v204_v57 = vmax.f32 %v202_v37, %v203_v46  ;;  %v211_v58 = vrot.slane %v210_v41, 4  ;;  %v219_v59 = vsel %vm138_vm0, %v46_v38, -inf  ;;  %v68_v37 = vld [vmem:[%s1074_s0 + $0x1e0] sm:$0xff] }
  0x18   :  { %v710_v62 = vmax.f32 %v184_v39, %v185_v50  ;;  %v712_v63 = vmax.f32 %v194_v40, %v195_v51  ;;  %v220_v0 = vmax.f32 %v218_v42, %v219_v59  ;;  %v228_v1 = vmax.f32 %v227_v47, %v45_v43  ;;  %v65_v42 = vld [vmem:[%s1074_s0 + $0x1c8] sm:$0xff]  ;;  %v67_v43 = vld [vmem:[%s1074_s0 + $0x1d8] sm:$0xff] }
  0x19   :  { %v205_v4 = vrot.slane %v204_v57, 1  ;;  %v212_v5 = vmax.f32 %v210_v41, %v211_v58  ;;  %v229_v6 = vsel %vm138_vm0, %v47_v48, -inf  ;;  %v238_v7 = vmax.f32 %v237_v52, %v52_v49  ;;  %v70_v49 = vld [vmem:[%s1074_s0 + $0x1f0] sm:$0x1]  ;;  %v69_v59 = vld [vmem:[%s1074_s0 + $0x1e8] sm:$0xff] }
  0x1a   :  { %v221_v9 = vrot.slane %v220_v0, 4  ;;  %v230_v10 = vmax.f32 %v228_v1, %v229_v6  ;;  %v239_v11 = vsel %vm138_vm0, %v54_v55, -inf  ;;  %v248_v12 = vmax.f32 %v247_v53, %v53_v54 }
  0x1b   :  { %v734_v16 = vmax.f32 %v204_v57, %v205_v4  ;;  %v213_v17 = vrot.slane %v212_v5, 2  ;;  %v240_v18 = vmax.f32 %v238_v7, %v239_v11  ;;  %v257_v19 = vmax.f32 %v56_v60, %v58_v61  ;;  %v71_v60 = vld [vmem:[%s1074_s0 + $0x1f8] sm:$0x1] }
  0x1c   :  { %v222_v20 = vmax.f32 %v220_v0, %v221_v9  ;;  %v231_v21 = vrot.slane %v230_v10, 4  ;;  %v249_v22 = vsel %vm138_vm0, %v55_v2, -inf  ;;  %v259_v23 = vsel %vm138_vm0, %v62_v3, -inf  ;;  %v72_v3 = vld [vmem:[%s1074_s0 + $0x200] sm:$0xff]  ;;  %v74_v9 = vld [vmem:[%s1074_s0 + $0x210] sm:$0xff] }
  0x1d   :  { %v214_v28 = vmax.f32 %v212_v5, %v213_v17  ;;  %v241_v29 = vrot.slane %v240_v18, 4  ;;  %v250_v30 = vmax.f32 %v248_v12, %v249_v22  ;;  %v258_v31 = vmax.f32 %v257_v19, %v60_v8  ;;  %v73_v8 = vld [vmem:[%s1074_s0 + $0x208] sm:$0xff] }
  0x1e   :  { %v223_v32 = vrot.slane %v222_v20, 2  ;;  %v232_v33 = vmax.f32 %v230_v10, %v231_v21  ;;  %v267_v35 = vmax.f32 %v57_v13, %v59_v14  ;;  %v269_v36 = vsel %vm138_vm0, %v63_v15, -inf  ;;  %v75_v10 = vld [vmem:[%s1074_s0 + $0x218] sm:$0xff]  ;;  %v78_v15 = vld [vmem:[%s1074_s0 + $0x230] sm:$0x1]  ;;  %v76_v21 = vld [vmem:[%s1074_s0 + $0x220] sm:$0xff] }
  0x1f   :  { %v215_v38 = vrot.slane %v214_v28, 1  ;;  %v242_v39 = vmax.f32 %v240_v18, %v241_v29  ;;  %v251_v40 = vrot.slane %v250_v30, 4  ;;  %v260_v41 = vmax.f32 %v258_v31, %v259_v23  ;;  %v77_v22 = vld [vmem:[%s1074_s0 + $0x228] sm:$0xff]  ;;  %v80_v29 = vld [vmem:[%s1074_s0 + $0x240] sm:$0xff] }
  0x20   :  { %v224_v45 = vmax.f32 %v222_v20, %v223_v32  ;;  %v233_v46 = vrot.slane %v232_v33, 2  ;;  %v268_v47 = vmax.f32 %v267_v35, %v61_v24  ;;  %v277_v48 = vmax.f32 %v64_v25, %v66_v26 }
  0x21   :  { %v760_v50 = vmax.f32 %v214_v28, %v215_v38  ;;  %v243_v51 = vrot.slane %v242_v39, 2  ;;  %v252_v52 = vmax.f32 %v250_v30, %v251_v40  ;;  %v261_v53 = vrot.slane %v260_v41, 4  ;;  %v79_v28 = vld [vmem:[%s1074_s0 + $0x238] sm:$0x1]  ;;  %v82_v30 = vld [vmem:[%s1074_s0 + $0x250] sm:$0xff] }
  0x22   :  { %v225_v54 = vrot.slane %v224_v45, 1  ;;  %v234_v55 = vmax.f32 %v232_v33, %v233_v46  ;;  %v270_v57 = vmax.f32 %v268_v47, %v269_v36  ;;  %v278_v58 = vmax.f32 %v277_v48, %v68_v37  ;;  %v81_v36 = vld [vmem:[%s1074_s0 + $0x248] sm:$0xff] }
  0x23   :  { %v244_v61 = vmax.f32 %v242_v39, %v243_v51  ;;  %v253_v0 = vrot.slane %v252_v52, 2  ;;  %v262_v1 = vmax.f32 %v260_v41, %v261_v53  ;;  %v287_v2 = vmax.f32 %v65_v42, %v67_v43  ;;  %v83_v41 = vld [vmem:[%s1074_s0 + $0x258] sm:$0xff]  ;;  %v84_v42 = vld [vmem:[%s1074_s0 + $0x260] sm:$0xff]  ;;  %v86_v43 = vld [vmem:[%s1074_s0 + $0x270] sm:$0x1] }
  0x24   :  { %v771_v4 = vmax.f32 %v224_v45, %v225_v54  ;;  %v235_v5 = vrot.slane %v234_v55, 1  ;;  %v271_v6 = vrot.slane %v270_v57, 4  ;;  %v279_v7 = vsel %vm138_vm0, %v70_v49, -inf  ;;  %v85_v54 = vld [vmem:[%s1074_s0 + $0x268] sm:$0xff] }
  0x25   :  { %v245_v11 = vrot.slane %v244_v61, 1  ;;  %v254_v12 = vmax.f32 %v252_v52, %v253_v0  ;;  %v263_v13 = vrot.slane %v262_v1, 2  ;;  %v280_v14 = vmax.f32 %v278_v58, %v279_v7  ;;  %v90_v0 = vld [vmem:[%s1074_s0 + $0x290] sm:$0xff] }
  0x26   :  { %v786_v17 = vmax.f32 %v234_v55, %v235_v5  ;;  %v272_v18 = vmax.f32 %v270_v57, %v271_v6  ;;  %v288_v19 = vmax.f32 %v287_v2, %v69_v59  ;;  %v289_v20 = vsel %vm138_vm0, %v71_v60, -inf  ;;  %v87_v55 = vld [vmem:[%s1074_s0 + $0x278] sm:$0x1]  ;;  %v94_v6 = vld [vmem:[%s1074_s0 + $0x2b0] sm:$0x1] }
  0x27   :  { %v795_v23 = vmax.f32 %v244_v61, %v245_v11  ;;  %v255_v24 = vrot.slane %v254_v12, 1  ;;  %v264_v25 = vmax.f32 %v262_v1, %v263_v13  ;;  %v281_v26 = vrot.slane %v280_v14, 4  ;;  %v88_v61 = vld [vmem:[%s1074_s0 + $0x280] sm:$0xff] }
  0x28   :  { %v273_v31 = vrot.slane %v272_v18, 2  ;;  %v290_v32 = vmax.f32 %v288_v19, %v289_v20  ;;  %v297_v33 = vmax.f32 %v72_v3, %v74_v9  ;;  %v307_v35 = vmax.f32 %v73_v8, %v75_v10  ;;  %v92_v11 = vld [vmem:[%s1074_s0 + $0x2a0] sm:$0xff]  ;;  %v91_v19 = vld [vmem:[%s1074_s0 + $0x298] sm:$0xff] }
  0x29   :  { %v809_v37 = vmax.f32 %v254_v12, %v255_v24  ;;  %v265_v38 = vrot.slane %v264_v25, 1  ;;  %v282_v39 = vmax.f32 %v280_v14, %v281_v26  ;;  %v299_v40 = vsel %vm138_vm0, %v78_v15, -inf  ;;  %v95_v20 = vld [vmem:[%s1074_s0 + $0x2b8] sm:$0x1] }
  0x2a   :  { %v274_v45 = vmax.f32 %v272_v18, %v273_v31  ;;  %v291_v46 = vrot.slane %v290_v32, 4  ;;  %v298_v47 = vmax.f32 %v297_v33, %v76_v21  ;;  %v308_v48 = vmax.f32 %v307_v35, %v77_v22  ;;  %v89_v18 = vld [vmem:[%s1074_s0 + $0x288] sm:$0xff]  ;;  %v98_v33 = vld [vmem:[%s1074_s0 + $0x2d0] sm:$0xff] }
  0x2b   :  { %v821_v49 = vmax.f32 %v264_v25, %v265_v38  ;;  %v283_v51 = vrot.slane %v282_v39, 2  ;;  %v309_v52 = vsel %vm138_vm0, %v79_v28, -inf  ;;  %v317_v53 = vmax.f32 %v80_v29, %v82_v30  ;;  %v93_v31 = vld [vmem:[%s1074_s0 + $0x2a8] sm:$0xff] }
  0x2c   :  { %v275_v57 = vrot.slane %v274_v45, 1  ;;  %v292_v58 = vmax.f32 %v290_v32, %v291_v46  ;;  %v300_v59 = vmax.f32 %v298_v47, %v299_v40  ;;  %v310_v60 = vmax.f32 %v308_v48, %v309_v52  ;;  %v96_v32 = vld [vmem:[%s1074_s0 + $0x2c0] sm:$0xff]  ;;  %v102_v40 = vld [vmem:[%s1074_s0 + $0x2f0] sm:$0x1] }
  0x2d   :  { %v284_v1 = vmax.f32 %v282_v39, %v283_v51  ;;  %v318_v2 = vmax.f32 %v317_v53, %v84_v42  ;;  %v319_v3 = vsel %vm138_vm0, %v86_v43, -inf  ;;  %v327_v5 = vmax.f32 %v81_v36, %v83_v41  ;;  %v100_v46 = vld [vmem:[%s1074_s0 + $0x2e0] sm:$0xff]  ;;  %v97_v53 = vld [vmem:[%s1074_s0 + $0x2c8] sm:$0xff] }
  0x2e   :  { %v840_v7 = vmax.f32 %v274_v45, %v275_v57  ;;  %v293_v8 = vrot.slane %v292_v58, 2  ;;  %v301_v9 = vrot.slane %v300_v59, 4  ;;  %v311_v10 = vrot.slane %v310_v60, 4 }
  0x2f   :  { %v285_v12 = vrot.slane %v284_v1, 1  ;;  %v320_v13 = vmax.f32 %v318_v2, %v319_v3  ;;  %v328_v14 = vmax.f32 %v327_v5, %v85_v54  ;;  %v329_v15 = vsel %vm138_vm0, %v87_v55, -inf  ;;  %v99_v54 = vld [vmem:[%s1074_s0 + $0x2d8] sm:$0xff]  ;;  %v104_v5 = vld [vmem:[%s1074_s0 + $0x300] sm:$0xff] }
  0x30   :  { %v294_v21 = vmax.f32 %v292_v58, %v293_v8  ;;  %v302_v22 = vmax.f32 %v300_v59, %v301_v9  ;;  %v312_v24 = vmax.f32 %v310_v60, %v311_v10  ;;  %v337_v25 = vmax.f32 %v88_v61, %v90_v0  ;;  %v101_v60 = vld [vmem:[%s1074_s0 + $0x2e8] sm:$0xff]  ;;  %v103_v3 = vld [vmem:[%s1074_s0 + $0x2f8] sm:$0x1] }
  0x31   :  { %v855_v26 = vmax.f32 %v284_v1, %v285_v12  ;;  %v321_v28 = vrot.slane %v320_v13, 4  ;;  %v330_v29 = vmax.f32 %v328_v14, %v329_v15  ;;  %v339_v30 = vsel %vm138_vm0, %v94_v6, -inf  ;;  %v106_v6 = vld [vmem:[%s1074_s0 + $0x310] sm:$0xff] }
  0x32   :  { %v295_v35 = vrot.slane %v294_v21, 1  ;;  %v303_v36 = vrot.slane %v302_v22, 2  ;;  %v313_v38 = vrot.slane %v312_v24, 2  ;;  %v338_v39 = vmax.f32 %v337_v25, %v92_v11  ;;  %v105_v25 = vld [vmem:[%s1074_s0 + $0x308] sm:$0xff] }
  0x33   :  { %v322_v41 = vmax.f32 %v320_v13, %v321_v28  ;;  %v331_v42 = vrot.slane %v330_v29, 4  ;;  %v347_v43 = vmax.f32 %v89_v18, %v91_v19  ;;  %v349_v45 = vsel %vm138_vm0, %v95_v20, -inf  ;;  %v108_v18 = vld [vmem:[%s1074_s0 + $0x320] sm:$0xff]  ;;  %v110_v19 = vld [vmem:[%s1074_s0 + $0x330] sm:$0x1]  ;;  %v107_v28 = vld [vmem:[%s1074_s0 + $0x318] sm:$0xff] }
  0x34   :  { %v874_v47 = vmax.f32 %v294_v21, %v295_v35  ;;  %v304_v48 = vmax.f32 %v302_v22, %v303_v36  ;;  %v314_v51 = vmax.f32 %v312_v24, %v313_v38  ;;  %v340_v52 = vmax.f32 %v338_v39, %v339_v30 }
  0x35   :  { %v323_v55 = vrot.slane %v322_v41, 2  ;;  %v332_v57 = vmax.f32 %v330_v29, %v331_v42  ;;  %v348_v58 = vmax.f32 %v347_v43, %v93_v31  ;;  %v357_v59 = vmax.f32 %v96_v32, %v98_v33  ;;  %v111_v33 = vld [vmem:[%s1074_s0 + $0x338] sm:$0x1]  ;;  %v114_v42 = vld [vmem:[%s1074_s0 + $0x350] sm:$0xff] }
  0x36   :  { %v305_v61 = vrot.slane %v304_v48, 1  ;;  %v315_v0 = vrot.slane %v314_v51, 1  ;;  %v341_v1 = vrot.slane %v340_v52, 4  ;;  %v359_v2 = vsel %vm138_vm0, %v102_v40, -inf  ;;  %v109_v40 = vld [vmem:[%s1074_s0 + $0x328] sm:$0xff] }
  0x37   :  { %v324_v8 = vmax.f32 %v322_v41, %v323_v55  ;;  %v333_v9 = vrot.slane %v332_v57, 2  ;;  %v350_v10 = vmax.f32 %v348_v58, %v349_v45  ;;  %v358_v11 = vmax.f32 %v357_v59, %v100_v46  ;;  %v112_v41 = vld [vmem:[%s1074_s0 + $0x340] sm:$0xff] }
  0x38   :  { %v895_v12 = vmax.f32 %v304_v48, %v305_v61  ;;  %v897_v13 = vmax.f32 %v314_v51, %v315_v0  ;;  %v342_v14 = vmax.f32 %v340_v52, %v341_v1  ;;  %v367_v15 = vmax.f32 %v97_v53, %v99_v54  ;;  %v118_v51 = vld [vmem:[%s1074_s0 + $0x370] sm:$0x1]  ;;  %v113_v0 = vld [vmem:[%s1074_s0 + $0x348] sm:$0xff]  ;;  %v115_v1 = vld [vmem:[%s1074_s0 + $0x358] sm:$0xff] }
  0x39   :  { %v325_v20 = vrot.slane %v324_v8, 1  ;;  %v334_v21 = vmax.f32 %v332_v57, %v333_v9  ;;  %v351_v22 = vrot.slane %v350_v10, 4  ;;  %v360_v24 = vmax.f32 %v358_v11, %v359_v2  ;;  %v116_v57 = vld [vmem:[%s1074_s0 + $0x360] sm:$0xff]  ;;  %v119_v2 = vld [vmem:[%s1074_s0 + $0x378] sm:$0x1] }
  0x3a   :  { %v343_v29 = vrot.slane %v342_v14, 2  ;;  %v368_v30 = vmax.f32 %v367_v15, %v101_v60  ;;  %v369_v31 = vsel %vm138_vm0, %v103_v3, -inf  ;;  %v377_v32 = vmax.f32 %v104_v5, %v106_v6  ;;  %v117_v15 = vld [vmem:[%s1074_s0 + $0x368] sm:$0xff] }
  0x3b   :  { %v915_v35 = vmax.f32 %v324_v8, %v325_v20  ;;  %v335_v36 = vrot.slane %v334_v21, 1  ;;  %v352_v38 = vmax.f32 %v350_v10, %v351_v22  ;;  %v361_v39 = vrot.slane %v360_v24, 4 }
  0x3c   :  { %v344_v43 = vmax.f32 %v342_v14, %v343_v29  ;;  %v370_v45 = vmax.f32 %v368_v30, %v369_v31  ;;  %v378_v46 = vmax.f32 %v377_v32, %v108_v18  ;;  %v379_v48 = vsel %vm138_vm0, %v110_v19, -inf  ;;  %v120_v18 = vld [vmem:[%s1074_s0 + $0x380] sm:$0xff]  ;;  %v122_v19 = vld [vmem:[%s1074_s0 + $0x390] sm:$0xff] }
  0x3d   :  { %v930_v52 = vmax.f32 %v334_v21, %v335_v36  ;;  %v353_v53 = vrot.slane %v352_v38, 2  ;;  %v362_v54 = vmax.f32 %v360_v24, %v361_v39  ;;  %v387_v55 = vmax.f32 %v105_v25, %v107_v28  ;;  %v126_v25 = vld [vmem:[%s1074_s0 + $0x3b0] sm:$0x1]  ;;  %v124_v32 = vld [vmem:[%s1074_s0 + $0x3a0] sm:$0xff] }
  0x3e   :  { %v345_v58 = vrot.slane %v344_v43, 1  ;;  %v371_v59 = vrot.slane %v370_v45, 4  ;;  %v380_v60 = vmax.f32 %v378_v46, %v379_v48  ;;  %v389_v61 = vsel %vm138_vm0, %v111_v33, -inf }
  0x3f   :  { %v354_v3 = vmax.f32 %v352_v38, %v353_v53  ;;  %v363_v5 = vrot.slane %v362_v54, 2  ;;  %v388_v6 = vmax.f32 %v387_v55, %v109_v40  ;;  %v397_v8 = vmax.f32 %v112_v41, %v114_v42  ;;  %v121_v40 = vld [vmem:[%s1074_s0 + $0x388] sm:$0xff]  ;;  %v123_v41 = vld [vmem:[%s1074_s0 + $0x398] sm:$0xff] }
  0x40   :  { %v945_v9 = vmax.f32 %v344_v43, %v345_v58  ;;  %v372_v10 = vmax.f32 %v370_v45, %v371_v59  ;;  %v381_v11 = vrot.slane %v380_v60, 4  ;;  %v399_v14 = vsel %vm138_vm0, %v118_v51, -inf  ;;  %v127_v42 = vld [vmem:[%s1074_s0 + $0x3b8] sm:$0x1]  ;;  %v128_v58 = vld [vmem:[%s1074_s0 + $0x3c0] sm:$0xff]  ;;  %v130_v59 = vld [vmem:[%s1074_s0 + $0x3d0] sm:$0xff] }
  0x41   :  { %v355_v20 = vrot.slane %v354_v3, 1  ;;  %v364_v21 = vmax.f32 %v362_v54, %v363_v5  ;;  %v390_v22 = vmax.f32 %v388_v6, %v389_v61  ;;  %v398_v24 = vmax.f32 %v397_v8, %v116_v57  ;;  %v125_v57 = vld [vmem:[%s1074_s0 + $0x3a8] sm:$0xff] }
  0x42   :  { %v373_v28 = vrot.slane %v372_v10, 2  ;;  %v382_v29 = vmax.f32 %v380_v60, %v381_v11  ;;  %v407_v30 = vmax.f32 %v113_v0, %v115_v1  ;;  %v409_v31 = vsel %vm138_vm0, %v119_v2, -inf  ;;  %v134_v2 = vld [vmem:[%s1074_s0 + $0x3f0] sm:$0x1] }
  0x43   :  { %v964_v33 = vmax.f32 %v354_v3, %v355_v20  ;;  %v365_v36 = vrot.slane %v364_v21, 1  ;;  %v391_v38 = vrot.slane %v390_v22, 4  ;;  %v400_v39 = vmax.f32 %v398_v24, %v399_v14  ;;  %v131_v20 = vld [vmem:[%s1074_s0 + $0x3d8] sm:$0xff] }
  0x44   :  { %v374_v43 = vmax.f32 %v372_v10, %v373_v28  ;;  %v383_v45 = vrot.slane %v382_v29, 2  ;;  %v408_v46 = vmax.f32 %v407_v30, %v117_v15  ;;  %v417_v48 = vmax.f32 %v120_v18, %v122_v19  ;;  %v132_v10 = vld [vmem:[%s1074_s0 + $0x3e0] sm:$0xff]  ;;  %v129_v19 = vld [vmem:[%s1074_s0 + $0x3c8] sm:$0xff] }
  0x45   :  { %v975_v51 = vmax.f32 %v364_v21, %v365_v36  ;;  %v392_v53 = vmax.f32 %v390_v22, %v391_v38  ;;  %v401_v54 = vrot.slane %v400_v39, 4  ;;  %v419_v55 = vsel %vm138_vm0, %v126_v25, -inf  ;;  %v135_v21 = vld [vmem:[%s1074_s0 + $0x3f8] sm:$0x1]  ;;  %v133_v36 = vld [vmem:[%s1074_s0 + $0x3e8] sm:$0xff] }
  0x46   :  { %v375_v60 = vrot.slane %v374_v43, 1  ;;  %v384_v61 = vmax.f32 %v382_v29, %v383_v45  ;;  %v410_v0 = vmax.f32 %v408_v46, %v409_v31  ;;  %v418_v1 = vmax.f32 %v417_v48, %v124_v32 }
  0x47   :  { %v393_v3 = vrot.slane %v392_v53, 2  ;;  %v402_v5 = vmax.f32 %v400_v39, %v401_v54  ;;  %v427_v6 = vmax.f32 %v121_v40, %v123_v41  ;;  %v429_v8 = vsel %vm138_vm0, %v127_v42, -inf }
  0x48   :  { %v994_v11 = vmax.f32 %v374_v43, %v375_v60  ;;  %v385_v14 = vrot.slane %v384_v61, 1  ;;  %v411_v15 = vrot.slane %v410_v0, 4  ;;  %v420_v18 = vmax.f32 %v418_v1, %v419_v55 }
  0x49   :  { %v394_v22 = vmax.f32 %v392_v53, %v393_v3  ;;  %v403_v24 = vrot.slane %v402_v5, 2  ;;  %v428_v25 = vmax.f32 %v427_v6, %v125_v57  ;;  %v437_v28 = vmax.f32 %v128_v58, %v130_v59 }
  0x4a   :  { %v386_v29 = vmax.f32 %v384_v61, %v385_v14  ;;  %v412_v30 = vmax.f32 %v410_v0, %v411_v15  ;;  %v421_v31 = vrot.slane %v420_v18, 4  ;;  %v439_v32 = vsel %vm138_vm0, %v134_v2, -inf }
  0x4b   :  { %v395_v38 = vrot.slane %v394_v22, 1  ;;  %v404_v39 = vmax.f32 %v402_v5, %v403_v24  ;;  %v430_v40 = vmax.f32 %v428_v25, %v429_v8  ;;  %v438_v41 = vmax.f32 %v437_v28, %v132_v10 }
  0x4c   :  { %v413_v42 = vrot.slane %v412_v30, 2  ;;  %v422_v43 = vmax.f32 %v420_v18, %v421_v31  ;;  %v447_v45 = vmax.f32 %v129_v19, %v131_v20  ;;  %v449_v46 = vsel %vm138_vm0, %v135_v21, -inf }
  0x4d   :  { %v396_v48 = vmax.f32 %v394_v22, %v395_v38  ;;  %v405_v53 = vrot.slane %v404_v39, 1  ;;  %v431_v54 = vrot.slane %v430_v40, 4  ;;  %v440_v55 = vmax.f32 %v438_v41, %v439_v32 }
  0x4e   :  { %v414_v57 = vmax.f32 %v412_v30, %v413_v42  ;;  %v423_v58 = vrot.slane %v422_v43, 2  ;;  %v448_v59 = vmax.f32 %v447_v45, %v133_v36  ;;  %v490_v60 = vsel %vm489_vm1, %v687_v44, %v667_v27 }
  0x4f   :  { %v406_v61 = vmax.f32 %v404_v39, %v405_v53  ;;  %v432_v0 = vmax.f32 %v430_v40, %v431_v54  ;;  %v441_v1 = vrot.slane %v440_v55, 4  ;;  %v492_v2 = vsel %vm491_vm2, %v710_v62, %v490_v60 }
  0x50   :  { %v415_v3 = vrot.slane %v414_v57, 1  ;;  %v424_v5 = vmax.f32 %v422_v43, %v423_v58  ;;  %v450_v6 = vmax.f32 %v448_v59, %v449_v46  ;;  %v494_v8 = vsel %vm493_vm3, %v734_v16, %v492_v2 }
  0x51   :  { %v433_v10 = vrot.slane %v432_v0, 2  ;;  %v442_v14 = vmax.f32 %v440_v55, %v441_v1  ;;  %v496_v15 = vsel %vm495_vm4, %v771_v4, %v494_v8  ;;  %v503_v27 = vsel %vm489_vm1, %v701_v56, %v679_v34 }
  0x52   :  { %v416_v44 = vmax.f32 %v414_v57, %v415_v3  ;;  %v425_v18 = vrot.slane %v424_v5, 1  ;;  %v451_v19 = vrot.slane %v450_v6, 4  ;;  %v498_v62 = vsel %vm497_vm5, %v795_v23, %v496_v15 }
  0x53   :  { %v434_v20 = vmax.f32 %v432_v0, %v433_v10  ;;  %v443_v21 = vrot.slane %v442_v14, 2  ;;  %v500_v16 = vsel %vm499_vm6, %v821_v49, %v498_v62  ;;  %v504_v22 = vsel %vm491_vm2, %v712_v63, %v503_v27 }
  0x54   :  { %v426_v24 = vmax.f32 %v424_v5, %v425_v18  ;;  %v452_v4 = vmax.f32 %v450_v6, %v451_v19  ;;  %v502_v25 = vsel %vm501_vm7, %v855_v26, %v500_v16  ;;  %v505_v34 = vsel %vm493_vm3, %v760_v50, %v504_v22 }
  0x55   :  { %v435_v56 = vrot.slane %v434_v20, 1  ;;  %v444_v28 = vmax.f32 %v442_v14, %v443_v21  ;;  %v506_v23 = vsel %vm495_vm4, %v786_v17, %v505_v34  ;;  %v510_v49 = vsel %vm489_vm1, %v915_v35, %v895_v12  ;;  %528 = vst [vmem:[%s1075_s1] sm:$0xff] %v502_v25 }
  0x56   :  { %v453_v63 = vrot.slane %v452_v4, 2  ;;  %v507_v26 = vsel %vm497_vm5, %v809_v37, %v506_v23  ;;  %v511_v50 = vsel %vm491_vm2, %v945_v9, %v510_v49  ;;  %v517_v30 = vsel %vm489_vm1, %v930_v52, %v897_v13 }
  0x57   :  { %v436_v17 = vmax.f32 %v434_v20, %v435_v56  ;;  %v445_v31 = vrot.slane %v444_v28, 1  ;;  %v508_v12 = vsel %vm499_vm6, %v840_v7, %v507_v26  ;;  %v512_v35 = vsel %vm493_vm3, %v975_v51, %v511_v50 }
  0x58   :  { %v454_v32 = vmax.f32 %v452_v4, %v453_v63  ;;  %v509_v36 = vsel %vm501_vm7, %v874_v47, %v508_v12  ;;  %v513_v37 = vsel %vm495_vm4, %v386_v29, %v512_v35  ;;  %v518_v9 = vsel %vm491_vm2, %v964_v33, %v517_v30 }
  0x59   :  { %v446_v38 = vmax.f32 %v444_v28, %v445_v31  ;;  %v514_v13 = vsel %vm497_vm5, %v406_v61, %v513_v37  ;;  %v519_v52 = vsel %vm493_vm3, %v994_v11, %v518_v9  ;;  %529 = vst [vmem:[%s1075_s1 + $0x8] sm:$0xff] %v509_v36 }
  0x5a   :  { %v455_v7 = vrot.slane %v454_v32, 1  ;;  %v515_v51 = vsel %vm499_vm6, %v426_v24, %v514_v13  ;;  %v520_v47 = vsel %vm495_vm4, %v396_v48, %v519_v52 }
  0x5b   :  { %v516_v29 = vsel %vm501_vm7, %v446_v38, %v515_v51  ;;  %v521_v39 = vsel %vm497_vm5, %v416_v44, %v520_v47 }
  0x5c   :  { %v456_v33 = vmax.f32 %v454_v32, %v455_v7  ;;  %v522_v40 = vsel %vm499_vm6, %v436_v17, %v521_v39  ;;  %530 = vst [vmem:[%s1075_s1 + $0x10] sm:$0xff] %v516_v29 }
  0x5e   :  { %v523_v11 = vsel %vm501_vm7, %v456_v33, %v522_v40 }
  0x5f   :  { %531 = vst [vmem:[%s1075_s1 + $0x18] sm:$0xff] %v523_v11 }

// kernel: which_podcaster_cnn_forward.6
= control target key start
LH: loop header
LB: loop body
LE: loop exit
PB: predicated region body
PF: predicated region fallthrough
CT: control target
= control target key end

     0   :  { %v592_v1 = vmov 0.0   ;;  %vm593_vm0 = vmmov 0   ;;  %vm254_vm1 = vcmask 261120   ;;  %vm423_vm2 = vcmask 523264   ;;  %s777_s1 = inlined_call_operand.vmem [shape: bf16[288,64], index: 1, kind: input, shape index: {}]   ;;  %s778_s0 = inlined_call_operand.vmem [shape: bf16[72,288], index: 0, kind: input, shape index: {}]   ;;  %s779_s2 = inlined_call_operand.vmem [shape: f32[1,64], index: 2, kind: input, shape index: {}]   ;;  %s780_s3 = inlined_call_operand.vmem [shape: f32[72,64], index: 3, kind: output, shape index: {}]  }
   0x1   :  { %v555_v0 = vld [vmem:[%s777_s1 + $0x40] sm:$0xff]   ;;  %529 = vmatprep.subr.bf16.mxu1 %v592_v1  ;;  %533 = vmatprep.mubr.msk.bf16.mxu1 %vm593_vm0, %v592_v1  ;;  %v557_v3 = vld [vmem:[%s777_s1 + $0x48] sm:$0xff]   ;;  %v559_v5 = vld [vmem:[%s777_s1 + $0x50] sm:$0xff]  }
   0x2   :  { %v556_v2 = vld [vmem:[%s777_s1] sm:$0xff]   ;;  %476 = vmatprep.subr.bf16.mxu0 %v555_v0  ;;  %v558_v4 = vld [vmem:[%s777_s1 + $0x8] sm:$0xff]   ;;  %v560_v6 = vld [vmem:[%s777_s1 + $0x10] sm:$0xff]  }
   0x3   :  { %477 = vmatpush3.bf16.msra.mxu0 %v556_v2  ;;  %v561_v7 = vld [vmem:[%s777_s1 + $0x58] sm:$0xff]   ;;  %v563_v9 = vld [vmem:[%s777_s1 + $0x60] sm:$0xff]   ;;  %v565_v12 = vld [vmem:[%s777_s1 + $0x68] sm:$0xff]  }
   0x4   :  { %478 = vmatprep.subr.bf16.mxu0 %v557_v3  ;;  %v562_v8 = vld [vmem:[%s777_s1 + $0x18] sm:$0xff]   ;;  %v569_v10 = vld [vmem:[%s777_s1 + $0x80] sm:$0xff]   ;;  %v566_v13 = vld [vmem:[%s777_s1 + $0x28] sm:$0xff]  }
   0x5   :  { %v564_v11 = vld [vmem:[%s777_s1 + $0x20] sm:$0xff]   ;;  %530 = vmatpush3.bf16.msra.mxu1 %v569_v10  ;;  %v567_v14 = vld [vmem:[%s777_s1 + $0x70] sm:$0xff]   ;;  %v575_v16 = vld [vmem:[%s777_s1 + $0x88] sm:$0xff]  }
   0x6   :  { %531 = vmatprep.subr.bf16.mxu1 %v592_v1  ;;  %v574_v15 = vld [vmem:[%s778_s0 + $0x4] ss:$12 sps:$4 sm:$0xff]   ;;  %v576_v17 = vld [vmem:[%s778_s0 + $0x8] ss:$12 sps:$4 sm:$0xff]   ;;  %v570_v19 = vld [vmem:[%s777_s1 + $0x78] sm:$0xff]  }
   0x7   :  { %479 = vmatpush3.bf16.msra.mxu0 %v558_v4  ;;  %302 = vmatprep.mubr.bf16.mxu0 %v574_v15  ;;  %v568_v18 = vld [vmem:[%s777_s1 + $0x30] sm:$0xff]   ;;  %v571_v20 = vld [vmem:[%s777_s1 + $0x38] sm:$0xff]   ;;  %v580_v21 = vld [vmem:[%s778_s0 + $0x20] ss:$12 sps:$4 sm:$0xff]  }
   0x8   :  { %480 = vmatprep.subr.bf16.mxu0 %v559_v5  ;;  %v572_v22 = vld [vmem:[%s778_s0] ss:$12 sps:$4 sm:$0xff]   ;;  %v577_v23 = vld [vmem:[%s778_s0 + $0x1c] ss:$12 sps:$4 sm:$0xff]   ;;  %v584_v24 = vld [vmem:[%s778_s0 + $0x38] ss:$12 sps:$4 sm:$0xff]  }
   0x9   :  { %532 = vmatpush3.bf16.msra.mxu1 %v575_v16  ;;  %v579_v25 = vld [vmem:[%s778_s0 + $0x18] ss:$12 sps:$4 sm:$0xff]   ;;  %v581_v26 = vld [vmem:[%s778_s0 + $0x34] ss:$12 sps:$4 sm:$0xff]   ;;  %v588_v27 = vld [vmem:[%s778_s0 + $0x50] ss:$12 sps:$4 sm:$0xff]  }
   0xa   :  { %v583_v28 = vld [vmem:[%s778_s0 + $0x30] ss:$12 sps:$4 sm:$0xff]   ;;  %v585_v29 = vld [vmem:[%s778_s0 + $0x4c] ss:$12 sps:$4 sm:$0xff]   ;;  %v31_v30 = vld [vmem:[%s778_s0 + $0x60] sm:$0xff] }
   0xb   :  { %481 = vmatpush3.bf16.msra.mxu0 %v560_v6  ;;  %v591_v31 = vld [vmem:[%s778_s0 + $0x68] ss:$0 sps:$4 sm:$0xff]   ;;  %v451_v33 = vcombine.high %v31_v30, %v31_v30  ;;  %v450_v34 = vcombine.low %v31_v30, %v31_v30  ;;  %v730_v44 = vld [vmem:[%s779_s2] ss:$0 sm:$0xff] }
   0xc   :  { %482 = vmatprep.subr.bf16.mxu0 %v561_v7  ;;  %534 = vmatmul.mubr.msk.bf16.vlgmr.msra.gmra.mrb[0].mxu1 %vm254_vm1, %v576_v17  ;;  %v587_v32 = vld [vmem:[%s778_s0 + $0x48] ss:$12 sps:$4 sm:$0xff]  }
   0xd   :  { %537 = vmatprep.mubr.msk.bf16.mxu1 %vm593_vm0, %v592_v1 }
   0xf   :  { %483 = vmatpush3.bf16.msra.mxu0 %v562_v8 }
  0x10   :  { %484 = vmatprep.subr.bf16.mxu0 %v563_v9 }
  0x13   :  { %485 = vmatpush3.bf16.msra.mxu0 %v564_v11 }
  0x14   :  { %486 = vmatprep.subr.bf16.mxu0 %v565_v12  ;;  %538 = vmatmul.mubr.msk.bf16.gmra.mrb[4].mxu1 %vm254_vm1, %v580_v21 }
  0x15   :  { %541 = vmatprep.mubr.msk.bf16.mxu1 %vm593_vm0, %v592_v1 }
  0x17   :  { %487 = vmatpush3.bf16.msra.mxu0 %v566_v13 }
  0x18   :  { %488 = vmatprep.subr.bf16.mxu0 %v567_v14 }
  0x1b   :  { %489 = vmatpush3.bf16.msra.mxu0 %v568_v18 }
  0x1c   :  { %490 = vmatprep.subr.bf16.mxu0 %v570_v19  ;;  %542 = vmatmul.mubr.msk.bf16.gmra.mrb[8].mxu1 %vm254_vm1, %v584_v24 }
  0x1d   :  { %545 = vmatprep.mubr.msk.bf16.mxu1 %vm593_vm0, %v592_v1 }
  0x1f   :  { %491 = vmatpush3.bf16.msra.mxu0 %v571_v20 }
  0x22   :  { %303 = vmatmul.mubr.bf16.vlgmr.msra.gmra.mrb[0].mxu0 %v572_v22 }
  0x23   :  { %310 = vmatprep.mubr.bf16.mxu0 %v577_v23 }
  0x24   :  { %546 = vmatmul.mubr.msk.bf16.gmra.mrb[12].mxu1 %vm254_vm1, %v588_v27 }
  0x25   :  { %549 = vmatprep.mubr.msk.bf16.mxu1 %vm593_vm0, %v592_v1 }
  0x2a   :  { %311 = vmatmul.mubr.bf16.gmra.mrb[4].mxu0 %v579_v25 }
  0x2b   :  { %318 = vmatprep.mubr.bf16.mxu0 %v581_v26 }
  0x2c   :  { %550 = vmatmul.mubr.msk.bf16.gmra.mrb[16].mxu1 %vm254_vm1, %v591_v31 }
  0x32   :  { %319 = vmatmul.mubr.bf16.gmra.mrb[8].mxu0 %v583_v28 }
  0x33   :  { %326 = vmatprep.mubr.bf16.mxu0 %v585_v29 }
  0x3a   :  { %327 = vmatmul.mubr.bf16.gmra.mrb[12].mxu0 %v587_v32 }
  0x3b   :  { %334 = vmatprep.mubr.bf16.mxu0 %v451_v33 }
  0x42   :  { %335 = vmatmul.mubr.bf16.gmra.mrb[16].mxu0 %v450_v34 }
  0xdf   :  { %v376_v35 = vpop.f32.mrb[0].mxu1 }
  0xe0   :  { %v535_v36 = vpop.f32.mrb[1].mxu1 }
  0xe1   :  { %v379_v37 = vpop.f32.mrb[2].mxu1 }
  0xe2   :  { %v536_v38 = vpop.f32.mrb[3].mxu1 }
  0xe7   :  { %v384_v39 = vpop.f32.mrb[4].mxu1 }
  0xe8   :  { %v539_v40 = vpop.f32.mrb[5].mxu1 }
  0xe9   :  { %v387_v42 = vpop.f32.mrb[6].mxu1 }
  0xea   :  { %v540_v45 = vpop.f32.mrb[7].mxu1 }
  0xef   :  { %v392_v53 = vpop.f32.mrb[8].mxu1 }
  0xf0   :  { %v543_v54 = vpop.f32.mrb[9].mxu1 }
  0xf1   :  { %v395_v58 = vpop.f32.mrb[10].mxu1 }
  0xf2   :  { %v544_v60 = vpop.f32.mrb[11].mxu1 }
  0xf5   :  { %v492_v41 = vpop.f32.mrb[0].mxu0 }
  0xf6   :  { %v493_v43 = vpop.f32.mrb[1].mxu0 }
  0xf7   :  { %v494_v46 = vadd.f32 %v493_v43, %v492_v41  ;;  %v495_v47 = vpop.f32.mrb[2].mxu0  ;;  %v400_v5 = vpop.f32.mrb[12].mxu1 }
  0xf8   :  { %v496_v48 = vpop.f32.mrb[3].mxu0  ;;  %v547_v6 = vpop.f32.mrb[13].mxu1 }
  0xf9   :  { %v305_v49 = vadd.f32 %v494_v46, %v730_v44  ;;  %v497_v50 = vadd.f32 %v496_v48, %v495_v47  ;;  %v403_v10 = vpop.f32.mrb[14].mxu1 }
  0xfa   :  { %v548_v12 = vpop.f32.mrb[15].mxu1 }
  0xfb   :  { %v377_v51 = vadd.f32 %v376_v35, %v305_v49  ;;  %v308_v52 = vadd.f32 %v497_v50, %v730_v44 }
  0xfd   :  { %v414_v55 = vmax.f32 %v377_v51, 0.0  ;;  %v380_v56 = vadd.f32 %v379_v37, %v308_v52  ;;  %v498_v57 = vpop.f32.mrb[4].mxu0 }
  0xfe   :  { %v499_v59 = vpop.f32.mrb[5].mxu0 }
  0xff   :  { %424 = vst.msk [vmem:[%s780_s3] sm:$0xff] %vm423_vm2, %v414_v55  ;;  %v415_v61 = vmax.f32 %v380_v56, 0.0  ;;  %v500_v62 = vadd.f32 %v499_v59, %v498_v57  ;;  %v501_v63 = vpop.f32.mrb[6].mxu0  ;;  %v408_v21 = vpop.f32.mrb[16].mxu1 }
 0x100   :  { %v502_v0 = vpop.f32.mrb[7].mxu0  ;;  %v551_v22 = vpop.f32.mrb[17].mxu1 }
 0x101   :  { %425 = vst.msk [vmem:[%s780_s3 + $0x8] sm:$0xff] %vm423_vm2, %v415_v61  ;;  %v313_v1 = vadd.f32 %v500_v62, %v730_v44  ;;  %v503_v2 = vadd.f32 %v502_v0, %v501_v63  ;;  %v411_v26 = vpop.f32.mrb[18].mxu1 }
 0x102   :  { %v552_v28 = vpop.f32.mrb[19].mxu1 }
 0x103   :  { %v385_v3 = vadd.f32 %v384_v39, %v313_v1  ;;  %v316_v4 = vadd.f32 %v503_v2, %v730_v44 }
 0x105   :  { %v416_v7 = vmax.f32 %v385_v3, 0.0  ;;  %v388_v8 = vadd.f32 %v387_v42, %v316_v4  ;;  %v504_v9 = vpop.f32.mrb[8].mxu0 }
 0x106   :  { %v505_v11 = vpop.f32.mrb[9].mxu0 }
 0x107   :  { %426 = vst.msk [vmem:[%s780_s3 + $0x10] sm:$0xff] %vm423_vm2, %v416_v7  ;;  %v417_v13 = vmax.f32 %v388_v8, 0.0  ;;  %v506_v14 = vadd.f32 %v505_v11, %v504_v9  ;;  %v507_v15 = vpop.f32.mrb[10].mxu0 }
 0x108   :  { %v508_v16 = vpop.f32.mrb[11].mxu0 }
 0x109   :  { %427 = vst.msk [vmem:[%s780_s3 + $0x18] sm:$0xff] %vm423_vm2, %v417_v13  ;;  %v321_v17 = vadd.f32 %v506_v14, %v730_v44  ;;  %v509_v18 = vadd.f32 %v508_v16, %v507_v15 }
 0x10b   :  { %v393_v19 = vadd.f32 %v392_v53, %v321_v17  ;;  %v324_v20 = vadd.f32 %v509_v18, %v730_v44 }
 0x10d   :  { %v418_v23 = vmax.f32 %v393_v19, 0.0  ;;  %v396_v24 = vadd.f32 %v395_v58, %v324_v20  ;;  %v510_v25 = vpop.f32.mrb[12].mxu0 }
 0x10e   :  { %v511_v27 = vpop.f32.mrb[13].mxu0 }
 0x10f   :  { %428 = vst.msk [vmem:[%s780_s3 + $0x20] sm:$0xff] %vm423_vm2, %v418_v23  ;;  %v419_v29 = vmax.f32 %v396_v24, 0.0  ;;  %v512_v30 = vadd.f32 %v511_v27, %v510_v25  ;;  %v513_v31 = vpop.f32.mrb[14].mxu0 }
 0x110   :  { %v514_v32 = vpop.f32.mrb[15].mxu0 }
 0x111   :  { %429 = vst.msk [vmem:[%s780_s3 + $0x28] sm:$0xff] %vm423_vm2, %v419_v29  ;;  %v329_v33 = vadd.f32 %v512_v30, %v730_v44  ;;  %v515_v34 = vadd.f32 %v514_v32, %v513_v31 }
 0x113   :  { %v401_v35 = vadd.f32 %v400_v5, %v329_v33  ;;  %v332_v36 = vadd.f32 %v515_v34, %v730_v44 }
 0x115   :  { %v420_v37 = vmax.f32 %v401_v35, 0.0  ;;  %v404_v38 = vadd.f32 %v403_v10, %v332_v36  ;;  %v516_v39 = vpop.f32.mrb[16].mxu0 }
 0x116   :  { %v517_v40 = vpop.f32.mrb[17].mxu0 }
 0x117   :  { %430 = vst.msk [vmem:[%s780_s3 + $0x30] sm:$0xff] %vm423_vm2, %v420_v37  ;;  %v421_v41 = vmax.f32 %v404_v38, 0.0  ;;  %v518_v42 = vadd.f32 %v517_v40, %v516_v39  ;;  %v519_v43 = vpop.f32.mrb[18].mxu0 }
 0x118   :  { %v520_v45 = vpop.f32.mrb[19].mxu0 }
 0x119   :  { %431 = vst.msk [vmem:[%s780_s3 + $0x38] sm:$0xff] %vm423_vm2, %v421_v41  ;;  %v337_v46 = vadd.f32 %v518_v42, %v730_v44 }
 0x11b   :  { %v409_v47 = vadd.f32 %v408_v21, %v337_v46 }
 0x11d   :  { %v422_v48 = vmax.f32 %v409_v47, 0.0 }
 0x11f   :  { %432 = vst.msk [vmem:[%s780_s3 + $0x40] sm:$0xff] %vm423_vm2, %v422_v48 }

// kernel: tile.13
= control target key start
LH: loop header
LB: loop body
LE: loop exit
PB: predicated region body
PF: predicated region fallthrough
CT: control target
= control target key end

     0   :  { %s22_s0 = inlined_call_operand.vmem [shape: f32[64], index: 0, kind: input, shape index: {}]   ;;  %s23_s1 = inlined_call_operand.vmem [shape: f32[4,64], index: 1, kind: output, shape index: {}]  }
   0x1   :  { %v4_v0 = vld [vmem:[%s22_s0] ss:$0 sm:$0xff] }
   0x2   :  { %5 = vst [vmem:[%s23_s1] sm:$0xf] %v4_v0 }

// kernel: tile.14
= control target key start
LH: loop header
LB: loop body
LE: loop exit
PB: predicated region body
PF: predicated region fallthrough
CT: control target
= control target key end

     0   :  { %s6_s8 = smov 3  ;;  %vm8_vm0 = vcmask 523264   ;;  %s30_s9 = smov 64   ;;  %vm15_vm1 = vcmask 1048064   ;;  %s50_s0 = inlined_call_operand.vmem [shape: f32[4,64], index: 0, kind: input, shape index: {}]   ;;  %s51_s1 = inlined_call_operand.vmem [shape: f32[1,256], index: 1, kind: output, shape index: {}]  }
   0x1   :  { %v4_v0 = vld [vmem:[%s50_s0] sm:$0xf]  ;;  %s11_s0 = smov 3 }
   0x2   :  { %5 = vst [vmem:[#allocation1] sm:$0xf] %v4_v0 }
   0x9   :  { %v12_v1 = vld [vmem:[#allocation1 + $0x1] ss:$2 sm:%s11_s0]   ;;  %v7_v2 = vld [vmem:[#allocation1] ss:$2 sm:%s6_s8]  }
   0xa   :  { %13 = vrot.lane.b32.xlu0 %v12_v1, %s30_s9  ;;  %9 = vst.msk [vmem:[#allocation0] ss:$8 sm:$0x3] %vm8_vm0, %v7_v2  }
  0x7c   :  { %v14_v3 = vpop.permute.xlu0 %13  }
  0x7d   :  { %16 = vst.msk [vmem:[#allocation0] ss:$8 sm:$0x3] %vm15_vm1, %v14_v3  }
  0x84   :  { %v20_v4 = vld [vmem:[#allocation0] sm:$0x1]  ;;  %v24_v5 = vld [vmem:[#allocation0 + $0x8] sm:$0x1] }
  0x85   :  { %22 = vst [vmem:[%s51_s1] sm:$0x1] %v20_v4  ;;  %28 = vst [vmem:[%s51_s1 + $0x1] sm:$0x1] %v24_v5 }

// kernel: which_podcaster_cnn_forward.7
= control target key start
LH: loop header
LB: loop body
LE: loop exit
PB: predicated region body
PF: predicated region fallthrough
CT: control target
= control target key end

     0   :  { %vm42_vm0 = vcmask 1040384   ;;  %v77_v62 = vlaneseq  ;;  %vm294_vm1 = vcmask 1041409   ;;  %s3105_s0 = inlined_call_operand.vmem [shape: f32[2,9,256], index: 0, kind: input, shape index: {}]   ;;  %s3106_s1 = inlined_call_operand.vmem [shape: f32[1,256], index: 1, kind: input, shape index: {}]   ;;  %s3107_s2 = inlined_call_operand.vmem [shape: f32[1,256], index: 2, kind: input, shape index: {}]   ;;  %s3108_s3 = inlined_call_operand.vmem [shape: bf16[256,1024], index: 3, kind: input, shape index: {}]   ;;  %s3109_s4 = inlined_call_operand.vmem [shape: f32[1,1024], index: 4, kind: input, shape index: {}]   ;;  %s3110_s5 = inlined_call_operand.vmem [shape: bf16[1024,128], index: 5, kind: input, shape index: {}]   ;;  %s3111_s6 = inlined_call_operand.vmem [shape: f32[1,128], index: 6, kind: input, shape index: {}]   ;;  %s3112_s7 = inlined_call_operand.vmem [shape: bf16[128,2], index: 7, kind: input, shape index: {}]   ;;  %s3113_s8 = inlined_call_operand.vmem [shape: f32[1,2], index: 8, kind: input, shape index: {}]   ;;  %s3114_s9 = inlined_call_operand.hbm [shape: f32[2,2], index: 9, kind: output, shape index: {}]  }
   0x1   :  { %v115_v0 = vld [vmem:[%s3108_s3] sm:$0xff]  ;;  %v116_v2 = vld [vmem:[%s3108_s3 + $0x8] sm:$0xff]  ;;  %v37_v56 = vld [vmem:[%s3105_s0 + $0x18] sm:$0x1] }
   0x2   :  { %v119_v1 = vld [vmem:[%s3108_s3 + $0x20] sm:$0xff]  ;;  %v120_v4 = vld [vmem:[%s3108_s3 + $0x28] sm:$0xff]  ;;  %v41_v60 = vld [vmem:[%s3105_s0 + $0x38] sm:$0x1]  ;;  %v51_v61 = vsel %vm42_vm0, %v37_v56, -inf }
   0x3   :  { %v1932_v3 = vcombine.high %v115_v0, %v119_v1  ;;  %v1931_v5 = vcombine.low %v115_v0, %v119_v1  ;;  %v123_v6 = vld [vmem:[%s3108_s3 + $0x40] sm:$0xff]  ;;  %v1934_v8 = vcombine.high %v116_v2, %v120_v4  ;;  %v1933_v9 = vcombine.low %v116_v2, %v120_v4  ;;  %v124_v11 = vld [vmem:[%s3108_s3 + $0x48] sm:$0xff] }
   0x4   :  { %v127_v7 = vld [vmem:[%s3108_s3 + $0x60] sm:$0xff]  ;;  %v128_v12 = vld [vmem:[%s3108_s3 + $0x68] sm:$0xff]  ;;  %v67_v1 = vsel %vm42_vm0, %v41_v60, -inf }
   0x5   :  { %v1940_v10 = vcombine.high %v123_v6, %v127_v7  ;;  %v131_v13 = vld [vmem:[%s3108_s3 + $0x80] sm:$0xff]  ;;  %942 = vmatprep.subr.bf16.mxu0 %v1932_v3  ;;  %v1942_v14 = vcombine.high %v124_v11, %v128_v12  ;;  %v132_v16 = vld [vmem:[%s3108_s3 + $0x88] sm:$0xff]  ;;  %983 = vmatprep.subr.bf16.mxu1 %v1934_v8  ;;  %v1939_v18 = vcombine.low %v123_v6, %v127_v7  ;;  %v36_v3 = vld [vmem:[%s3105_s0 + $0x10] sm:$0x1] }
   0x6   :  { %v135_v15 = vld [vmem:[%s3108_s3 + $0xa0] sm:$0xff]  ;;  %v136_v17 = vld [vmem:[%s3108_s3 + $0xa8] sm:$0xff]  ;;  %943 = vmatpush1.bf16.msra.mxu0 %v1931_v5  ;;  %984 = vmatpush1.bf16.msra.mxu1 %v1933_v9  ;;  %v1941_v19 = vcombine.low %v124_v11, %v128_v12  ;;  %v40_v8 = vld [vmem:[%s3105_s0 + $0x30] sm:$0x1]  ;;  %v43_v9 = vsel %vm42_vm0, %v36_v3, -inf }
   0x7   :  { %944 = vmatprep.subr.bf16.mxu0 %v1940_v10  ;;  %v1948_v20 = vcombine.high %v131_v13, %v135_v15  ;;  %985 = vmatprep.subr.bf16.mxu1 %v1942_v14  ;;  %v1950_v21 = vcombine.high %v132_v16, %v136_v17  ;;  %v139_v22 = vld [vmem:[%s3108_s3 + $0xc0] sm:$0xff]  ;;  %v140_v24 = vld [vmem:[%s3108_s3 + $0xc8] sm:$0xff]  ;;  %v1947_v26 = vcombine.low %v131_v13, %v135_v15  ;;  %v59_v13 = vsel %vm42_vm0, %v40_v8, -inf }
   0x8   :  { %v143_v23 = vld [vmem:[%s3108_s3 + $0xe0] sm:$0xff]  ;;  %v144_v25 = vld [vmem:[%s3108_s3 + $0xe8] sm:$0xff]  ;;  %v1949_v27 = vcombine.low %v132_v16, %v136_v17 }
   0x9   :  { %v1956_v28 = vcombine.high %v139_v22, %v143_v23  ;;  %v1958_v29 = vcombine.high %v140_v24, %v144_v25  ;;  %v147_v30 = vld [vmem:[%s3108_s3 + $0x100] sm:$0xff]  ;;  %v148_v32 = vld [vmem:[%s3108_s3 + $0x108] sm:$0xff]  ;;  %v1955_v34 = vcombine.low %v139_v22, %v143_v23  ;;  %v1957_v35 = vcombine.low %v140_v24, %v144_v25 }
   0xa   :  { %945 = vmatpush1.bf16.msra.mxu0 %v1939_v18  ;;  %986 = vmatpush1.bf16.msra.mxu1 %v1941_v19  ;;  %v151_v31 = vld [vmem:[%s3108_s3 + $0x120] sm:$0xff]  ;;  %v152_v33 = vld [vmem:[%s3108_s3 + $0x128] sm:$0xff]  ;;  %v2535_v18 = vshrl.u32 %v77_v62, 7 }
   0xb   :  { %946 = vmatprep.subr.bf16.mxu0 %v1948_v20  ;;  %987 = vmatprep.subr.bf16.mxu1 %v1950_v21  ;;  %v1964_v36 = vcombine.high %v147_v30, %v151_v31  ;;  %v1966_v37 = vcombine.high %v148_v32, %v152_v33  ;;  %v155_v38 = vld [vmem:[%s3108_s3 + $0x140] sm:$0xff]  ;;  %v156_v40 = vld [vmem:[%s3108_s3 + $0x148] sm:$0xff]  ;;  %v1963_v42 = vcombine.low %v147_v30, %v151_v31 }
   0xc   :  { %v159_v39 = vld [vmem:[%s3108_s3 + $0x160] sm:$0xff]  ;;  %v160_v41 = vld [vmem:[%s3108_s3 + $0x168] sm:$0xff]  ;;  %v1965_v43 = vcombine.low %v148_v32, %v152_v33 }
   0xd   :  { %v1972_v44 = vcombine.high %v155_v38, %v159_v39  ;;  %v1974_v45 = vcombine.high %v156_v40, %v160_v41  ;;  %v163_v46 = vld [vmem:[%s3108_s3 + $0x180] sm:$0xff]  ;;  %v164_v48 = vld [vmem:[%s3108_s3 + $0x188] sm:$0xff]  ;;  %v1971_v50 = vcombine.low %v155_v38, %v159_v39  ;;  %v1973_v52 = vcombine.low %v156_v40, %v160_v41 }
   0xe   :  { %947 = vmatpush1.bf16.msra.mxu0 %v1947_v26  ;;  %988 = vmatpush1.bf16.msra.mxu1 %v1949_v27  ;;  %v167_v47 = vld [vmem:[%s3108_s3 + $0x1a0] sm:$0xff]  ;;  %v168_v49 = vld [vmem:[%s3108_s3 + $0x1a8] sm:$0xff] }
   0xf   :  { %948 = vmatprep.subr.bf16.mxu0 %v1956_v28  ;;  %989 = vmatprep.subr.bf16.mxu1 %v1958_v29  ;;  %v2489_v51 = vld [vmem:[%s3108_s3 + $0x1c0] sm:$0xff]  ;;  %v1980_v53 = vcombine.high %v163_v46, %v167_v47  ;;  %v35_v55 = vld [vmem:[%s3105_s0 + $0x8] sm:$0xff]  ;;  %v1982_v57 = vcombine.high %v164_v48, %v168_v49  ;;  %v1979_v4 = vcombine.low %v163_v46, %v167_v47 }
  0x10   :  { %v175_v54 = vld [vmem:[%s3108_s3 + $0x1e0] sm:$0xff]  ;;  %v172_v58 = vld [vmem:[%s3108_s3 + $0x1c8] sm:$0xff]  ;;  %v52_v0 = vmax.f32 %v35_v55, %v51_v61  ;;  %v1981_v5 = vcombine.low %v164_v48, %v168_v49 }
  0x11   :  { %v39_v59 = vld [vmem:[%s3105_s0 + $0x28] sm:$0xff]  ;;  %v34_v2 = vld [vmem:[%s3105_s0] sm:$0xff]  ;;  %v1988_v10 = vcombine.high %v2489_v51, %v175_v54  ;;  %v1987_v24 = vcombine.low %v2489_v51, %v175_v54 }
  0x12   :  { %949 = vmatpush1.bf16.msra.mxu0 %v1955_v34  ;;  %990 = vmatpush1.bf16.msra.mxu1 %v1957_v35  ;;  %v176_v63 = vld [vmem:[%s3108_s3 + $0x1e8] sm:$0xff]  ;;  %v68_v6 = vmax.f32 %v39_v59, %v67_v1  ;;  %v38_v7 = vld [vmem:[%s3105_s0 + $0x20] sm:$0xff]  ;;  %v53_v11 = vrot.slane %v52_v0, 4  ;;  %v44_v12 = vmax.f32 %v34_v2, %v43_v9  ;;  %v2551_v35 = vsub.s32 1, %v2535_v18 }
  0x13   :  { %950 = vmatprep.subr.bf16.mxu0 %v1964_v36  ;;  %991 = vmatprep.subr.bf16.mxu1 %v1966_v37  ;;  %v1990_v14 = vcombine.high %v172_v58, %v176_v63  ;;  %v179_v15 = vld [vmem:[%s3108_s3 + $0x200] sm:$0xff]  ;;  %v60_v19 = vmax.f32 %v38_v7, %v59_v13  ;;  %v180_v20 = vld [vmem:[%s3108_s3 + $0x208] sm:$0xff]  ;;  %v1989_v27 = vcombine.low %v172_v58, %v176_v63 }
  0x14   :  { %v183_v16 = vld [vmem:[%s3108_s3 + $0x220] sm:$0xff]  ;;  %v69_v17 = vrot.slane %v68_v6, 4  ;;  %v184_v21 = vld [vmem:[%s3108_s3 + $0x228] sm:$0xff]  ;;  %v54_v22 = vmax.f32 %v52_v0, %v53_v11  ;;  %v45_v23 = vrot.slane %v44_v12, 4 }
  0x15   :  { %v61_v26 = vrot.slane %v60_v19, 4  ;;  %v1996_v28 = vcombine.high %v179_v15, %v183_v16  ;;  %v1998_v31 = vcombine.high %v180_v20, %v184_v21  ;;  %v187_v32 = vld [vmem:[%s3108_s3 + $0x240] sm:$0xff]  ;;  %v188_v37 = vld [vmem:[%s3108_s3 + $0x248] sm:$0xff]  ;;  %v1997_v46 = vcombine.low %v180_v20, %v184_v21 }
  0x16   :  { %951 = vmatpush1.bf16.msra.mxu0 %v1963_v42  ;;  %992 = vmatpush1.bf16.msra.mxu1 %v1965_v43  ;;  %v70_v25 = vmax.f32 %v68_v6, %v69_v17  ;;  %v55_v29 = vrot.slane %v54_v22, 2  ;;  %v46_v30 = vmax.f32 %v44_v12, %v45_v23  ;;  %v191_v33 = vld [vmem:[%s3108_s3 + $0x260] sm:$0xff]  ;;  %v192_v38 = vld [vmem:[%s3108_s3 + $0x268] sm:$0xff]  ;;  %v1995_v42 = vcombine.low %v179_v15, %v183_v16 }
  0x17   :  { %952 = vmatprep.subr.bf16.mxu0 %v1972_v44  ;;  %993 = vmatprep.subr.bf16.mxu1 %v1974_v45  ;;  %v62_v36 = vmax.f32 %v60_v19, %v61_v26  ;;  %v75_v40 = vld [vmem:[%s3106_s1] sm:$0x3]  ;;  %v2563_v45 = vsub.s32 0, %v2535_v18  ;;  %v2004_v47 = vcombine.high %v187_v32, %v191_v33  ;;  %v2006_v51 = vcombine.high %v188_v37, %v192_v38  ;;  %v196_v59 = vld [vmem:[%s3108_s3 + $0x288] sm:$0xff] }
  0x18   :  { %v71_v34 = vrot.slane %v70_v25, 2  ;;  %v56_v39 = vmax.f32 %v54_v22, %v55_v29  ;;  %v47_v41 = vrot.slane %v46_v30, 2  ;;  %v91_v49 = vld [vmem:[%s3107_s2] sm:$0x3]  ;;  %v84_v55 = vrot.slane %v75_v40, %v2551_v35  ;;  %v200_v60 = vld [vmem:[%s3108_s3 + $0x2a8] sm:$0xff] }
  0x19   :  { %v63_v44 = vrot.slane %v62_v36, 2  ;;  %v2005_v58 = vcombine.low %v188_v37, %v192_v38  ;;  %v100_v0 = vrot.slane %v91_v49, %v2551_v35  ;;  %v80_v2 = vrot.slane %v75_v40, %v2563_v45  ;;  %v203_v7 = vld [vmem:[%s3108_s3 + $0x2c0] sm:$0xff]  ;;  %v204_v12 = vld [vmem:[%s3108_s3 + $0x2c8] sm:$0xff] }
  0x1a   :  { %953 = vmatpush1.bf16.msra.mxu0 %v1971_v50  ;;  %994 = vmatpush1.bf16.msra.mxu1 %v1973_v52  ;;  %v72_v43 = vmax.f32 %v70_v25, %v71_v34  ;;  %v57_v48 = vrot.slane %v56_v39, 1  ;;  %v48_v50 = vmax.f32 %v46_v30, %v47_v41  ;;  %v195_v52 = vld [vmem:[%s3108_s3 + $0x280] sm:$0xff]  ;;  %v2014_v6 = vcombine.high %v196_v59, %v200_v60  ;;  %v208_v13 = vld [vmem:[%s3108_s3 + $0x2e8] sm:$0xff] }
  0x1b   :  { %954 = vmatprep.subr.bf16.mxu0 %v1980_v53  ;;  %995 = vmatprep.subr.bf16.mxu1 %v1982_v57  ;;  %v199_v53 = vld [vmem:[%s3108_s3 + $0x2a0] sm:$0xff]  ;;  %v64_v56 = vmax.f32 %v62_v36, %v63_v44  ;;  %v2003_v57 = vcombine.low %v187_v32, %v191_v33  ;;  %v96_v11 = vrot.slane %v91_v49, %v2563_v45  ;;  %v216_v29 = vld [vmem:[%s3108_s3 + $0x328] sm:$0xff] }
  0x1c   :  { %v73_v54 = vrot.slane %v72_v43, 1  ;;  %v58_v61 = vmax.f32 %v56_v39, %v57_v48  ;;  %v49_v62 = vrot.slane %v48_v50, 1  ;;  %v2012_v3 = vcombine.high %v195_v52, %v199_v53  ;;  %v207_v8 = vld [vmem:[%s3108_s3 + $0x2e0] sm:$0xff]  ;;  %v220_v41 = vld [vmem:[%s3108_s3 + $0x348] sm:$0xff] }
  0x1d   :  { %v65_v1 = vrot.slane %v64_v56, 1  ;;  %v2011_v15 = vcombine.low %v195_v52, %v199_v53  ;;  %v2013_v20 = vcombine.low %v196_v59, %v200_v60  ;;  %v2020_v21 = vcombine.high %v203_v7, %v207_v8  ;;  %v215_v25 = vld [vmem:[%s3108_s3 + $0x320] sm:$0xff]  ;;  %v224_v44 = vld [vmem:[%s3108_s3 + $0x368] sm:$0xff] }
  0x1e   :  { %955 = vmatpush1.bf16.msra.mxu0 %v1979_v4  ;;  %996 = vmatpush1.bf16.msra.mxu1 %v1981_v5  ;;  %v74_v63 = vmax.f32 %v72_v43, %v73_v54  ;;  %v88_v4 = vmul.f32 %v84_v55, %v58_v61  ;;  %v50_v5 = vmax.f32 %v48_v50, %v49_v62  ;;  %v219_v38 = vld [vmem:[%s3108_s3 + $0x340] sm:$0xff] }
  0x1f   :  { %956 = vmatprep.subr.bf16.mxu0 %v1988_v10  ;;  %997 = vmatprep.subr.bf16.mxu1 %v1990_v14  ;;  %v66_v10 = vmax.f32 %v64_v56, %v65_v1  ;;  %v2022_v23 = vcombine.high %v204_v12, %v208_v13  ;;  %v2021_v36 = vcombine.low %v204_v12, %v208_v13  ;;  %v223_v39 = vld [vmem:[%s3108_s3 + $0x360] sm:$0xff]  ;;  %v118_v13 = vld [vmem:[%s3108_s3 + $0x18] sm:$0xff] }
  0x20   :  { %v90_v9 = vmul.f32 %v84_v55, %v74_v63  ;;  %v104_v14 = vadd.f32 %v100_v0, %v88_v4  ;;  %v87_v17 = vmul.f32 %v80_v2, %v50_v5  ;;  %v2036_v52 = vcombine.high %v219_v38, %v223_v39  ;;  %v231_v53 = vld [vmem:[%s3108_s3 + $0x3a0] sm:$0xff]  ;;  %v228_v55 = vld [vmem:[%s3108_s3 + $0x388] sm:$0xff] }
  0x21   :  { %v89_v19 = vmul.f32 %v80_v2, %v66_v10  ;;  %v2038_v54 = vcombine.high %v220_v41, %v224_v44  ;;  %v2035_v59 = vcombine.low %v219_v38, %v223_v39  ;;  %v235_v60 = vld [vmem:[%s3108_s3 + $0x3c0] sm:$0xff]  ;;  %v2037_v63 = vcombine.low %v220_v41, %v224_v44  ;;  %v240_v4 = vld [vmem:[%s3108_s3 + $0x3e8] sm:$0xff]  ;;  %v149_v44 = vld [vmem:[%s3108_s3 + $0x110] sm:$0xff] }
  0x22   :  { %957 = vmatpush1.bf16.msra.mxu0 %v1987_v24  ;;  %998 = vmatpush1.bf16.msra.mxu1 %v1989_v27  ;;  %v106_v16 = vadd.f32 %v100_v0, %v90_v9  ;;  %v108_v22 = vmax.f32 %v104_v14, 0.0  ;;  %v211_v24 = vld [vmem:[%s3108_s3 + $0x300] sm:$0xff]  ;;  %v103_v33 = vadd.f32 %v96_v11, %v87_v17  ;;  %v122_v14 = vld [vmem:[%s3108_s3 + $0x38] sm:$0xff]  ;;  %v125_v17 = vld [vmem:[%s3108_s3 + $0x50] sm:$0xff] }
  0x23   :  { %958 = vmatprep.subr.bf16.mxu0 %v1996_v28  ;;  %999 = vmatprep.subr.bf16.mxu1 %v1998_v31  ;;  %v105_v27 = vadd.f32 %v96_v11, %v89_v19  ;;  %v212_v28 = vld [vmem:[%s3108_s3 + $0x308] sm:$0xff]  ;;  %v2019_v31 = vcombine.low %v203_v7, %v207_v8  ;;  %v2028_v37 = vcombine.high %v211_v24, %v215_v25  ;;  %v239_v1 = vld [vmem:[%s3108_s3 + $0x3e0] sm:$0xff]  ;;  %v117_v8 = vld [vmem:[%s3108_s3 + $0x10] sm:$0xff] }
  0x24   :  { %v110_v26 = vmax.f32 %v106_v16, 0.0  ;;  %v112_v30 = vpack.c.bf16 %v108_v22, %v108_v22  ;;  %v2030_v40 = vcombine.high %v212_v28, %v216_v29  ;;  %v107_v49 = vmax.f32 %v103_v33, 0.0  ;;  %v121_v11 = vld [vmem:[%s3108_s3 + $0x30] sm:$0xff]  ;;  %v138_v33 = vld [vmem:[%s3108_s3 + $0xb8] sm:$0xff] }
  0x25   :  { %v109_v34 = vmax.f32 %v105_v27, 0.0  ;;  %v2052_v10 = vcombine.high %v235_v60, %v239_v1  ;;  %v1938_v22 = vcombine.high %v118_v13, %v122_v14  ;;  %v133_v27 = vld [vmem:[%s3108_s3 + $0x90] sm:$0xff] }
  0x26   :  { %959 = vmatpush1.bf16.msra.mxu0 %v1995_v42  ;;  %1000 = vmatpush1.bf16.msra.mxu1 %v1997_v46  ;;  %v114_v32 = vpack.c.bf16 %v110_v26, %v110_v26  ;;  %v290_v42 = vunpack.c.l.b16 %v112_v30  ;;  %v2027_v46 = vcombine.low %v211_v24, %v215_v25  ;;  %v111_v61 = vpack.c.bf16 %v107_v49, %v107_v49  ;;  %v130_v25 = vld [vmem:[%s3108_s3 + $0x78] sm:$0xff]  ;;  %v137_v30 = vld [vmem:[%s3108_s3 + $0xb0] sm:$0xff] }
  0x27   :  { %960 = vmatprep.subr.bf16.mxu0 %v2004_v47  ;;  %1001 = vmatprep.subr.bf16.mxu1 %v2006_v51  ;;  %v227_v47 = vld [vmem:[%s3108_s3 + $0x380] sm:$0xff]  ;;  %v113_v50 = vpack.c.bf16 %v109_v34, %v109_v34  ;;  %v2029_v51 = vcombine.low %v212_v28, %v216_v29  ;;  %v1935_v26 = vcombine.low %v117_v8, %v121_v11  ;;  %v150_v49 = vld [vmem:[%s3108_s3 + $0x118] sm:$0xff] }
  0x28   :  { %v292_v43 = vunpack.c.l.b16 %v114_v32  ;;  %v2044_v0 = vcombine.high %v227_v47, %v231_v53  ;;  %v2043_v5 = vcombine.low %v227_v47, %v231_v53  ;;  %v1937_v28 = vcombine.low %v118_v13, %v122_v14  ;;  %v134_v32 = vld [vmem:[%s3108_s3 + $0x98] sm:$0xff]  ;;  %v157_v53 = vld [vmem:[%s3108_s3 + $0x150] sm:$0xff] }
  0x29   :  { %v291_v62 = vunpack.c.l.b16 %v113_v50  ;;  %v1952_v39 = vcombine.high %v133_v27, %v137_v30  ;;  %v1954_v41 = vcombine.high %v134_v32, %v138_v33  ;;  %v1953_v47 = vcombine.low %v134_v32, %v138_v33  ;;  %v154_v50 = vld [vmem:[%s3108_s3 + $0x138] sm:$0xff]  ;;  %v181_v13 = vld [vmem:[%s3108_s3 + $0x210] sm:$0xff] }
  0x2a   :  { %961 = vmatpush1.bf16.msra.mxu0 %v2003_v57  ;;  %1002 = vmatpush1.bf16.msra.mxu1 %v2005_v58  ;;  %v296_v48 = vrot.slane %v292_v43, 7  ;;  %v232_v57 = vld [vmem:[%s3108_s3 + $0x3a8] sm:$0xff]  ;;  %v1951_v43 = vcombine.low %v133_v27, %v137_v30  ;;  %v185_v14 = vld [vmem:[%s3108_s3 + $0x230] sm:$0xff]  ;;  %v190_v27 = vld [vmem:[%s3108_s3 + $0x258] sm:$0xff] }
  0x2b   :  { %962 = vmatprep.subr.bf16.mxu0 %v2012_v3  ;;  %1003 = vmatprep.subr.bf16.mxu1 %v2014_v6  ;;  %v2046_v2 = vcombine.high %v228_v55, %v232_v57  ;;  %v236_v3 = vld [vmem:[%s3108_s3 + $0x3c8] sm:$0xff]  ;;  %v289_v6 = vunpack.c.l.b16 %v111_v61  ;;  %v293_v7 = vrot.slane %v291_v62, 7  ;;  %v2045_v9 = vcombine.low %v228_v55, %v232_v57  ;;  %v158_v57 = vld [vmem:[%s3108_s3 + $0x158] sm:$0xff]  ;;  %v165_v61 = vld [vmem:[%s3108_s3 + $0x190] sm:$0xff] }
  0x2c   :  { %v297_v56 = vsel %vm294_vm1, %v296_v48, %v290_v42  ;;  %v2054_v12 = vcombine.high %v236_v3, %v240_v4  ;;  %v2053_v19 = vcombine.low %v236_v3, %v240_v4  ;;  %v146_v42 = vld [vmem:[%s3108_s3 + $0xf8] sm:$0xff]  ;;  %v169_v62 = vld [vmem:[%s3108_s3 + $0x1b0] sm:$0xff]  ;;  %v1999_v30 = vcombine.low %v181_v13, %v185_v14 }
  0x2d   :  { %v2633_v58 = vpack.c.b16 %v297_v56, %v297_v56  ;;  %v295_v16 = vsel %vm294_vm1, %v293_v7, %v289_v6  ;;  %v177_v6 = vld [vmem:[%s3108_s3 + $0x1f0] sm:$0xff] }
  0x2e   :  { %963 = vmatpush1.bf16.msra.mxu0 %v2011_v15  ;;  %1004 = vmatpush1.bf16.msra.mxu1 %v2013_v20  ;;  %v2051_v15 = vcombine.low %v235_v60, %v239_v1  ;;  %v1936_v20 = vcombine.high %v117_v8, %v121_v11  ;;  %v2671_v24 = vpack.c.b16 %v295_v16, %v295_v16  ;;  %v166_v1 = vld [vmem:[%s3108_s3 + $0x198] sm:$0xff]  ;;  %v201_v32 = vld [vmem:[%s3108_s3 + $0x2b0] sm:$0xff] }
  0x2f   :  { %964 = vmatprep.subr.bf16.mxu0 %v2020_v21  ;;  %1005 = vmatprep.subr.bf16.mxu1 %v2022_v23  ;;  %v129_v21 = vld [vmem:[%s3108_s3 + $0x70] sm:$0xff]  ;;  %v126_v23 = vld [vmem:[%s3108_s3 + $0x58] sm:$0xff]  ;;  %v1984_v8 = vcombine.high %v165_v61, %v169_v62 }
  0x30   :  { %974 = vmatprep.mubr.bf16.mxu0 %v2633_v58  ;;  %1015 = vmatprep.mubr.bf16.mxu1 %v2633_v58  ;;  %v1944_v29 = vcombine.high %v125_v17, %v129_v21  ;;  %v1943_v34 = vcombine.low %v125_v17, %v129_v21  ;;  %v1945_v38 = vcombine.low %v126_v23, %v130_v25  ;;  %v182_v17 = vld [vmem:[%s3108_s3 + $0x218] sm:$0xff] }
  0x32   :  { %965 = vmatpush1.bf16.msra.mxu0 %v2019_v31  ;;  %1006 = vmatpush1.bf16.msra.mxu1 %v2021_v36  ;;  %v1946_v31 = vcombine.high %v126_v23, %v130_v25  ;;  %v141_v36 = vld [vmem:[%s3108_s3 + $0xd0] sm:$0xff] }
  0x33   :  { %966 = vmatprep.subr.bf16.mxu0 %v2028_v37  ;;  %1007 = vmatprep.subr.bf16.mxu1 %v2030_v40  ;;  %v145_v37 = vld [vmem:[%s3108_s3 + $0xf0] sm:$0xff]  ;;  %v142_v40 = vld [vmem:[%s3108_s3 + $0xd8] sm:$0xff] }
  0x34   :  { %v1960_v48 = vcombine.high %v141_v36, %v145_v37  ;;  %v1961_v55 = vcombine.low %v142_v40, %v146_v42  ;;  %v193_v23 = vld [vmem:[%s3108_s3 + $0x270] sm:$0xff] }
  0x36   :  { %967 = vmatpush1.bf16.msra.mxu0 %v2027_v46  ;;  %1008 = vmatpush1.bf16.msra.mxu1 %v2029_v51  ;;  %v153_v46 = vld [vmem:[%s3108_s3 + $0x130] sm:$0xff]  ;;  %v1962_v51 = vcombine.high %v142_v40, %v146_v42 }
  0x37   :  { %968 = vmatprep.subr.bf16.mxu0 %v2036_v52  ;;  %1009 = vmatprep.subr.bf16.mxu1 %v2038_v54  ;;  %v1959_v52 = vcombine.low %v141_v36, %v145_v37  ;;  %v161_v54 = vld [vmem:[%s3108_s3 + $0x170] sm:$0xff]  ;;  %v1968_v56 = vcombine.high %v149_v44, %v153_v46  ;;  %v1967_v60 = vcombine.low %v149_v44, %v153_v46  ;;  %v198_v36 = vld [vmem:[%s3108_s3 + $0x298] sm:$0xff] }
  0x38   :  { %v1975_v4 = vcombine.low %v157_v53, %v161_v54  ;;  %v202_v37 = vld [vmem:[%s3108_s3 + $0x2b8] sm:$0xff]  ;;  %v205_v40 = vld [vmem:[%s3108_s3 + $0x2d0] sm:$0xff] }
  0x39   :  { %v209_v44 = vld [vmem:[%s3108_s3 + $0x2f0] sm:$0xff] }
  0x3a   :  { %969 = vmatpush1.bf16.msra.mxu0 %v2035_v59  ;;  %1010 = vmatpush1.bf16.msra.mxu1 %v2037_v63  ;;  %v1970_v59 = vcombine.high %v150_v49, %v154_v50  ;;  %v1969_v63 = vcombine.low %v150_v49, %v154_v50 }
  0x3b   :  { %970 = vmatprep.subr.bf16.mxu0 %v2044_v0  ;;  %1011 = vmatprep.subr.bf16.mxu1 %v2046_v2  ;;  %v1976_v0 = vcombine.high %v157_v53, %v161_v54  ;;  %v170_v2 = vld [vmem:[%s3108_s3 + $0x1b8] sm:$0xff] }
  0x3c   :  { %v1986_v11 = vcombine.high %v166_v1, %v170_v2 }
  0x3e   :  { %971 = vmatpush1.bf16.msra.mxu0 %v2043_v5  ;;  %1012 = vmatpush1.bf16.msra.mxu1 %v2045_v9  ;;  %v173_v5 = vld [vmem:[%s3108_s3 + $0x1d0] sm:$0xff]  ;;  %v174_v9 = vld [vmem:[%s3108_s3 + $0x1d8] sm:$0xff] }
  0x3f   :  { %972 = vmatprep.subr.bf16.mxu0 %v2052_v10  ;;  %1013 = vmatprep.subr.bf16.mxu1 %v2054_v12  ;;  %v178_v10 = vld [vmem:[%s3108_s3 + $0x1f8] sm:$0xff]  ;;  %v1983_v12 = vcombine.low %v165_v61, %v169_v62  ;;  %v1992_v16 = vcombine.high %v173_v5, %v177_v6  ;;  %v1991_v21 = vcombine.low %v173_v5, %v177_v6 }
  0x40   :  { %v1993_v25 = vcombine.low %v174_v9, %v178_v10 }
  0x42   :  { %973 = vmatpush1.bf16.msra.mxu0 %v2051_v15  ;;  %1014 = vmatpush1.bf16.msra.mxu1 %v2053_v19  ;;  %v1985_v15 = vcombine.low %v166_v1, %v170_v2  ;;  %v186_v19 = vld [vmem:[%s3108_s3 + $0x238] sm:$0xff] }
  0x43   :  { %1024 = vmatprep.subr.bf16.mxu0 %v1936_v20  ;;  %1065 = vmatprep.subr.bf16.mxu1 %v1938_v22  ;;  %v1994_v20 = vcombine.high %v174_v9, %v178_v10  ;;  %v189_v22 = vld [vmem:[%s3108_s3 + $0x250] sm:$0xff]  ;;  %v2001_v33 = vcombine.low %v182_v17, %v186_v19 }
  0x45   :  { %975 = vmatmul.mubr.bf16.vlgmr.msra.gmra.mrb[0].mxu0 %v2671_v24  ;;  %1016 = vmatmul.mubr.bf16.vlgmr.msra.gmra.mrb[0].mxu1 %v2671_v24 }
  0x46   :  { %1025 = vmatpush1.bf16.msra.mxu0 %v1935_v26  ;;  %1066 = vmatpush1.bf16.msra.mxu1 %v1937_v28  ;;  %v2000_v26 = vcombine.high %v181_v13, %v185_v14  ;;  %v194_v28 = vld [vmem:[%s3108_s3 + $0x278] sm:$0xff] }
  0x47   :  { %1026 = vmatprep.subr.bf16.mxu0 %v1944_v29  ;;  %1067 = vmatprep.subr.bf16.mxu1 %v1946_v31  ;;  %v2002_v29 = vcombine.high %v182_v17, %v186_v19  ;;  %v197_v31 = vld [vmem:[%s3108_s3 + $0x290] sm:$0xff] }
  0x48   :  { %1056 = vmatprep.mubr.bf16.mxu0 %v2633_v58  ;;  %1097 = vmatprep.mubr.bf16.mxu1 %v2633_v58  ;;  %v162_v58 = vld [vmem:[%s3108_s3 + $0x178] sm:$0xff]  ;;  %v2016_v42 = vcombine.high %v197_v31, %v201_v32 }
  0x49   :  { %v1978_v3 = vcombine.high %v158_v57, %v162_v58  ;;  %v1977_v7 = vcombine.low %v158_v57, %v162_v58 }
  0x4a   :  { %1027 = vmatpush1.bf16.msra.mxu0 %v1943_v34  ;;  %1068 = vmatpush1.bf16.msra.mxu1 %v1945_v38  ;;  %v2008_v34 = vcombine.high %v189_v22, %v193_v23  ;;  %v2010_v38 = vcombine.high %v190_v27, %v194_v28 }
  0x4b   :  { %1028 = vmatprep.subr.bf16.mxu0 %v1952_v39  ;;  %1069 = vmatprep.subr.bf16.mxu1 %v1954_v41  ;;  %v2007_v39 = vcombine.low %v189_v22, %v193_v23  ;;  %v2009_v41 = vcombine.low %v190_v27, %v194_v28 }
  0x4e   :  { %1029 = vmatpush1.bf16.msra.mxu0 %v1951_v43  ;;  %1070 = vmatpush1.bf16.msra.mxu1 %v1953_v47  ;;  %v2018_v43 = vcombine.high %v198_v36, %v202_v37 }
  0x4f   :  { %1030 = vmatprep.subr.bf16.mxu0 %v1960_v48  ;;  %1071 = vmatprep.subr.bf16.mxu1 %v1962_v51 }
  0x52   :  { %1031 = vmatpush1.bf16.msra.mxu0 %v1959_v52  ;;  %1072 = vmatpush1.bf16.msra.mxu1 %v1961_v55 }
  0x53   :  { %1032 = vmatprep.subr.bf16.mxu0 %v1968_v56  ;;  %1073 = vmatprep.subr.bf16.mxu1 %v1970_v59 }
  0x56   :  { %1033 = vmatpush1.bf16.msra.mxu0 %v1967_v60  ;;  %1074 = vmatpush1.bf16.msra.mxu1 %v1969_v63 }
  0x57   :  { %1034 = vmatprep.subr.bf16.mxu0 %v1976_v0  ;;  %1075 = vmatprep.subr.bf16.mxu1 %v1978_v3 }
  0x5a   :  { %1035 = vmatpush1.bf16.msra.mxu0 %v1975_v4  ;;  %1076 = vmatpush1.bf16.msra.mxu1 %v1977_v7 }
  0x5b   :  { %1036 = vmatprep.subr.bf16.mxu0 %v1984_v8  ;;  %1077 = vmatprep.subr.bf16.mxu1 %v1986_v11 }
  0x5e   :  { %1037 = vmatpush1.bf16.msra.mxu0 %v1983_v12  ;;  %1078 = vmatpush1.bf16.msra.mxu1 %v1985_v15 }
  0x5f   :  { %1038 = vmatprep.subr.bf16.mxu0 %v1992_v16  ;;  %1079 = vmatprep.subr.bf16.mxu1 %v1994_v20 }
  0x62   :  { %1039 = vmatpush1.bf16.msra.mxu0 %v1991_v21  ;;  %1080 = vmatpush1.bf16.msra.mxu1 %v1993_v25 }
  0x63   :  { %1040 = vmatprep.subr.bf16.mxu0 %v2000_v26  ;;  %1081 = vmatprep.subr.bf16.mxu1 %v2002_v29 }
  0x66   :  { %1041 = vmatpush1.bf16.msra.mxu0 %v1999_v30  ;;  %1082 = vmatpush1.bf16.msra.mxu1 %v2001_v33 }
  0x67   :  { %1042 = vmatprep.subr.bf16.mxu0 %v2008_v34  ;;  %1083 = vmatprep.subr.bf16.mxu1 %v2010_v38 }
  0x68   :  { %14 = vsyncpa [#allocation3], 0  ;;  %v206_v46 = vld [vmem:[%s3108_s3 + $0x2d8] sm:$0xff]  ;;  %v2015_v48 = vcombine.low %v197_v31, %v201_v32  ;;  %v2017_v49 = vcombine.low %v198_v36, %v202_v37  ;;  %v2024_v50 = vcombine.high %v205_v40, %v209_v44  ;;  %v213_v52 = vld [vmem:[%s3108_s3 + $0x310] sm:$0xff]  ;;  %v2023_v56 = vcombine.low %v205_v40, %v209_v44  ;;  %s2351_s25 = smov [#allocation2]  }
  0x69   :  { %v210_v47 = vld [vmem:[%s3108_s3 + $0x2f8] sm:$0xff]  ;;  %v217_v53 = vld [vmem:[%s3108_s3 + $0x330] sm:$0xff]  ;;  %v2253_v23 = vld [vmem:[%s3110_s5 + $0x40] sm:$0xff]   ;;  %vm2350_vm2 = vmmov 0   ;;  %vm1915_vm3 = vcmask 9216  }
  0x6a   :  { %1043 = vmatpush1.bf16.msra.mxu0 %v2007_v39  ;;  %1084 = vmatpush1.bf16.msra.mxu1 %v2009_v41  ;;  %v2026_v51 = vcombine.high %v206_v46, %v210_v47  ;;  %v214_v54 = vld [vmem:[%s3108_s3 + $0x318] sm:$0xff]  ;;  %v2025_v57 = vcombine.low %v206_v46, %v210_v47  ;;  %v2032_v58 = vcombine.high %v213_v52, %v217_v53  ;;  %v221_v60 = vld [vmem:[%s3108_s3 + $0x350] sm:$0xff]  ;;  %v2254_v25 = vld [vmem:[%s3110_s5 + $0xc0] sm:$0xff]  }
  0x6b   :  { %1044 = vmatprep.subr.bf16.mxu0 %v2016_v42  ;;  %1085 = vmatprep.subr.bf16.mxu1 %v2018_v43  ;;  %v218_v55 = vld [vmem:[%s3108_s3 + $0x338] sm:$0xff]  ;;  %v225_v61 = vld [vmem:[%s3108_s3 + $0x370] sm:$0xff]  ;;  %v2031_v0 = vcombine.low %v213_v52, %v217_v53  ;;  %v2255_v26 = vld [vmem:[%s3110_s5] sm:$0xff]  }
  0x6c   :  { %v2034_v59 = vcombine.high %v214_v54, %v218_v55  ;;  %v222_v62 = vld [vmem:[%s3108_s3 + $0x358] sm:$0xff]  ;;  %v2033_v1 = vcombine.low %v214_v54, %v218_v55  ;;  %v2040_v2 = vcombine.high %v221_v60, %v225_v61  ;;  %v229_v4 = vld [vmem:[%s3108_s3 + $0x390] sm:$0xff]  ;;  %v2039_v8 = vcombine.low %v221_v60, %v225_v61  ;;  %v2256_v27 = vld [vmem:[%s3110_s5 + $0x80] sm:$0xff]  }
  0x6d   :  { %v226_v63 = vld [vmem:[%s3108_s3 + $0x378] sm:$0xff]  ;;  %v233_v5 = vld [vmem:[%s3108_s3 + $0x3b0] sm:$0xff]  ;;  %v2257_v28 = vld [vmem:[%s3110_s5 + $0x48] sm:$0xff]   ;;  %v255_v60 = vsub.s32 2, %v2535_v18  ;;  %v259_v61 = vsub.s32 3, %v2535_v18 }
  0x6e   :  { %1045 = vmatpush1.bf16.msra.mxu0 %v2015_v48  ;;  %1086 = vmatpush1.bf16.msra.mxu1 %v2017_v49  ;;  %v2042_v3 = vcombine.high %v222_v62, %v226_v63  ;;  %v230_v6 = vld [vmem:[%s3108_s3 + $0x398] sm:$0xff]  ;;  %v2041_v9 = vcombine.low %v222_v62, %v226_v63  ;;  %v2048_v10 = vcombine.high %v229_v4, %v233_v5  ;;  %v237_v12 = vld [vmem:[%s3108_s3 + $0x3d0] sm:$0xff]  ;;  %v2258_v29 = vld [vmem:[%s3110_s5 + $0xc8] sm:$0xff]  }
  0x6f   :  { %1046 = vmatprep.subr.bf16.mxu0 %v2024_v50  ;;  %1087 = vmatprep.subr.bf16.mxu1 %v2026_v51  ;;  %v234_v7 = vld [vmem:[%s3108_s3 + $0x3b8] sm:$0xff]  ;;  %v241_v13 = vld [vmem:[%s3108_s3 + $0x3f0] sm:$0xff]  ;;  %v2047_v16 = vcombine.low %v229_v4, %v233_v5  ;;  %v2259_v30 = vld [vmem:[%s3110_s5 + $0x8] sm:$0xff]  }
  0x70   :  { %v2050_v11 = vcombine.high %v230_v6, %v234_v7  ;;  %v238_v14 = vld [vmem:[%s3108_s3 + $0x3d8] sm:$0xff]  ;;  %v2049_v17 = vcombine.low %v230_v6, %v234_v7  ;;  %v2056_v19 = vcombine.high %v237_v12, %v241_v13  ;;  %v2055_v21 = vcombine.low %v237_v12, %v241_v13  ;;  %v2260_v31 = vld [vmem:[%s3110_s5 + $0x88] sm:$0xff]   ;;  %v2261_v32 = vld [vmem:[%s3110_s5 + $0x50] sm:$0xff]  }
  0x71   :  { %v242_v15 = vld [vmem:[%s3108_s3 + $0x3f8] sm:$0xff]  ;;  %v2263_v33 = vld [vmem:[%s3110_s5 + $0x10] sm:$0xff]   ;;  %v2269_v40 = vld [vmem:[%s3110_s5 + $0x60] sm:$0xff]  }
  0x72   :  { %1047 = vmatpush1.bf16.msra.mxu0 %v2023_v56  ;;  %1088 = vmatpush1.bf16.msra.mxu1 %v2025_v57  ;;  %v2058_v20 = vcombine.high %v238_v14, %v242_v15  ;;  %v2057_v22 = vcombine.low %v238_v14, %v242_v15  ;;  %v2264_v34 = vld [vmem:[%s3110_s5 + $0x90] sm:$0xff]   ;;  %v2265_v36 = vld [vmem:[%s3110_s5 + $0x58] sm:$0xff]   ;;  %v2270_v41 = vld [vmem:[%s3110_s5 + $0xe0] sm:$0xff]  }
  0x73   :  { %1048 = vmatprep.subr.bf16.mxu0 %v2032_v58  ;;  %1089 = vmatprep.subr.bf16.mxu1 %v2034_v59  ;;  %v2266_v37 = vld [vmem:[%s3110_s5 + $0xd8] sm:$0xff]   ;;  %v2271_v42 = vld [vmem:[%s3110_s5 + $0x20] sm:$0xff]   ;;  %v2273_v44 = vld [vmem:[%s3110_s5 + $0x68] sm:$0xff]  }
  0x74   :  { %v2267_v38 = vld [vmem:[%s3110_s5 + $0x18] sm:$0xff]   ;;  %v2272_v43 = vld [vmem:[%s3110_s5 + $0xa0] sm:$0xff]   ;;  %v2274_v46 = vld [vmem:[%s3110_s5 + $0xe8] sm:$0xff]  }
  0x75   :  { %v2268_v39 = vld [vmem:[%s3110_s5 + $0x98] sm:$0xff]   ;;  %v2275_v47 = vld [vmem:[%s3110_s5 + $0x28] sm:$0xff]   ;;  %v2277_v49 = vld [vmem:[%s3110_s5 + $0x70] sm:$0xff]  }
  0x76   :  { %1049 = vmatpush1.bf16.msra.mxu0 %v2031_v0  ;;  %1090 = vmatpush1.bf16.msra.mxu1 %v2033_v1  ;;  %v2276_v48 = vld [vmem:[%s3110_s5 + $0xa8] sm:$0xff]   ;;  %v2278_v50 = vld [vmem:[%s3110_s5 + $0xf0] sm:$0xff]   ;;  %v2281_v53 = vld [vmem:[%s3110_s5 + $0x78] sm:$0xff]  }
  0x77   :  { %1050 = vmatprep.subr.bf16.mxu0 %v2040_v2  ;;  %1091 = vmatprep.subr.bf16.mxu1 %v2042_v3  ;;  %v2279_v51 = vld [vmem:[%s3110_s5 + $0x30] sm:$0xff]   ;;  %v2282_v54 = vld [vmem:[%s3110_s5 + $0xf8] sm:$0xff]   ;;  %v2285_v57 = vld [vmem:[%s3110_s5 + $0x140] sm:$0xff]  }
  0x78   :  { %v2280_v52 = vld [vmem:[%s3110_s5 + $0xb0] sm:$0xff]   ;;  %v2283_v55 = vld [vmem:[%s3110_s5 + $0x38] sm:$0xff]   ;;  %v2286_v58 = vld [vmem:[%s3110_s5 + $0x1c0] sm:$0xff]  }
  0x79   :  { %v2284_v56 = vld [vmem:[%s3110_s5 + $0xb8] sm:$0xff]   ;;  %v2955_v59 = vld [vmem:[%s3109_s4] sm:$0xff]  ;;  %s1923_s4 = sshll.u32 %s2351_s25, 4  ;;  %s1924_s4 = int_to_ptr.vmem [resolvable:$true] %s1923_s4 }
  0x7a   :  { %1051 = vmatpush1.bf16.msra.mxu0 %v2039_v8  ;;  %1092 = vmatpush1.bf16.msra.mxu1 %v2041_v9  ;;  %v248_v62 = vrot.slane %v2955_v59, %v2563_v45  ;;  %v256_v63 = vrot.slane %v2955_v59, %v255_v60  ;;  %v252_v0 = vrot.slane %v2955_v59, %v2551_v35  ;;  %s2325_s26 = scalar_lea.vmem %s1924_s4, 32  ;;  %p2330_p1 = scmp.lt.s32.totalorder %s1924_s4, %s1924_s4 }
  0x7b   :  { %1052 = vmatprep.subr.bf16.mxu0 %v2048_v10  ;;  %1093 = vmatprep.subr.bf16.mxu1 %v2050_v11  ;;  %v260_v1 = vrot.slane %v2955_v59, %v259_v61  ;;  %p2326_p0 = scmp.ne.s32.totalorder %s1924_s4, %s2325_s26  ;;  %p2331_p2 = scmp.lt.s32.totalorder %s2325_s26, %s2325_s26 }
  0x7d   :  { %p2332_p3 = por %p2331_p2, %p2330_p1 }
  0x7e   :  { %1053 = vmatpush1.bf16.msra.mxu0 %v2047_v16  ;;  %1094 = vmatpush1.bf16.msra.mxu1 %v2049_v17 }
  0x7f   :  { %1054 = vmatprep.subr.bf16.mxu0 %v2056_v19  ;;  %1095 = vmatprep.subr.bf16.mxu1 %v2058_v20  ;;  %v2287_v20 = vld [vmem:[%s3110_s5 + $0x100] sm:$0xff]   ;;  %p2333_p4 = pnand %p2332_p3, %p2326_p0 }
  0x82   :  { %1055 = vmatpush1.bf16.msra.mxu0 %v2055_v21  ;;  %1096 = vmatpush1.bf16.msra.mxu1 %v2057_v22  ;;  %v2288_v22 = vld [vmem:[%s3110_s5 + $0x180] sm:$0xff]  }
  0x83   :  { %2133 = vmatprep.subr.bf16.mxu0 %v2253_v23  ;;  %2155 = vmatprep.subr.bf16.mxu1 %v2254_v25  ;;  %v2289_v23 = vld [vmem:[%s3110_s5 + $0x148] sm:$0xff]  }
  0x84   :  { %v2290_v25 = vld [vmem:[%s3110_s5 + $0x1c8] sm:$0xff]  }
  0x85   :  { %1057 = vmatmul.mubr.bf16.vlgmr.msra.gmra.mrb[4].mxu0 %v2671_v24  ;;  %1098 = vmatmul.mubr.bf16.vlgmr.msra.gmra.mrb[4].mxu1 %v2671_v24  ;;  %v2262_v24 = vld [vmem:[%s3110_s5 + $0xd0] sm:$0xff]  }
  0x86   :  { %2134 = vmatpush3.bf16.msra.mxu0 %v2255_v26  ;;  %2156 = vmatpush3.bf16.msra.mxu1 %v2256_v27  ;;  %v2291_v26 = vld [vmem:[%s3110_s5 + $0x108] sm:$0xff]  }
  0x87   :  { %2135 = vmatprep.subr.bf16.mxu0 %v2257_v28  ;;  %2157 = vmatprep.subr.bf16.mxu1 %v2258_v29  ;;  %v2292_v27 = vld [vmem:[%s3110_s5 + $0x188] sm:$0xff]   ;;  %v2293_v28 = vld [vmem:[%s3110_s5 + $0x150] sm:$0xff]  }
  0x88   :  { %v2294_v29 = vld [vmem:[%s3110_s5 + $0x1d0] sm:$0xff]  }
  0x8a   :  { %2136 = vmatpush3.bf16.msra.mxu0 %v2259_v30  ;;  %2158 = vmatpush3.bf16.msra.mxu1 %v2260_v31  ;;  %v2295_v30 = vld [vmem:[%s3110_s5 + $0x110] sm:$0xff]  }
  0x8b   :  { %2137 = vmatprep.subr.bf16.mxu0 %v2261_v32  ;;  %2159 = vmatprep.subr.bf16.mxu1 %v2262_v24  ;;  %v2296_v31 = vld [vmem:[%s3110_s5 + $0x190] sm:$0xff]   ;;  %v2297_v32 = vld [vmem:[%s3110_s5 + $0x158] sm:$0xff]  }
  0x8c   :  { %v2298_v24 = vld [vmem:[%s3110_s5 + $0x1d8] sm:$0xff]  }
  0x8e   :  { %2138 = vmatpush3.bf16.msra.mxu0 %v2263_v33  ;;  %2160 = vmatpush3.bf16.msra.mxu1 %v2264_v34  ;;  %v2299_v33 = vld [vmem:[%s3110_s5 + $0x118] sm:$0xff]  }
  0x8f   :  { %2139 = vmatprep.subr.bf16.mxu0 %v2265_v36  ;;  %2161 = vmatprep.subr.bf16.mxu1 %v2266_v37  ;;  %v2300_v34 = vld [vmem:[%s3110_s5 + $0x198] sm:$0xff]   ;;  %v2301_v36 = vld [vmem:[%s3110_s5 + $0x160] sm:$0xff]  }
  0x90   :  { %v2302_v37 = vld [vmem:[%s3110_s5 + $0x1e0] sm:$0xff]  }
  0x92   :  { %2140 = vmatpush3.bf16.msra.mxu0 %v2267_v38  ;;  %2162 = vmatpush3.bf16.msra.mxu1 %v2268_v39  ;;  %v2303_v38 = vld [vmem:[%s3110_s5 + $0x120] sm:$0xff]  }
  0x93   :  { %2141 = vmatprep.subr.bf16.mxu0 %v2269_v40  ;;  %2163 = vmatprep.subr.bf16.mxu1 %v2270_v41  ;;  %v2304_v39 = vld [vmem:[%s3110_s5 + $0x1a0] sm:$0xff]   ;;  %v2305_v40 = vld [vmem:[%s3110_s5 + $0x168] sm:$0xff]  }
  0x94   :  { %v2306_v41 = vld [vmem:[%s3110_s5 + $0x1e8] sm:$0xff]  }
  0x96   :  { %2142 = vmatpush3.bf16.msra.mxu0 %v2271_v42  ;;  %2164 = vmatpush3.bf16.msra.mxu1 %v2272_v43  ;;  %v2307_v42 = vld [vmem:[%s3110_s5 + $0x128] sm:$0xff]  }
  0x97   :  { %2143 = vmatprep.subr.bf16.mxu0 %v2273_v44  ;;  %2165 = vmatprep.subr.bf16.mxu1 %v2274_v46  ;;  %v2308_v43 = vld [vmem:[%s3110_s5 + $0x1a8] sm:$0xff]   ;;  %v2309_v44 = vld [vmem:[%s3110_s5 + $0x170] sm:$0xff]  }
  0x98   :  { %v2310_v46 = vld [vmem:[%s3110_s5 + $0x1f0] sm:$0xff]  }
  0x9a   :  { %2144 = vmatpush3.bf16.msra.mxu0 %v2275_v47  ;;  %2166 = vmatpush3.bf16.msra.mxu1 %v2276_v48  ;;  %v2311_v47 = vld [vmem:[%s3110_s5 + $0x130] sm:$0xff]  }
  0x9b   :  { %2145 = vmatprep.subr.bf16.mxu0 %v2277_v49  ;;  %2167 = vmatprep.subr.bf16.mxu1 %v2278_v50  ;;  %v2312_v48 = vld [vmem:[%s3110_s5 + $0x1b0] sm:$0xff]   ;;  %v2313_v49 = vld [vmem:[%s3110_s5 + $0x178] sm:$0xff]  }
  0x9c   :  { %v2314_v50 = vld [vmem:[%s3110_s5 + $0x1f8] sm:$0xff]  }
  0x9e   :  { %2146 = vmatpush3.bf16.msra.mxu0 %v2279_v51  ;;  %2168 = vmatpush3.bf16.msra.mxu1 %v2280_v52  ;;  %v2315_v51 = vld [vmem:[%s3110_s5 + $0x138] sm:$0xff]  }
  0x9f   :  { %2147 = vmatprep.subr.bf16.mxu0 %v2281_v53  ;;  %2169 = vmatprep.subr.bf16.mxu1 %v2282_v54  ;;  %v2316_v52 = vld [vmem:[%s3110_s5 + $0x1b8] sm:$0xff]   ;;  %v263_v53 = vsub.s32 4, %v2535_v18  ;;  %v271_v54 = vsub.s32 6, %v2535_v18 }
  0xa2   :  { %2148 = vmatpush3.bf16.msra.mxu0 %v2283_v55  ;;  %2170 = vmatpush3.bf16.msra.mxu1 %v2284_v56  ;;  %v267_v55 = vsub.s32 5, %v2535_v18  ;;  %v275_v56 = vsub.s32 7, %v2535_v18 }
  0xa3   :  { %2177 = vmatprep.subr.bf16.mxu0 %v2285_v57  ;;  %2199 = vmatprep.subr.bf16.mxu1 %v2286_v58  ;;  %v264_v57 = vrot.slane %v2955_v59, %v263_v53  ;;  %v272_v58 = vrot.slane %v2955_v59, %v271_v54  ;;  %v2124_v53 = vld [vmem:[%s3113_s8] ss:$0 sm:$0xff] }
  0xa4   :  { %v268_v60 = vrot.slane %v2955_v59, %v267_v55  ;;  %v276_v61 = vrot.slane %v2955_v59, %v275_v56 }
 0x118   :  { %v976_v2 = vpop.f32.mrb[0].mxu0  ;;  %v1017_v4 = vpop.f32.mrb[0].mxu1 }
 0x119   :  { %v977_v3 = vadd.f32 %v976_v2, %v248_v62  ;;  %v978_v5 = vpop.f32.mrb[1].mxu0  ;;  %v1018_v6 = vadd.f32 %v1017_v4, %v256_v63  ;;  %v1019_v8 = vpop.f32.mrb[1].mxu1 }
 0x11a   :  { %v979_v7 = vadd.f32 %v978_v5, %v252_v0  ;;  %v980_v9 = vpop.f32.mrb[2].mxu0  ;;  %v1020_v11 = vadd.f32 %v1019_v8, %v260_v1  ;;  %v1021_v12 = vpop.f32.mrb[2].mxu1 }
 0x11b   :  { %v1106_v10 = vmax.f32 %v977_v3, 0.0  ;;  %v981_v13 = vpop.f32.mrb[3].mxu0  ;;  %v1108_v45 = vmax.f32 %v1018_v6, 0.0  ;;  %v1022_v15 = vpop.f32.mrb[3].mxu1 }
 0x11c   :  { %v1107_v14 = vmax.f32 %v979_v7, 0.0  ;;  %v1109_v17 = vmax.f32 %v1020_v11, 0.0  ;;  %v2317_v15 = vld [vmem:[%s3112_s7] sm:$0xff]  }
 0x11d   :  { %v1114_v16 = vpack.c.bf16 %v1106_v10, %v1106_v10  ;;  %v1116_v35 = vpack.c.bf16 %v1108_v45, %v1108_v45 }
 0x11e   :  { %v1115_v19 = vpack.c.bf16 %v1107_v14, %v1107_v14  ;;  %v1117_v21 = vpack.c.bf16 %v1109_v17, %v1109_v17  ;;  %v2318_v17 = vld [vmem:[%s3112_s7 + $0x8] sm:$0xff]  }
 0x120   :  { %1673 = vmatprep.mubr.bf16.mxu0 %v1115_v19  ;;  %1713 = vmatprep.mubr.bf16.mxu1 %v1117_v21  ;;  %v2320_v19 = vld [vmem:[%s3112_s7 + $0x18] sm:$0xff]   ;;  %v2322_v21 = vld [vmem:[%s3112_s7 + $0x28] sm:$0xff]  }
 0x121   :  { %1674 = vmatmul.mubr.bf16.vlgmr.msra.gmra.mrb[8].mxu0 %v1114_v16  ;;  %1714 = vmatmul.mubr.bf16.vlgmr.msra.gmra.mrb[8].mxu1 %v1116_v35  ;;  %v2349_v16 = vmov 0.0   ;;  %v2319_v35 = vld [vmem:[%s3112_s7 + $0x10] sm:$0xff]  }
 0x122   :  { %2178 = vmatpush3.bf16.msra.mxu0 %v2287_v20  ;;  %2200 = vmatpush3.bf16.msra.mxu1 %v2288_v22  ;;  %v2321_v20 = vld [vmem:[%s3112_s7 + $0x20] sm:$0xff]   ;;  %v2323_v22 = vld [vmem:[%s3112_s7 + $0x30] sm:$0xff]  }
 0x123   :  { %2179 = vmatprep.subr.bf16.mxu0 %v2289_v23  ;;  %2201 = vmatprep.subr.bf16.mxu1 %v2290_v25  ;;  %v2324_v23 = vld [vmem:[%s3112_s7 + $0x38] sm:$0xff]  }
 0x126   :  { %2180 = vmatpush3.bf16.msra.mxu0 %v2291_v26  ;;  %2202 = vmatpush3.bf16.msra.mxu1 %v2292_v27  ;;  %v2059_v27 = vld [vmem:[%s3111_s6] ss:$0 sm:$0xff] }
 0x127   :  { %2181 = vmatprep.subr.bf16.mxu0 %v2293_v28  ;;  %2203 = vmatprep.subr.bf16.mxu1 %v2294_v29 }
 0x12a   :  { %2182 = vmatpush3.bf16.msra.mxu0 %v2295_v30  ;;  %2204 = vmatpush3.bf16.msra.mxu1 %v2296_v31 }
 0x12b   :  { %2183 = vmatprep.subr.bf16.mxu0 %v2297_v32  ;;  %2205 = vmatprep.subr.bf16.mxu1 %v2298_v24 }
 0x12e   :  { %2184 = vmatpush3.bf16.msra.mxu0 %v2299_v33  ;;  %2206 = vmatpush3.bf16.msra.mxu1 %v2300_v34 }
 0x12f   :  { %2185 = vmatprep.subr.bf16.mxu0 %v2301_v36  ;;  %2207 = vmatprep.subr.bf16.mxu1 %v2302_v37 }
 0x132   :  { %2186 = vmatpush3.bf16.msra.mxu0 %v2303_v38  ;;  %2208 = vmatpush3.bf16.msra.mxu1 %v2304_v39 }
 0x133   :  { %2187 = vmatprep.subr.bf16.mxu0 %v2305_v40  ;;  %2209 = vmatprep.subr.bf16.mxu1 %v2306_v41 }
 0x136   :  { %2188 = vmatpush3.bf16.msra.mxu0 %v2307_v42  ;;  %2210 = vmatpush3.bf16.msra.mxu1 %v2308_v43 }
 0x137   :  { %2189 = vmatprep.subr.bf16.mxu0 %v2309_v44  ;;  %2211 = vmatprep.subr.bf16.mxu1 %v2310_v46 }
 0x13a   :  { %2190 = vmatpush3.bf16.msra.mxu0 %v2311_v47  ;;  %2212 = vmatpush3.bf16.msra.mxu1 %v2312_v48 }
 0x13b   :  { %2191 = vmatprep.subr.bf16.mxu0 %v2313_v49  ;;  %2213 = vmatprep.subr.bf16.mxu1 %v2314_v50 }
 0x13e   :  { %2192 = vmatpush3.bf16.msra.mxu0 %v2315_v51  ;;  %2214 = vmatpush3.bf16.msra.mxu1 %v2316_v52 }
 0x13f   :  { %2230 = vmatprep.subr.bf16.mxu0 %v2349_v16 }
 0x158   :  { %v1058_v62 = vpop.f32.mrb[4].mxu0  ;;  %v1099_v0 = vpop.f32.mrb[4].mxu1 }
 0x159   :  { %v1059_v63 = vadd.f32 %v1058_v62, %v264_v57  ;;  %v1060_v1 = vpop.f32.mrb[5].mxu0  ;;  %v1100_v2 = vadd.f32 %v1099_v0, %v272_v58  ;;  %v1101_v4 = vpop.f32.mrb[5].mxu1 }
 0x15a   :  { %v1061_v3 = vadd.f32 %v1060_v1, %v268_v60  ;;  %v1062_v5 = vpop.f32.mrb[6].mxu0  ;;  %v1102_v7 = vadd.f32 %v1101_v4, %v276_v61  ;;  %v1103_v8 = vpop.f32.mrb[6].mxu1 }
 0x15b   :  { %v1110_v6 = vmax.f32 %v1059_v63, 0.0  ;;  %v1063_v18 = vpop.f32.mrb[7].mxu0  ;;  %v1112_v9 = vmax.f32 %v1100_v2, 0.0  ;;  %v1104_v11 = vpop.f32.mrb[7].mxu1 }
 0x15c   :  { %v1111_v10 = vmax.f32 %v1061_v3, 0.0  ;;  %v1113_v12 = vmax.f32 %v1102_v7, 0.0 }
 0x15d   :  { %v1120_v13 = vpack.c.bf16 %v1112_v9, %v1112_v9  ;;  %v1118_v14 = vpack.c.bf16 %v1110_v6, %v1110_v6 }
 0x15e   :  { %v1119_v45 = vpack.c.bf16 %v1111_v10, %v1111_v10  ;;  %v1121_v59 = vpack.c.bf16 %v1113_v12, %v1113_v12 }
 0x160   :  { %1753 = vmatprep.mubr.bf16.mxu0 %v1119_v45  ;;  %1793 = vmatprep.mubr.bf16.mxu1 %v1121_v59 }
 0x161   :  { %1754 = vmatmul.mubr.bf16.vlgmr.msra.gmra.mrb[12].mxu0 %v1118_v14  ;;  %1794 = vmatmul.mubr.bf16.vlgmr.msra.gmra.mrb[12].mxu1 %v1120_v13 }
 0x162   :  { %2231 = vmatpush3.bf16.msra.mxu0 %v2317_v15  ;;  %2246 = vmatprep.mubr.msk.bf16.mxu0 %vm2350_vm2, %v2349_v16 }
 0x163   :  { %2232 = vmatprep.subr.bf16.mxu0 %v2349_v16 }
 0x166   :  { %2233 = vmatpush3.bf16.msra.mxu0 %v2318_v17 }
 0x167   :  { %2234 = vmatprep.subr.bf16.mxu0 %v2349_v16 }
 0x16a   :  { %2235 = vmatpush3.bf16.msra.mxu0 %v2319_v35 }
 0x16b   :  { %2236 = vmatprep.subr.bf16.mxu0 %v2349_v16 }
 0x16e   :  { %2237 = vmatpush3.bf16.msra.mxu0 %v2320_v19 }
 0x16f   :  { %2238 = vmatprep.subr.bf16.mxu0 %v2349_v16 }
 0x172   :  { %2239 = vmatpush3.bf16.msra.mxu0 %v2321_v20 }
 0x173   :  { %2240 = vmatprep.subr.bf16.mxu0 %v2349_v16 }
 0x176   :  { %2241 = vmatpush3.bf16.msra.mxu0 %v2322_v21 }
 0x177   :  { %2242 = vmatprep.subr.bf16.mxu0 %v2349_v16 }
 0x17a   :  { %2243 = vmatpush3.bf16.msra.mxu0 %v2323_v22 }
 0x17b   :  { %2244 = vmatprep.subr.bf16.mxu0 %v2349_v16 }
 0x17e   :  { %2245 = vmatpush3.bf16.msra.mxu0 %v2324_v23 }
 0x1f4   :  { %v2149_v25 = vpop.f32.mrb[8].mxu0  ;;  %v2171_v26 = vpop.f32.mrb[8].mxu1 }
 0x1f5   :  { %v2150_v28 = vpop.f32.mrb[9].mxu0  ;;  %v2172_v30 = vpop.f32.mrb[9].mxu1 }
 0x1f6   :  { %v2151_v29 = vadd.f32 %v2150_v28, %v2149_v25  ;;  %v2152_v31 = vpop.f32.mrb[10].mxu0  ;;  %v2173_v32 = vadd.f32 %v2172_v30, %v2171_v26  ;;  %v2174_v24 = vpop.f32.mrb[10].mxu1 }
 0x1f7   :  { %v2153_v33 = vpop.f32.mrb[11].mxu0  ;;  %v2175_v36 = vpop.f32.mrb[11].mxu1 }
 0x1f8   :  { %v1676_v34 = vadd.f32 %v2151_v29, %v2059_v27 }
 0x1fa   :  { %v1716_v37 = vadd.f32 %v2173_v32, %v1676_v34 }
 0x234   :  { %v2193_v38 = vpop.f32.mrb[12].mxu0  ;;  %v2215_v39 = vpop.f32.mrb[12].mxu1 }
 0x235   :  { %v2194_v40 = vpop.f32.mrb[13].mxu0  ;;  %v2216_v42 = vpop.f32.mrb[13].mxu1 }
 0x236   :  { %v2195_v41 = vadd.f32 %v2194_v40, %v2193_v38  ;;  %v2196_v43 = vpop.f32.mrb[14].mxu0  ;;  %v2217_v44 = vadd.f32 %v2216_v42, %v2215_v39  ;;  %v2218_v46 = vpop.f32.mrb[14].mxu1 }
 0x237   :  { %v2197_v47 = vpop.f32.mrb[15].mxu0  ;;  %v2219_v49 = vpop.f32.mrb[15].mxu1 }
 0x238   :  { %v1756_v48 = vadd.f32 %v2195_v41, %v1716_v37 }
 0x23a   :  { %v1796_v50 = vadd.f32 %v2217_v44, %v1756_v48 }
 0x23c   :  { %v1801_v51 = vmax.f32 %v1796_v50, 0.0 }
 0x23e   :  { %v1802_v52 = vpack.c.bf16 %v1801_v51, %v1801_v51 }
 0x240   :  { %2247 = vmatmul.mubr.bf16.vlgmr.msra.gmra.mrb[16].mxu0 %v1802_v52 }
 0x313   :  { %v1908_v54 = vpop.f32.mrb[16].mxu0 }
 0x314   :  { %v1909_v55 = vadd.f32 %v2124_v53, %v1908_v54  ;;  %v2248_v56 = vpop.f32.mrb[17].mxu0 }
 0x315   :  { %v1911_v57 = vpop.f32.mrb[18].mxu0 }
 0x316   :  { %v1914_v58 = vmax.f32 %v1909_v55, 0.0  ;;  %v2249_v60 = vpop.f32.mrb[19].mxu0 }
 0x318   :  { %1916 = vst.msk [vmem:[#allocation2] sm:$0x3] %vm1915_vm3, %v1914_v58 }
 0x319   :  { %2336 = shalt.err (!%p2333_p4)
}
 0x31a   :  { %s2337_s28 = scalar_lea.hbm %s3114_s9, 32 }
 0x31b   :  { %p2338_p5 = scmp.ne.s32.totalorder %s3114_s9, %s2337_s28  ;;  %p2341_p6 = scmp.lt.u32.totalorder %s2337_s28, %s3114_s9 }
 0x31d   :  { %p2343_p7 = pnand %p2341_p6, %p2338_p5 }
 0x31f   :  { %2346 = shalt.err (!%p2343_p7)
}
 0x320   :  { %1926 = dma.vmem_to_hbm [thread:$0]  %s1924_s4, 32, %s3114_s9, [#allocation3]  }
 0x321   :  { %2347 = dma.done.wait [#allocation3], 32  }
 0x322   :  { %2348 = vsyncadd [#allocation3], 4294967264 }
 0x323   :  { %1930 = vsyncpa [#allocation3], 1 }

</bundles_post_ra>
